<compile_context>
chip_gen: v6e
topology: v6e:2x2x1
jax: 0.10.0
libtpu: 0.0.40
codegen_flags: <defaults>
</compile_context>

<pallas_src>
import functools

import jax
import jax.numpy as jnp
from jax import lax
from jax.experimental import pallas as pl
from jax.experimental.pallas import tpu as pltpu

_VMEM_LIMIT = 48 * 1024 * 1024   # safe on v7x (64 MiB physical), fine elsewhere


def _ru(x, m):
    return (x + m - 1) // m * m


# ---------------------------------------------------------------------------
# Kernel 1: implicit-GEMM conv (bf16 MXU, f32 acc) + fused per-channel stats.
# Grid = (channel tiles, batch).  The weight block is constant across the
# inner batch axis, so Pallas fetches it once per channel tile.
# ---------------------------------------------------------------------------

def _conv_stats_kernel(x_ref, w_ref, mask_ref, o_ref, sum_ref, ssq_ref, *,
                       tap_shifts, me, me_p):
    """One (channel-tile j, image n) grid step.

    x_ref    : (1, Lp, IC)   bf16  flattened padded image (+ small tail pad)
    w_ref    : (KT, IC, TN)  bf16  per-tap weight slabs (full K, resident)
    mask_ref : (me_p, 1)     f32   1.0 where the extended column is a real
                                   output position (ow < OW), else 0.0
    o_ref    : (1, me_p, TN) bf16  conv output on the extended (OH*Wp) grid
    sum_ref  : (1, 8, TN)    f32   per-channel partial sum (row 0, rest 0)
    ssq_ref  : (1, 8, TN)    f32   per-channel partial sum of squares
    """
    tn = o_ref.shape[-1]

    acc = jnp.zeros((me, tn), jnp.float32)
    for t, shift in enumerate(tap_shifts):               # static KH*KW taps
        a = x_ref[0, shift:shift + me, :]                # (me, IC) bf16
        acc = acc + jnp.dot(a, w_ref[t], preferred_element_type=jnp.float32)

    # bf16 intermediate (stats below are taken from the f32 accumulator).
    o_ref[0, :me, :] = acc.astype(o_ref.dtype)
    if me_p > me:
        o_ref[0, me:, :] = jnp.zeros((me_p - me, tn), o_ref.dtype)

    # Batch-stat partials over valid output positions only.
    m = mask_ref[...]
    if me_p > me:
        m = m[:me, :]
    yv = acc * m                                          # (me, TN)
    s = jnp.sum(yv, axis=0)                               # (TN,)
    ss = jnp.sum(yv * yv, axis=0)                         # (TN,)
    row0 = lax.broadcasted_iota(jnp.int32, (8, tn), 0) == 0
    sum_ref[...] = jnp.where(row0, s[None, :], 0.0)[None]
    ssq_ref[...] = jnp.where(row0, ss[None, :], 0.0)[None]


def conv2d_bn_stats(xflat, w_taps, mask, *, tap_shifts, me, me_p):
    """xflat (N,Lp,IC) bf16, w_taps (KT,IC,Np) bf16, mask (me_p,1) f32."""
    N, Lp, IC = xflat.shape
    KT, _, Np = w_taps.shape
    TN = 512 if Np % 512 == 0 else (256 if Np % 256 == 0 else 128)
    TN = min(TN, Np)
    n_j = Np // TN

    kernel = functools.partial(_conv_stats_kernel, tap_shifts=tap_shifts,
                               me=me, me_p=me_p)
    y, psum, pssq = pl.pallas_call(
        kernel,
        out_shape=(
            jax.ShapeDtypeStruct((N, me_p, Np), jnp.bfloat16),
            jax.ShapeDtypeStruct((N, 8, Np), jnp.float32),
            jax.ShapeDtypeStruct((N, 8, Np), jnp.float32),
        ),
        grid_spec=pltpu.PrefetchScalarGridSpec(
            num_scalar_prefetch=0,
            grid=(n_j, N),                    # j slow -> weight tile stays put
            in_specs=[
                pl.BlockSpec((1, Lp, IC), lambda j, n: (n, 0, 0)),
                pl.BlockSpec((KT, IC, TN), lambda j, n: (0, 0, j)),
                pl.BlockSpec((me_p, 1), lambda j, n: (0, 0)),
            ],
            out_specs=[
                pl.BlockSpec((1, me_p, TN), lambda j, n: (n, 0, j)),
                pl.BlockSpec((1, 8, TN), lambda j, n: (n, 0, j)),
                pl.BlockSpec((1, 8, TN), lambda j, n: (n, 0, j)),
            ],
        ),
        compiler_params=pltpu.CompilerParams(
            dimension_semantics=("parallel", "parallel"),
            vmem_limit_bytes=_VMEM_LIMIT),
    )(xflat, w_taps, mask)
    return y, psum, pssq


# ---------------------------------------------------------------------------
# Kernel 2: BN-apply + ReLU.  Reads the bf16 intermediate, computes in f32,
# and writes only the real OC channels (channel padding dropped in-kernel).
# ---------------------------------------------------------------------------

def _bn_relu_kernel(x_ref, scale_ref, shift_ref, o_ref):
    oc = o_ref.shape[-1]
    x = x_ref[0].astype(jnp.float32)                      # (me_p, Np)
    y = jnp.maximum(x * scale_ref[...] + shift_ref[...], 0.0)
    o_ref[0] = y[:, :oc]


def bn_relu_apply(y_bf16, scale, shift, oc):
    N, me_p, Np = y_bf16.shape
    return pl.pallas_call(
        _bn_relu_kernel,
        out_shape=jax.ShapeDtypeStruct((N, me_p, oc), jnp.float32),
        grid_spec=pltpu.PrefetchScalarGridSpec(
            num_scalar_prefetch=0,
            grid=(N,),
            in_specs=[
                pl.BlockSpec((1, me_p, Np), lambda n: (n, 0, 0)),
                pl.BlockSpec((1, Np), lambda n: (0, 0)),
                pl.BlockSpec((1, Np), lambda n: (0, 0)),
            ],
            out_specs=pl.BlockSpec((1, me_p, oc), lambda n: (n, 0, 0)),
        ),
        compiler_params=pltpu.CompilerParams(
            dimension_semantics=("parallel",),
            vmem_limit_bytes=_VMEM_LIMIT),
    )(y_bf16, scale, shift)


# ---------------------------------------------------------------------------
# ConvBlock forward: Conv2d(pad=1, k=3, stride=1) -> BN(train) -> ReLU
# ---------------------------------------------------------------------------

def conv_block_forward(x_nchw, params, *, stride=1, padding=1, eps=1e-5):
    w = params['w']          # (OC, IC, KH, KW), torch layout
    gamma = params['gamma']  # (OC,)
    beta = params['beta']    # (OC,)
    OC, IC, KH, KW = w.shape
    # Conv bias (params['b']) is intentionally unused: a per-channel constant
    # is exactly cancelled by the following training-mode BatchNorm.
    assert stride == 1, "implicit-GEMM path assumes stride == 1"
    # TODO(synk): stride > 1 would need a strided row gather (or an OH-tiled
    #             halo-DMA variant); not implemented here.
    # TODO(synk): very large images (e.g. 224x224 with wide C) would need an
    #             OH-tiled halo variant instead of whole-image-resident blocks.

    N, C, H, W_ = x_nchw.shape
    assert C == IC
    Hp, Wp = H + 2 * padding, W_ + 2 * padding
    OH, OW = Hp - KH + 1, Wp - KW + 1

    # NHWC, bf16, spatially padded, flattened per image to (Hp*Wp, IC) with a
    # small tail so every tap's operand is a contiguous row slice.
    x = jnp.transpose(x_nchw, (0, 2, 3, 1)).astype(jnp.bfloat16)
    xp = jnp.pad(x, ((0, 0), (padding, padding), (padding, padding), (0, 0)))
    Lraw = Hp * Wp
    Lp = _ru(Lraw + KW - 1, 8)
    xflat = jnp.pad(xp.reshape(N, Lraw, IC), ((0, 0), (0, Lp - Lraw), (0, 0)))

    # Weight: tap-major (KH*KW, IC, OC), channel dim padded to a lane multiple.
    Np = _ru(OC, 128)
    w_taps = jnp.transpose(w, (2, 3, 1, 0)).reshape(KH * KW, IC, OC)
    if Np != OC:
        w_taps = jnp.pad(w_taps, ((0, 0), (0, 0), (0, Np - OC)))
    w_taps = w_taps.astype(jnp.bfloat16)

    # Extended output rows: r = oh*Wp + ow_ext; only ow_ext < OW are real.
    me = OH * Wp
    me_p = _ru(me, 8)
    tap_shifts = tuple(di * Wp + dj for di in range(KH) for dj in range(KW))
    pos = jnp.arange(me_p, dtype=jnp.int32)
    mask = (((pos % Wp) < OW) & (pos < me)).astype(jnp.float32).reshape(me_p, 1)

    y_bf16, psum, pssq = conv2d_bn_stats(
        xflat, w_taps, mask, tap_shifts=tap_shifts, me=me, me_p=me_p)

    # Finalize BatchNorm batch statistics (tiny, plain JAX / f32).
    M = N * OH * OW
    col_sum = jnp.sum(psum, axis=(0, 1))                  # (Np,)
    col_ssq = jnp.sum(pssq, axis=(0, 1))                  # (Np,)
    mean = col_sum / M
    var = jnp.maximum(col_ssq / M - mean * mean, 0.0)
    inv = lax.rsqrt(var + eps)
    gamma_p = gamma if Np == OC else jnp.pad(gamma, (0, Np - OC))
    beta_p = beta if Np == OC else jnp.pad(beta, (0, Np - OC))
    scale = (gamma_p * inv).astype(jnp.float32).reshape(1, Np)
    shift = (beta_p - mean * gamma_p * inv).astype(jnp.float32).reshape(1, Np)

    out = bn_relu_apply(y_bf16, scale, shift, OC)          # (N, me_p, OC) f32

    # TODO(synk): the final compaction + NHWC->NCHW transpose stays in XLA; it
    #             could be folded into kernel 2's out BlockSpec at the cost of
    #             an in-kernel transpose.
    out = out[:, :me, :].reshape(N, OH, Wp, OC)[:, :, :OW, :]
    return jnp.transpose(out, (0, 3, 1, 2))                # NCHW


# ---------------------------------------------------------------------------
# Pure-JAX reference (for a loose mixed-precision sanity check).
# ---------------------------------------------------------------------------

def _reference_forward(x, params, eps=1e-5):
    w, b = params['w'], params['b']
    y = lax.conv_general_dilated(
        x, w, window_strides=(1, 1), padding=((1, 1), (1, 1)),
        dimension_numbers=('NCHW', 'OIHW', 'NCHW'))
    y = y + b.reshape(1, -1, 1, 1)
    mean = y.mean(axis=(0, 2, 3), keepdims=True)
    var = y.var(axis=(0, 2, 3), keepdims=True)
    yn = (y - mean) * lax.rsqrt(var + eps)
    yn = yn * params['gamma'].reshape(1, -1, 1, 1) + params['beta'].reshape(1, -1, 1, 1)
    return jnp.maximum(yn, 0.0)


# ---------------------------------------------------------------------------
# Deterministic example
# ---------------------------------------------------------------------------

if __name__ == "__main__":
    key = jax.random.PRNGKey(0)
    k_x, k_w, k_b = jax.random.split(key, 3)

    Nb, C_in, H, W = 2, 4, 16, 16
    C_out = 32

    x = jax.random.normal(k_x, (Nb, C_in, H, W), jnp.float32)
    params = {
        'w': jax.random.normal(k_w, (C_out, C_in, 3, 3), jnp.float32)
             * (2.0 / (C_in * 9)) ** 0.5,
        'b': jax.random.normal(k_b, (C_out,), jnp.float32) * 0.01,  # cancelled by BN
        'gamma': jnp.ones((C_out,), jnp.float32),
        'beta': jnp.zeros((C_out,), jnp.float32),
    }

    fwd = jax.jit(conv_block_forward)
    out = jax.block_until_ready(fwd(x, params))

    assert out.shape == (Nb, C_out, H, W), out.shape
    assert bool(jnp.all(jnp.isfinite(out)))
    assert bool(jnp.all(out >= 0.0))          # ReLU output must be nonnegative

    ref = _reference_forward(x, params)
    max_err = float(jnp.max(jnp.abs(out - ref)))
    assert max_err < 0.1, f"max abs error vs f32 reference: {max_err}"

    print("KERNEL_OK")
</pallas_src>

<mosaic_0001>
module attributes {stable_mosaic.version = 11 : i64} {
  func.func @_conv_stats_kernel(%arg0: i32, %arg1: i32, %arg2: memref<1x328x4xbf16, #tpu.memory_space<vmem>>, %arg3: memref<9x4x128xbf16, #tpu.memory_space<vmem>>, %arg4: memref<288x1xf32, #tpu.memory_space<vmem>>, %arg5: memref<1x288x128xbf16, #tpu.memory_space<vmem>>, %arg6: memref<1x8x128xf32, #tpu.memory_space<vmem>>, %arg7: memref<1x8x128xf32, #tpu.memory_space<vmem>>) attributes {dimension_semantics = [#tpu.dimension_semantics<parallel>, #tpu.dimension_semantics<parallel>], iteration_bounds = array<i64: 1, 2>, scalar_prefetch = 0 : i64, scratch_operands = 0 : i64, tpu.core_type = #tpu.core_type<tc>, window_params = [{transform_indices = @transform_0, window_bounds = array<i64: 1, 328, 4>}, {transform_indices = @transform_1, window_bounds = array<i64: 9, 4, 128>}, {pipeline_mode = #tpu.pipeline_mode<synchronous>, transform_indices = @transform_2, window_bounds = array<i64: 288, 1>}, {transform_indices = @transform_3, window_bounds = array<i64: 1, 288, 128>}, {transform_indices = @transform_4, window_bounds = array<i64: 1, 8, 128>}, {transform_indices = @transform_5, window_bounds = array<i64: 1, 8, 128>}]} {
    %cst = arith.constant 0.000000e+00 : f32
    %0 = vector.broadcast %cst : f32 to vector<288x128xf32>
    %c0 = arith.constant 0 : index
    %c0_0 = arith.constant 0 : index
    %c0_1 = arith.constant 0 : index
    %1 = vector.load %arg2[%c0, %c0_0, %c0_1] : memref<1x328x4xbf16, #tpu.memory_space<vmem>>, vector<1x288x4xbf16>
    %2 = vector.shape_cast %1 : vector<1x288x4xbf16> to vector<288x4xbf16>
    %c0_2 = arith.constant 0 : index
    %c0_3 = arith.constant 0 : index
    %c0_4 = arith.constant 0 : index
    %3 = vector.load %arg3[%c0_2, %c0_3, %c0_4] : memref<9x4x128xbf16, #tpu.memory_space<vmem>>, vector<1x4x128xbf16>
    %4 = vector.shape_cast %3 : vector<1x4x128xbf16> to vector<4x128xbf16>
    %cst_5 = arith.constant dense<0.000000e+00> : vector<288x128xf32>
    %5 = tpu.matmul %2, %4, %cst_5 {dimension_numbers = #tpu.dot_dimension_numbers<[1], [0], [0], [1], [0, 0, 1, 1], [], []>} : vector<288x4xbf16>, vector<4x128xbf16>, vector<288x128xf32> -> vector<288x128xf32>
    %6 = arith.addf %0, %5 : vector<288x128xf32>
    %c0_6 = arith.constant 0 : index
    %c1 = arith.constant 1 : index
    %c0_7 = arith.constant 0 : index
    %7 = vector.load %arg2[%c0_6, %c1, %c0_7] : memref<1x328x4xbf16, #tpu.memory_space<vmem>>, vector<1x288x4xbf16>
    %8 = vector.shape_cast %7 : vector<1x288x4xbf16> to vector<288x4xbf16>
    %c1_8 = arith.constant 1 : index
    %c0_9 = arith.constant 0 : index
    %c0_10 = arith.constant 0 : index
    %9 = vector.load %arg3[%c1_8, %c0_9, %c0_10] : memref<9x4x128xbf16, #tpu.memory_space<vmem>>, vector<1x4x128xbf16>
    %10 = vector.shape_cast %9 : vector<1x4x128xbf16> to vector<4x128xbf16>
    %cst_11 = arith.constant dense<0.000000e+00> : vector<288x128xf32>
    %11 = tpu.matmul %8, %10, %cst_11 {dimension_numbers = #tpu.dot_dimension_numbers<[1], [0], [0], [1], [0, 0, 1, 1], [], []>} : vector<288x4xbf16>, vector<4x128xbf16>, vector<288x128xf32> -> vector<288x128xf32>
    %12 = arith.addf %6, %11 : vector<288x128xf32>
    %c0_12 = arith.constant 0 : index
    %c2 = arith.constant 2 : index
    %c0_13 = arith.constant 0 : index
    %13 = vector.load %arg2[%c0_12, %c2, %c0_13] : memref<1x328x4xbf16, #tpu.memory_space<vmem>>, vector<1x288x4xbf16>
    %14 = vector.shape_cast %13 : vector<1x288x4xbf16> to vector<288x4xbf16>
    %c2_14 = arith.constant 2 : index
    %c0_15 = arith.constant 0 : index
    %c0_16 = arith.constant 0 : index
    %15 = vector.load %arg3[%c2_14, %c0_15, %c0_16] : memref<9x4x128xbf16, #tpu.memory_space<vmem>>, vector<1x4x128xbf16>
    %16 = vector.shape_cast %15 : vector<1x4x128xbf16> to vector<4x128xbf16>
    %cst_17 = arith.constant dense<0.000000e+00> : vector<288x128xf32>
    %17 = tpu.matmul %14, %16, %cst_17 {dimension_numbers = #tpu.dot_dimension_numbers<[1], [0], [0], [1], [0, 0, 1, 1], [], []>} : vector<288x4xbf16>, vector<4x128xbf16>, vector<288x128xf32> -> vector<288x128xf32>
    %18 = arith.addf %12, %17 : vector<288x128xf32>
    %c0_18 = arith.constant 0 : index
    %c18 = arith.constant 18 : index
    %c0_19 = arith.constant 0 : index
    %19 = vector.load %arg2[%c0_18, %c18, %c0_19] : memref<1x328x4xbf16, #tpu.memory_space<vmem>>, vector<1x288x4xbf16>
    %20 = vector.shape_cast %19 : vector<1x288x4xbf16> to vector<288x4xbf16>
    %c3 = arith.constant 3 : index
    %c0_20 = arith.constant 0 : index
    %c0_21 = arith.constant 0 : index
    %21 = vector.load %arg3[%c3, %c0_20, %c0_21] : memref<9x4x128xbf16, #tpu.memory_space<vmem>>, vector<1x4x128xbf16>
    %22 = vector.shape_cast %21 : vector<1x4x128xbf16> to vector<4x128xbf16>
    %cst_22 = arith.constant dense<0.000000e+00> : vector<288x128xf32>
    %23 = tpu.matmul %20, %22, %cst_22 {dimension_numbers = #tpu.dot_dimension_numbers<[1], [0], [0], [1], [0, 0, 1, 1], [], []>} : vector<288x4xbf16>, vector<4x128xbf16>, vector<288x128xf32> -> vector<288x128xf32>
    %24 = arith.addf %18, %23 : vector<288x128xf32>
    %c0_23 = arith.constant 0 : index
    %c19 = arith.constant 19 : index
    %c0_24 = arith.constant 0 : index
    %25 = vector.load %arg2[%c0_23, %c19, %c0_24] : memref<1x328x4xbf16, #tpu.memory_space<vmem>>, vector<1x288x4xbf16>
    %26 = vector.shape_cast %25 : vector<1x288x4xbf16> to vector<288x4xbf16>
    %c4 = arith.constant 4 : index
    %c0_25 = arith.constant 0 : index
    %c0_26 = arith.constant 0 : index
    %27 = vector.load %arg3[%c4, %c0_25, %c0_26] : memref<9x4x128xbf16, #tpu.memory_space<vmem>>, vector<1x4x128xbf16>
    %28 = vector.shape_cast %27 : vector<1x4x128xbf16> to vector<4x128xbf16>
    %cst_27 = arith.constant dense<0.000000e+00> : vector<288x128xf32>
    %29 = tpu.matmul %26, %28, %cst_27 {dimension_numbers = #tpu.dot_dimension_numbers<[1], [0], [0], [1], [0, 0, 1, 1], [], []>} : vector<288x4xbf16>, vector<4x128xbf16>, vector<288x128xf32> -> vector<288x128xf32>
    %30 = arith.addf %24, %29 : vector<288x128xf32>
    %c0_28 = arith.constant 0 : index
    %c20 = arith.constant 20 : index
    %c0_29 = arith.constant 0 : index
    %31 = vector.load %arg2[%c0_28, %c20, %c0_29] : memref<1x328x4xbf16, #tpu.memory_space<vmem>>, vector<1x288x4xbf16>
    %32 = vector.shape_cast %31 : vector<1x288x4xbf16> to vector<288x4xbf16>
    %c5 = arith.constant 5 : index
    %c0_30 = arith.constant 0 : index
    %c0_31 = arith.constant 0 : index
    %33 = vector.load %arg3[%c5, %c0_30, %c0_31] : memref<9x4x128xbf16, #tpu.memory_space<vmem>>, vector<1x4x128xbf16>
    %34 = vector.shape_cast %33 : vector<1x4x128xbf16> to vector<4x128xbf16>
    %cst_32 = arith.constant dense<0.000000e+00> : vector<288x128xf32>
    %35 = tpu.matmul %32, %34, %cst_32 {dimension_numbers = #tpu.dot_dimension_numbers<[1], [0], [0], [1], [0, 0, 1, 1], [], []>} : vector<288x4xbf16>, vector<4x128xbf16>, vector<288x128xf32> -> vector<288x128xf32>
    %36 = arith.addf %30, %35 : vector<288x128xf32>
    %c0_33 = arith.constant 0 : index
    %c36 = arith.constant 36 : index
    %c0_34 = arith.constant 0 : index
    %37 = vector.load %arg2[%c0_33, %c36, %c0_34] : memref<1x328x4xbf16, #tpu.memory_space<vmem>>, vector<1x288x4xbf16>
    %38 = vector.shape_cast %37 : vector<1x288x4xbf16> to vector<288x4xbf16>
    %c6 = arith.constant 6 : index
    %c0_35 = arith.constant 0 : index
    %c0_36 = arith.constant 0 : index
    %39 = vector.load %arg3[%c6, %c0_35, %c0_36] : memref<9x4x128xbf16, #tpu.memory_space<vmem>>, vector<1x4x128xbf16>
    %40 = vector.shape_cast %39 : vector<1x4x128xbf16> to vector<4x128xbf16>
    %cst_37 = arith.constant dense<0.000000e+00> : vector<288x128xf32>
    %41 = tpu.matmul %38, %40, %cst_37 {dimension_numbers = #tpu.dot_dimension_numbers<[1], [0], [0], [1], [0, 0, 1, 1], [], []>} : vector<288x4xbf16>, vector<4x128xbf16>, vector<288x128xf32> -> vector<288x128xf32>
    %42 = arith.addf %36, %41 : vector<288x128xf32>
    %c0_38 = arith.constant 0 : index
    %c37 = arith.constant 37 : index
    %c0_39 = arith.constant 0 : index
    %43 = vector.load %arg2[%c0_38, %c37, %c0_39] : memref<1x328x4xbf16, #tpu.memory_space<vmem>>, vector<1x288x4xbf16>
    %44 = vector.shape_cast %43 : vector<1x288x4xbf16> to vector<288x4xbf16>
    %c7 = arith.constant 7 : index
    %c0_40 = arith.constant 0 : index
    %c0_41 = arith.constant 0 : index
    %45 = vector.load %arg3[%c7, %c0_40, %c0_41] : memref<9x4x128xbf16, #tpu.memory_space<vmem>>, vector<1x4x128xbf16>
    %46 = vector.shape_cast %45 : vector<1x4x128xbf16> to vector<4x128xbf16>
    %cst_42 = arith.constant dense<0.000000e+00> : vector<288x128xf32>
    %47 = tpu.matmul %44, %46, %cst_42 {dimension_numbers = #tpu.dot_dimension_numbers<[1], [0], [0], [1], [0, 0, 1, 1], [], []>} : vector<288x4xbf16>, vector<4x128xbf16>, vector<288x128xf32> -> vector<288x128xf32>
    %48 = arith.addf %42, %47 : vector<288x128xf32>
    %c0_43 = arith.constant 0 : index
    %c38 = arith.constant 38 : index
    %c0_44 = arith.constant 0 : index
    %49 = vector.load %arg2[%c0_43, %c38, %c0_44] : memref<1x328x4xbf16, #tpu.memory_space<vmem>>, vector<1x288x4xbf16>
    %50 = vector.shape_cast %49 : vector<1x288x4xbf16> to vector<288x4xbf16>
    %c8 = arith.constant 8 : index
    %c0_45 = arith.constant 0 : index
    %c0_46 = arith.constant 0 : index
    %51 = vector.load %arg3[%c8, %c0_45, %c0_46] : memref<9x4x128xbf16, #tpu.memory_space<vmem>>, vector<1x4x128xbf16>
    %52 = vector.shape_cast %51 : vector<1x4x128xbf16> to vector<4x128xbf16>
    %cst_47 = arith.constant dense<0.000000e+00> : vector<288x128xf32>
    %53 = tpu.matmul %50, %52, %cst_47 {dimension_numbers = #tpu.dot_dimension_numbers<[1], [0], [0], [1], [0, 0, 1, 1], [], []>} : vector<288x4xbf16>, vector<4x128xbf16>, vector<288x128xf32> -> vector<288x128xf32>
    %54 = arith.addf %48, %53 : vector<288x128xf32>
    %55 = arith.truncf %54 : vector<288x128xf32> to vector<288x128xbf16>
    %c0_48 = arith.constant 0 : index
    %c0_49 = arith.constant 0 : index
    %c0_50 = arith.constant 0 : index
    %56 = vector.load %arg5[%c0_48, %c0_49, %c0_50] : memref<1x288x128xbf16, #tpu.memory_space<vmem>>, vector<1x288x128xbf16>
    %57 = vector.shape_cast %56 : vector<1x288x128xbf16> to vector<288x128xbf16>
    %58 = vector.shape_cast %55 : vector<288x128xbf16> to vector<1x288x128xbf16>
    tpu.vector_store %arg5[%c0_48, %c0_49, %c0_50], %58 {strides = array<i32>} : memref<1x288x128xbf16, #tpu.memory_space<vmem>>, vector<1x288x128xbf16>,
    %c0_51 = arith.constant 0 : index
    %c0_52 = arith.constant 0 : index
    %59 = vector.load %arg4[%c0_51, %c0_52] : memref<288x1xf32, #tpu.memory_space<vmem>>, vector<288x1xf32>
    %60 = vector.broadcast %59 : vector<288x1xf32> to vector<288x128xf32>
    %61 = arith.mulf %54, %60 : vector<288x128xf32>
    %cst_53 = arith.constant dense<0.000000e+00> : vector<128xf32>
    %62 = vector.multi_reduction <add>, %61, %cst_53 [0] : vector<288x128xf32> to vector<128xf32>
    %63 = arith.mulf %61, %61 : vector<288x128xf32>
    %cst_54 = arith.constant dense<0.000000e+00> : vector<128xf32>
    %64 = vector.multi_reduction <add>, %63, %cst_54 [0] : vector<288x128xf32> to vector<128xf32>
    %65 = tpu.iota {dimensions = array<i32: 0>} : vector<8x128xi32>
    %c0_i32 = arith.constant 0 : i32
    %66 = vector.broadcast %c0_i32 : i32 to vector<8x128xi32>
    %67 = arith.cmpi eq, %65, %66 : vector<8x128xi32>
    %68 = vector.shape_cast %62 : vector<128xf32> to vector<1x128xf32>
    %cst_55 = arith.constant 0.000000e+00 : f32
    %69 = vector.shape_cast %68 : vector<1x128xf32> to vector<1x128xf32>
    %70 = vector.broadcast %69 : vector<1x128xf32> to vector<8x128xf32>
    %71 = vector.broadcast %cst_55 : f32 to vector<8x128xf32>
    %72 = arith.select %67, %70, %71 : vector<8x128xi1>, vector<8x128xf32>
    %73 = vector.shape_cast %72 : vector<8x128xf32> to vector<1x8x128xf32>
    %c0_56 = arith.constant 0 : index
    %c0_57 = arith.constant 0 : index
    %c0_58 = arith.constant 0 : index
    %74 = vector.load %arg6[%c0_56, %c0_57, %c0_58] : memref<1x8x128xf32, #tpu.memory_space<vmem>>, vector<1x8x128xf32>
    tpu.vector_store %arg6[%c0_56, %c0_57, %c0_58], %73 {strides = array<i32>} : memref<1x8x128xf32, #tpu.memory_space<vmem>>, vector<1x8x128xf32>,
    %75 = vector.shape_cast %64 : vector<128xf32> to vector<1x128xf32>
    %cst_59 = arith.constant 0.000000e+00 : f32
    %76 = vector.shape_cast %75 : vector<1x128xf32> to vector<1x128xf32>
    %77 = vector.broadcast %76 : vector<1x128xf32> to vector<8x128xf32>
    %78 = vector.broadcast %cst_59 : f32 to vector<8x128xf32>
    %79 = arith.select %67, %77, %78 : vector<8x128xi1>, vector<8x128xf32>
    %80 = vector.shape_cast %79 : vector<8x128xf32> to vector<1x8x128xf32>
    %c0_60 = arith.constant 0 : index
    %c0_61 = arith.constant 0 : index
    %c0_62 = arith.constant 0 : index
    %81 = vector.load %arg7[%c0_60, %c0_61, %c0_62] : memref<1x8x128xf32, #tpu.memory_space<vmem>>, vector<1x8x128xf32>
    tpu.vector_store %arg7[%c0_60, %c0_61, %c0_62], %80 {strides = array<i32>} : memref<1x8x128xf32, #tpu.memory_space<vmem>>, vector<1x8x128xf32>,
    return
  }
  func.func @transform_0(%arg0: i32, %arg1: i32) -> (i32, i32, i32) {
    %c0_i32 = arith.constant 0 : i32
    %c0_i32_0 = arith.constant 0 : i32
    %c0_i32_1 = arith.constant 0 : i32
    return %arg1, %c0_i32, %c0_i32_0 : i32, i32, i32
  }
  func.func @transform_1(%arg0: i32, %arg1: i32) -> (i32, i32, i32) {
    %c0_i32 = arith.constant 0 : i32
    %c0_i32_0 = arith.constant 0 : i32
    %c0_i32_1 = arith.constant 0 : i32
    return %c0_i32, %c0_i32_0, %arg0 : i32, i32, i32
  }
  func.func @transform_2(%arg0: i32, %arg1: i32) -> (i32, i32) {
    %c0_i32 = arith.constant 0 : i32
    %c0_i32_0 = arith.constant 0 : i32
    %c0_i32_1 = arith.constant 0 : i32
    return %c0_i32, %c0_i32_0 : i32, i32
  }
  func.func @transform_3(%arg0: i32, %arg1: i32) -> (i32, i32, i32) {
    %c0_i32 = arith.constant 0 : i32
    %c0_i32_0 = arith.constant 0 : i32
    return %arg1, %c0_i32, %arg0 : i32, i32, i32
  }
  func.func @transform_4(%arg0: i32, %arg1: i32) -> (i32, i32, i32) {
    %c0_i32 = arith.constant 0 : i32
    %c0_i32_0 = arith.constant 0 : i32
    return %arg1, %c0_i32, %arg0 : i32, i32, i32
  }
  func.func @transform_5(%arg0: i32, %arg1: i32) -> (i32, i32, i32) {
    %c0_i32 = arith.constant 0 : i32
    %c0_i32_0 = arith.constant 0 : i32
    return %arg1, %c0_i32, %arg0 : i32, i32, i32
  }
}

module attributes {stable_mosaic.version = 11 : i64} {
  func.func @_bn_relu_kernel(%arg0: i32, %arg1: memref<1x288x128xbf16, #tpu.memory_space<vmem>>, %arg2: memref<1x128xf32, #tpu.memory_space<vmem>>, %arg3: memref<1x128xf32, #tpu.memory_space<vmem>>, %arg4: memref<1x288x32xf32, #tpu.memory_space<vmem>>) attributes {dimension_semantics = [#tpu.dimension_semantics<parallel>], iteration_bounds = array<i64: 2>, scalar_prefetch = 0 : i64, scratch_operands = 0 : i64, tpu.core_type = #tpu.core_type<tc>, window_params = [{transform_indices = @transform_0, window_bounds = array<i64: 1, 288, 128>}, {pipeline_mode = #tpu.pipeline_mode<synchronous>, transform_indices = @transform_1, window_bounds = array<i64: 1, 128>}, {pipeline_mode = #tpu.pipeline_mode<synchronous>, transform_indices = @transform_2, window_bounds = array<i64: 1, 128>}, {transform_indices = @transform_3, window_bounds = array<i64: 1, 288, 32>}]} {
    %c0 = arith.constant 0 : index
    %c0_0 = arith.constant 0 : index
    %c0_1 = arith.constant 0 : index
    %0 = vector.load %arg1[%c0, %c0_0, %c0_1] : memref<1x288x128xbf16, #tpu.memory_space<vmem>>, vector<1x288x128xbf16>
    %1 = vector.shape_cast %0 : vector<1x288x128xbf16> to vector<288x128xbf16>
    %2 = arith.extf %1 : vector<288x128xbf16> to vector<288x128xf32>
    %c0_2 = arith.constant 0 : index
    %c0_3 = arith.constant 0 : index
    %3 = vector.load %arg2[%c0_2, %c0_3] : memref<1x128xf32, #tpu.memory_space<vmem>>, vector<1x128xf32>
    %4 = vector.broadcast %3 : vector<1x128xf32> to vector<288x128xf32>
    %5 = arith.mulf %2, %4 : vector<288x128xf32>
    %c0_4 = arith.constant 0 : index
    %c0_5 = arith.constant 0 : index
    %6 = vector.load %arg3[%c0_4, %c0_5] : memref<1x128xf32, #tpu.memory_space<vmem>>, vector<1x128xf32>
    %7 = vector.broadcast %6 : vector<1x128xf32> to vector<288x128xf32>
    %8 = arith.addf %5, %7 : vector<288x128xf32>
    %cst = arith.constant 0.000000e+00 : f32
    %9 = vector.broadcast %cst : f32 to vector<288x128xf32>
    %10 = arith.maximumf %8, %9 : vector<288x128xf32>
    %11 = vector.extract_strided_slice %10 {offsets = [0, 0], sizes = [288, 32], strides = [1, 1]} : vector<288x128xf32> to vector<288x32xf32>
    %c0_6 = arith.constant 0 : index
    %c0_7 = arith.constant 0 : index
    %c0_8 = arith.constant 0 : index
    %12 = vector.load %arg4[%c0_6, %c0_7, %c0_8] : memref<1x288x32xf32, #tpu.memory_space<vmem>>, vector<1x288x32xf32>
    %13 = vector.shape_cast %12 : vector<1x288x32xf32> to vector<288x32xf32>
    %14 = vector.shape_cast %11 : vector<288x32xf32> to vector<1x288x32xf32>
    tpu.vector_store %arg4[%c0_6, %c0_7, %c0_8], %14 {strides = array<i32>} : memref<1x288x32xf32, #tpu.memory_space<vmem>>, vector<1x288x32xf32>,
    return
  }
  func.func @transform_0(%arg0: i32) -> (i32, i32, i32) {
    %c0_i32 = arith.constant 0 : i32
    %c0_i32_0 = arith.constant 0 : i32
    %c0_i32_1 = arith.constant 0 : i32
    return %arg0, %c0_i32, %c0_i32_0 : i32, i32, i32
  }
  func.func @transform_1(%arg0: i32) -> (i32, i32) {
    %c0_i32 = arith.constant 0 : i32
    %c0_i32_0 = arith.constant 0 : i32
    %c0_i32_1 = arith.constant 0 : i32
    return %c0_i32, %c0_i32_0 : i32, i32
  }
  func.func @transform_2(%arg0: i32) -> (i32, i32) {
    %c0_i32 = arith.constant 0 : i32
    %c0_i32_0 = arith.constant 0 : i32
    %c0_i32_1 = arith.constant 0 : i32
    return %c0_i32, %c0_i32_0 : i32, i32
  }
  func.func @transform_3(%arg0: i32) -> (i32, i32, i32) {
    %c0_i32 = arith.constant 0 : i32
    %c0_i32_0 = arith.constant 0 : i32
    %c0_i32_1 = arith.constant 0 : i32
    return %arg0, %c0_i32, %c0_i32_0 : i32, i32, i32
  }
}

</mosaic_0001>

<bundles_post_ra>
// kernel: conv_block_forward.3
= control target key start
LH: loop header
LB: loop body
LE: loop exit
PB: predicated region body
PF: predicated region fallthrough
CT: control target
= control target key end

     0   :  { %s595_s12 = smov 0   ;;  %s792_s0 = inlined_call_operand.vmem [shape: bf16[2,288,128], index: 0, kind: input, shape index: {}]   ;;  %s793_s1 = inlined_call_operand.vmem [shape: f32[1,128], index: 1, kind: input, shape index: {}]   ;;  %s794_s2 = inlined_call_operand.vmem [shape: f32[1,128], index: 2, kind: input, shape index: {}]   ;;  %s795_s3 = inlined_call_operand.vmem [shape: f32[2,288,32], index: 3, kind: output, shape index: {}]  }
   0x1 LB: > { %s457_s13 = sadd.s32 4294967295, %s573_s12   ;;  %p461_p0 = scmp.ge.s32.totalorder %s573_s12, 1  ;;  %s573_s12 = sphi %s595_s12, %s13_s12  }
   0x2   : > { %p137_p1 = scmp.lt.s32.totalorder %s573_s12, 3 }
   0x4   : > { %p138_p2 = pnand %p461_p0, %p137_p1 }
   0x5   : > { %p161_p3 = scmp.lt.s32.totalorder (!%p138_p2), %s457_s13, 1 }
   0x6   : > { %141 = sbr.rel (%p138_p2) target bundleno = 57 (0x39), region = 32 }
   0xb   : > { %s797_s13 = smov (!%p161_p3, %s457_s13), 1  ;;  %v614_v0 = vld [vmem:[%s793_s1] ss:$0 sm:$0xff]  ;;  %vm365_vm0 = vcmask 261120  }
   0xc   : > { %s557_s14 = smul.u32 144, %s797_s13  ;;  %v624_v9 = vld [vmem:[%s794_s2] ss:$0 sm:$0xff] }
   0xd   : > { %s558_s20 = smul.u32 288, %s797_s13 }
   0xe   : > { %s609_s17 = scalar_lea.vmem %s792_s0, %s557_s14 }
   0xf   : > { %v469_v1 = vld [vmem:[%s609_s17] sm:$0xff]   ;;  %v540_v2 = vld [vmem:[%s609_s17 + $0x8] sm:$0xff]   ;;  %v541_v3 = vld [vmem:[%s609_s17 + $0x10] sm:$0xff]   ;;  %s641_s25 = scalar_lea.vmem %s795_s3, %s558_s20 }
  0x10   : > { %v470_v4 = vunpack.c.l.bf16 %v469_v1  ;;  %v471_v5 = vunpack.c.h.bf16 %v469_v1  ;;  %v474_v6 = vunpack.c.l.bf16 %v540_v2  ;;  %v475_v7 = vunpack.c.h.bf16 %v540_v2  ;;  %v542_v8 = vld [vmem:[%s609_s17 + $0x18] sm:$0xff]   ;;  %v543_v30 = vld [vmem:[%s609_s17 + $0x20] sm:$0xff]   ;;  %v544_v31 = vld [vmem:[%s609_s17 + $0x28] sm:$0xff]  }
  0x11   : > { %v478_v10 = vunpack.c.l.bf16 %v541_v3  ;;  %v479_v11 = vunpack.c.h.bf16 %v541_v3  ;;  %v482_v12 = vunpack.c.l.bf16 %v542_v8  ;;  %v483_v13 = vunpack.c.h.bf16 %v542_v8  ;;  %v545_v36 = vld [vmem:[%s609_s17 + $0x30] sm:$0xff]   ;;  %v546_v37 = vld [vmem:[%s609_s17 + $0x38] sm:$0xff]   ;;  %v547_v3 = vld [vmem:[%s609_s17 + $0x40] sm:$0xff]  }
  0x12   : > { %v250_v14 = vmul.f32 %v470_v4, %v614_v0  ;;  %v251_v15 = vmul.f32 %v471_v5, %v614_v0  ;;  %v252_v16 = vmul.f32 %v474_v6, %v614_v0  ;;  %v253_v17 = vmul.f32 %v475_v7, %v614_v0  ;;  %v548_v4 = vld [vmem:[%s609_s17 + $0x48] sm:$0xff]  }
  0x13   : > { %v254_v18 = vmul.f32 %v478_v10, %v614_v0  ;;  %v255_v19 = vmul.f32 %v479_v11, %v614_v0  ;;  %v256_v20 = vmul.f32 %v482_v12, %v614_v0  ;;  %v257_v21 = vmul.f32 %v483_v13, %v614_v0  ;;  %v549_v10 = vld [vmem:[%s609_s17 + $0x50] sm:$0xff]   ;;  %v550_v11 = vld [vmem:[%s609_s17 + $0x58] sm:$0xff]  }
  0x14   : > { %v293_v22 = vadd.f32 %v624_v9, %v250_v14  ;;  %v294_v23 = vadd.f32 %v624_v9, %v251_v15  ;;  %v295_v24 = vadd.f32 %v624_v9, %v252_v16  ;;  %v296_v25 = vadd.f32 %v624_v9, %v253_v17 }
  0x15   : > { %v297_v26 = vadd.f32 %v624_v9, %v254_v18  ;;  %v298_v27 = vadd.f32 %v624_v9, %v255_v19  ;;  %v299_v28 = vadd.f32 %v624_v9, %v256_v20  ;;  %v300_v29 = vadd.f32 %v624_v9, %v257_v21 }
  0x16   : > { %v329_v32 = vmax.f32 %v293_v22, 0.0  ;;  %v330_v33 = vmax.f32 %v294_v23, 0.0  ;;  %v331_v34 = vmax.f32 %v295_v24, 0.0  ;;  %v332_v35 = vmax.f32 %v296_v25, 0.0 }
  0x17   : > { %v333_v38 = vmax.f32 %v297_v26, 0.0  ;;  %v334_v39 = vmax.f32 %v298_v27, 0.0  ;;  %v335_v40 = vmax.f32 %v299_v28, 0.0  ;;  %v336_v41 = vmax.f32 %v300_v29, 0.0 }
  0x18   : > { %366 = vst.msk [vmem:[%s641_s25] sm:$0xff] %vm365_vm0, %v329_v32  ;;  %367 = vst.msk [vmem:[%s641_s25 + $0x8] sm:$0xff] %vm365_vm0, %v330_v33  ;;  %v486_v42 = vunpack.c.l.bf16 %v543_v30  ;;  %v487_v43 = vunpack.c.h.bf16 %v543_v30  ;;  %v490_v44 = vunpack.c.l.bf16 %v544_v31  ;;  %v491_v45 = vunpack.c.h.bf16 %v544_v31 }
  0x19   : > { %368 = vst.msk [vmem:[%s641_s25 + $0x10] sm:$0xff] %vm365_vm0, %v331_v34  ;;  %369 = vst.msk [vmem:[%s641_s25 + $0x18] sm:$0xff] %vm365_vm0, %v332_v35  ;;  %v494_v46 = vunpack.c.l.bf16 %v545_v36  ;;  %v495_v47 = vunpack.c.h.bf16 %v545_v36  ;;  %v498_v48 = vunpack.c.l.bf16 %v546_v37  ;;  %v499_v49 = vunpack.c.h.bf16 %v546_v37 }
  0x1a   : > { %370 = vst.msk [vmem:[%s641_s25 + $0x20] sm:$0xff] %vm365_vm0, %v333_v38  ;;  %371 = vst.msk [vmem:[%s641_s25 + $0x28] sm:$0xff] %vm365_vm0, %v334_v39  ;;  %v258_v50 = vmul.f32 %v486_v42, %v614_v0  ;;  %v259_v51 = vmul.f32 %v487_v43, %v614_v0  ;;  %v260_v52 = vmul.f32 %v490_v44, %v614_v0  ;;  %v502_v16 = vunpack.c.l.bf16 %v547_v3 }
  0x1b   : > { %372 = vst.msk [vmem:[%s641_s25 + $0x30] sm:$0xff] %vm365_vm0, %v335_v40  ;;  %373 = vst.msk [vmem:[%s641_s25 + $0x38] sm:$0xff] %vm365_vm0, %v336_v41  ;;  %v261_v53 = vmul.f32 %v491_v45, %v614_v0  ;;  %v262_v54 = vmul.f32 %v494_v46, %v614_v0  ;;  %v263_v55 = vmul.f32 %v495_v47, %v614_v0  ;;  %v503_v17 = vunpack.c.h.bf16 %v547_v3  ;;  %v551_v40 = vld [vmem:[%s609_s17 + $0x60] sm:$0xff]   ;;  %v552_v41 = vld [vmem:[%s609_s17 + $0x68] sm:$0xff]  }
  0x1c   : > { %v264_v56 = vmul.f32 %v498_v48, %v614_v0  ;;  %v265_v57 = vmul.f32 %v499_v49, %v614_v0  ;;  %v301_v58 = vadd.f32 %v624_v9, %v258_v50  ;;  %v302_v59 = vadd.f32 %v624_v9, %v259_v51  ;;  %v553_v46 = vld [vmem:[%s609_s17 + $0x70] sm:$0xff]   ;;  %v554_v47 = vld [vmem:[%s609_s17 + $0x78] sm:$0xff]  }
  0x1d   : > { %v303_v60 = vadd.f32 %v624_v9, %v260_v52  ;;  %v304_v61 = vadd.f32 %v624_v9, %v261_v53  ;;  %v305_v62 = vadd.f32 %v624_v9, %v262_v54  ;;  %v306_v63 = vadd.f32 %v624_v9, %v263_v55 }
  0x1e   : > { %v307_v1 = vadd.f32 %v624_v9, %v264_v56  ;;  %v308_v2 = vadd.f32 %v624_v9, %v265_v57  ;;  %v337_v5 = vmax.f32 %v301_v58, 0.0  ;;  %v338_v6 = vmax.f32 %v302_v59, 0.0 }
  0x1f   : > { %v339_v7 = vmax.f32 %v303_v60, 0.0  ;;  %v340_v8 = vmax.f32 %v304_v61, 0.0  ;;  %v341_v12 = vmax.f32 %v305_v62, 0.0  ;;  %v342_v13 = vmax.f32 %v306_v63, 0.0 }
  0x20   : > { %v343_v14 = vmax.f32 %v307_v1, 0.0  ;;  %v344_v15 = vmax.f32 %v308_v2, 0.0  ;;  %374 = vst.msk [vmem:[%s641_s25 + $0x40] sm:$0xff] %vm365_vm0, %v337_v5  ;;  %375 = vst.msk [vmem:[%s641_s25 + $0x48] sm:$0xff] %vm365_vm0, %v338_v6  ;;  %v506_v18 = vunpack.c.l.bf16 %v548_v4  ;;  %v507_v19 = vunpack.c.h.bf16 %v548_v4 }
  0x21   : > { %376 = vst.msk [vmem:[%s641_s25 + $0x50] sm:$0xff] %vm365_vm0, %v339_v7  ;;  %377 = vst.msk [vmem:[%s641_s25 + $0x58] sm:$0xff] %vm365_vm0, %v340_v8  ;;  %v510_v20 = vunpack.c.l.bf16 %v549_v10  ;;  %v511_v21 = vunpack.c.h.bf16 %v549_v10  ;;  %v514_v22 = vunpack.c.l.bf16 %v550_v11  ;;  %v515_v23 = vunpack.c.h.bf16 %v550_v11 }
  0x22   : > { %378 = vst.msk [vmem:[%s641_s25 + $0x60] sm:$0xff] %vm365_vm0, %v341_v12  ;;  %379 = vst.msk [vmem:[%s641_s25 + $0x68] sm:$0xff] %vm365_vm0, %v342_v13  ;;  %v266_v24 = vmul.f32 %v502_v16, %v614_v0  ;;  %v267_v25 = vmul.f32 %v503_v17, %v614_v0  ;;  %v268_v26 = vmul.f32 %v506_v18, %v614_v0  ;;  %v518_v52 = vunpack.c.l.bf16 %v551_v40 }
  0x23   : > { %380 = vst.msk [vmem:[%s641_s25 + $0x70] sm:$0xff] %vm365_vm0, %v343_v14  ;;  %381 = vst.msk [vmem:[%s641_s25 + $0x78] sm:$0xff] %vm365_vm0, %v344_v15  ;;  %v269_v27 = vmul.f32 %v507_v19, %v614_v0  ;;  %v270_v28 = vmul.f32 %v510_v20, %v614_v0  ;;  %v271_v29 = vmul.f32 %v511_v21, %v614_v0  ;;  %v519_v53 = vunpack.c.h.bf16 %v551_v40  ;;  %v555_v14 = vld [vmem:[%s609_s17 + $0x80] sm:$0xff]   ;;  %v556_v15 = vld [vmem:[%s609_s17 + $0x88] sm:$0xff]  }
  0x24   : > { %v272_v30 = vmul.f32 %v514_v22, %v614_v0  ;;  %v273_v31 = vmul.f32 %v515_v23, %v614_v0  ;;  %v309_v32 = vadd.f32 %v624_v9, %v266_v24  ;;  %v310_v33 = vadd.f32 %v624_v9, %v267_v25 }
  0x25   : > { %v311_v34 = vadd.f32 %v624_v9, %v268_v26  ;;  %v312_v35 = vadd.f32 %v624_v9, %v269_v27  ;;  %v313_v36 = vadd.f32 %v624_v9, %v270_v28  ;;  %v314_v37 = vadd.f32 %v624_v9, %v271_v29 }
  0x26   : > { %v315_v38 = vadd.f32 %v624_v9, %v272_v30  ;;  %v316_v39 = vadd.f32 %v624_v9, %v273_v31  ;;  %v345_v42 = vmax.f32 %v309_v32, 0.0  ;;  %v346_v43 = vmax.f32 %v310_v33, 0.0 }
  0x27   : > { %v347_v44 = vmax.f32 %v311_v34, 0.0  ;;  %v348_v45 = vmax.f32 %v312_v35, 0.0  ;;  %v349_v48 = vmax.f32 %v313_v36, 0.0  ;;  %v350_v49 = vmax.f32 %v314_v37, 0.0 }
  0x28   : > { %v351_v50 = vmax.f32 %v315_v38, 0.0  ;;  %v352_v51 = vmax.f32 %v316_v39, 0.0  ;;  %382 = vst.msk [vmem:[%s641_s25 + $0x80] sm:$0xff] %vm365_vm0, %v345_v42  ;;  %383 = vst.msk [vmem:[%s641_s25 + $0x88] sm:$0xff] %vm365_vm0, %v346_v43  ;;  %v522_v54 = vunpack.c.l.bf16 %v552_v41  ;;  %v523_v55 = vunpack.c.h.bf16 %v552_v41 }
  0x29   : > { %384 = vst.msk [vmem:[%s641_s25 + $0x90] sm:$0xff] %vm365_vm0, %v347_v44  ;;  %385 = vst.msk [vmem:[%s641_s25 + $0x98] sm:$0xff] %vm365_vm0, %v348_v45  ;;  %v526_v56 = vunpack.c.l.bf16 %v553_v46  ;;  %v527_v57 = vunpack.c.h.bf16 %v553_v46  ;;  %v530_v58 = vunpack.c.l.bf16 %v554_v47  ;;  %v531_v59 = vunpack.c.h.bf16 %v554_v47 }
  0x2a   : > { %386 = vst.msk [vmem:[%s641_s25 + $0xa0] sm:$0xff] %vm365_vm0, %v349_v48  ;;  %387 = vst.msk [vmem:[%s641_s25 + $0xa8] sm:$0xff] %vm365_vm0, %v350_v49  ;;  %v274_v60 = vmul.f32 %v518_v52, %v614_v0  ;;  %v275_v61 = vmul.f32 %v519_v53, %v614_v0  ;;  %v276_v62 = vmul.f32 %v522_v54, %v614_v0  ;;  %v534_v24 = vunpack.c.l.bf16 %v555_v14 }
  0x2b   : > { %388 = vst.msk [vmem:[%s641_s25 + $0xb0] sm:$0xff] %vm365_vm0, %v351_v50  ;;  %389 = vst.msk [vmem:[%s641_s25 + $0xb8] sm:$0xff] %vm365_vm0, %v352_v51  ;;  %v277_v63 = vmul.f32 %v523_v55, %v614_v0  ;;  %v278_v1 = vmul.f32 %v526_v56, %v614_v0  ;;  %v279_v2 = vmul.f32 %v527_v57, %v614_v0  ;;  %v535_v25 = vunpack.c.h.bf16 %v555_v14 }
  0x2c   : > { %v280_v3 = vmul.f32 %v530_v58, %v614_v0  ;;  %v281_v4 = vmul.f32 %v531_v59, %v614_v0  ;;  %v317_v5 = vadd.f32 %v624_v9, %v274_v60  ;;  %v318_v6 = vadd.f32 %v624_v9, %v275_v61 }
  0x2d   : > { %v319_v7 = vadd.f32 %v624_v9, %v276_v62  ;;  %v320_v8 = vadd.f32 %v624_v9, %v277_v63  ;;  %v321_v10 = vadd.f32 %v624_v9, %v278_v1  ;;  %v322_v11 = vadd.f32 %v624_v9, %v279_v2 }
  0x2e   : > { %v323_v12 = vadd.f32 %v624_v9, %v280_v3  ;;  %v324_v13 = vadd.f32 %v624_v9, %v281_v4  ;;  %v353_v16 = vmax.f32 %v317_v5, 0.0  ;;  %v354_v17 = vmax.f32 %v318_v6, 0.0 }
  0x2f   : > { %v355_v18 = vmax.f32 %v319_v7, 0.0  ;;  %v356_v19 = vmax.f32 %v320_v8, 0.0  ;;  %v357_v20 = vmax.f32 %v321_v10, 0.0  ;;  %v358_v21 = vmax.f32 %v322_v11, 0.0 }
  0x30   : > { %v359_v22 = vmax.f32 %v323_v12, 0.0  ;;  %v360_v23 = vmax.f32 %v324_v13, 0.0  ;;  %390 = vst.msk [vmem:[%s641_s25 + $0xc0] sm:$0xff] %vm365_vm0, %v353_v16  ;;  %391 = vst.msk [vmem:[%s641_s25 + $0xc8] sm:$0xff] %vm365_vm0, %v354_v17  ;;  %v538_v26 = vunpack.c.l.bf16 %v556_v15  ;;  %v539_v27 = vunpack.c.h.bf16 %v556_v15 }
  0x31   : > { %392 = vst.msk [vmem:[%s641_s25 + $0xd0] sm:$0xff] %vm365_vm0, %v355_v18  ;;  %393 = vst.msk [vmem:[%s641_s25 + $0xd8] sm:$0xff] %vm365_vm0, %v356_v19  ;;  %v282_v28 = vmul.f32 %v534_v24, %v614_v0  ;;  %v283_v29 = vmul.f32 %v535_v25, %v614_v0 }
  0x32   : > { %394 = vst.msk [vmem:[%s641_s25 + $0xe0] sm:$0xff] %vm365_vm0, %v357_v20  ;;  %395 = vst.msk [vmem:[%s641_s25 + $0xe8] sm:$0xff] %vm365_vm0, %v358_v21  ;;  %v284_v30 = vmul.f32 %v538_v26, %v614_v0  ;;  %v285_v31 = vmul.f32 %v539_v27, %v614_v0 }
  0x33   : > { %396 = vst.msk [vmem:[%s641_s25 + $0xf0] sm:$0xff] %vm365_vm0, %v359_v22  ;;  %397 = vst.msk [vmem:[%s641_s25 + $0xf8] sm:$0xff] %vm365_vm0, %v360_v23  ;;  %v325_v32 = vadd.f32 %v624_v9, %v282_v28  ;;  %v326_v33 = vadd.f32 %v624_v9, %v283_v29 }
  0x34   : > { %v327_v34 = vadd.f32 %v624_v9, %v284_v30  ;;  %v328_v35 = vadd.f32 %v624_v9, %v285_v31 }
  0x35   : > { %v361_v36 = vmax.f32 %v325_v32, 0.0  ;;  %v362_v37 = vmax.f32 %v326_v33, 0.0 }
  0x36   : > { %v363_v38 = vmax.f32 %v327_v34, 0.0  ;;  %v364_v39 = vmax.f32 %v328_v35, 0.0 }
  0x37   : > { %398 = vst.msk [vmem:[%s641_s25 + $0x100] sm:$0xff] %vm365_vm0, %v361_v36  ;;  %399 = vst.msk [vmem:[%s641_s25 + $0x108] sm:$0xff] %vm365_vm0, %v362_v37 }
  0x38   : > { %400 = vst.msk [vmem:[%s641_s25 + $0x110] sm:$0xff] %vm365_vm0, %v363_v38  ;;  %401 = vst.msk [vmem:[%s641_s25 + $0x118] sm:$0xff] %vm365_vm0, %v364_v39 }
  0x39 PF: > { %s13_s12 = sadd.s32 1, %s573_s12  }
  0x3a   : > { %p10_p4 = scmp.ge.s32.totalorder %s13_s12, 4  }
  0x3c   :  { %12 = sbr.rel (!%p10_p4) target bundleno = 1 (0x1), region = 62 }

// kernel: conv_block_forward.2
= control target key start
LH: loop header
LB: loop body
LE: loop exit
PB: predicated region body
PF: predicated region fallthrough
CT: control target
= control target key end

     0   :  { %s5574_s18 = smov 0   ;;  %s5576_s19 = smov 0   ;;  %s7103_s0 = inlined_call_operand.vmem [shape: bf16[2,328,4], index: 0, kind: input, shape index: {}]   ;;  %s7104_s1 = inlined_call_operand.vmem [shape: bf16[9,4,128], index: 1, kind: input, shape index: {}]   ;;  %s7105_s2 = inlined_call_operand.vmem [shape: f32[288,1], index: 2, kind: input, shape index: {}]   ;;  %s7106_s3 = inlined_call_operand.vmem [shape: bf16[2,288,128], index: 3, kind: output, shape index: {0}]   ;;  %s7107_s4 = inlined_call_operand.vmem [shape: f32[2,8,128], index: 4, kind: output, shape index: {1}]   ;;  %s7108_s5 = inlined_call_operand.vmem [shape: f32[2,8,128], index: 5, kind: output, shape index: {2}]  }
   0x1   :  { %s5578_s20 = smov 0  }
   0x2 LB: > { %s25_s21 = sadd.s32 1, %s5537_s19  ;;  %p4485_p0 = scmp.ge.s32.totalorder %s5541_s20, 1  ;;  %s5541_s20 = sphi %s5578_s20, %s16_s20   ;;  %s5537_s19 = sphi %s5576_s19, %s7158_s19   ;;  %s5533_s18 = sphi %s5574_s18, %s7157_s18  }
   0x3   : > { %p26_p1 = scmp.ge.s32.totalorder %s25_s21, 2  ;;  %p219_p2 = scmp.lt.s32.totalorder %s5541_s20, 3 }
   0x5   : > { %s7160_s21 = smov (%p26_p1, %s25_s21), 0  ;;  %p220_p3 = pnand %p4485_p0, %p219_p2 }
   0x7   : > { %223 = sbr.rel (%p220_p3) target bundleno = 574 (0x23e), region = 32 }
   0xc   : > { %v4490_v0 = vld [vmem:[%s7104_s1 + $0x2] sm:$0x3]  ;;  %vm637_vm0 = vcmask 1041408   ;;  %p268_p4 = scmp.lt.s32.totalorder %s5533_s18, 1  ;;  %v4546_v2 = vld [vmem:[%s7104_s1 + $0x4] sm:$0x3] }
   0xd   : > { %5418 = vmatprep.subr.msk.bf16.mxu0 %vm637_vm0, %v4490_v0  ;;  %5419 = vmatprep.subr.msk.bf16.mxu1 %vm637_vm0, %v4490_v0  ;;  %v639_v1 = vsel %vm637_vm0, %v4490_v0, 0  ;;  %v336_v3 = vld [vmem:[%s7104_s1] sm:$0x3]  ;;  %vm433_vm1 = vsmask.f32 7424  ;;  %vm582_vm2 = vcmask 31744  }
   0xe   : > { %5075 = vmatpush3.bf16.msra.mxu0 %v639_v1  ;;  %5417 = vmatpush3.bf16.msra.mxu1 %v639_v1  ;;  %s7162_s18 = smov (!%p268_p4, %s5533_s18), 1  ;;  %v1133_v8 = vsel %vm637_vm0, %v4546_v2, 0  ;;  %v855_v16 = vsel %vm637_vm0, %v336_v3, 0  ;;  %v5657_v33 = vld [vmem:[%s7104_s1 + $0x8] sm:$0x3]  ;;  %vm1040_vm3 = vcmask 1046528  }
   0xf   : > { %5421 = vmatprep.subr.msk.bf16.mxu0 %vm637_vm0, %v4546_v2  ;;  %5420 = vmatprep.subr.msk.bf16.mxu1 %vm637_vm0, %v336_v3  ;;  %s5428_s28 = smul.u32 164, %s7162_s18  ;;  %v5677_v45 = vld [vmem:[%s7104_s1 + $0x6] sm:$0x3]  ;;  %vm2240_vm4 = vcmask 1045504   ;;  %vm1793_vm5 = vsmask.f32 6400 }
  0x10   : > { %vm3440_vm6 = vcmask 1044480   ;;  %vm2993_vm7 = vsmask.f32 5376  ;;  %s4488_s14 = sshll.u32 %s7162_s18, 3 }
  0x11   : > { %s5612_s6 = scalar_lea.vmem %s7103_s0, %s5428_s28  ;;  %s291_s17 = scalar_lea.vmem %s7107_s4, %s4488_s14 }
  0x12   : > { %v300_v4 = vld [vmem:[%s5612_s6] sm:$0xf]  ;;  %v5616_v5 = vld [vmem:[%s5612_s6 + $0x4] sm:$0xf]  ;;  %v5622_v7 = vld [vmem:[%s5612_s6 + $0x8] sm:$0xff]   ;;  %s298_s24 = scalar_lea.vmem %s7108_s5, %s4488_s14 }
  0x13   : > { %v5619_v6 = vcombine.low %v300_v4, %v5616_v5  ;;  %v442_v11 = vshll.u32 %v5622_v7, 16  ;;  %v446_v12 = vshrl.u32 %v5622_v7, 16  ;;  %v5630_v13 = vld [vmem:[%s5612_s6 + $0x50] sm:$0xff]   ;;  %v5633_v14 = vld [vmem:[%s5612_s6 + $0x58] sm:$0xff]   ;;  %v5645_v24 = vld [vmem:[%s5612_s6 + $0x60] sm:$0xff]  }
  0x14   : > { %v5636_v15 = vld [vmem:[%s5612_s6 + $0x10] sm:$0xff]   ;;  %v514_v19 = vshll.u32 %v5630_v13, 16  ;;  %v518_v20 = vshrl.u32 %v5630_v13, 16  ;;  %v522_v21 = vshll.u32 %v5633_v14, 16  ;;  %v526_v22 = vshrl.u32 %v5633_v14, 16  ;;  %v5650_v28 = vld [vmem:[%s5612_s6 + $0x18] sm:$0xff]  }
  0x15   : > { %v435_v9 = vshrl.u32 %v5619_v6, 16  ;;  %v437_v10 = vshll.u32 %v5619_v6, 16  ;;  %v444_v18 = vrot.slane %v442_v11, 1  ;;  %v450_v23 = vshll.u32 %v5636_v15, 16  ;;  %v5663_v37 = vld [vmem:[%s5612_s6 + $0x68] sm:$0xff]   ;;  %v5667_v39 = vld [vmem:[%s5612_s6 + $0x20] sm:$0xff]  }
  0x16   : > { %v5647_v27 = vrot.slane %v514_v19, 1  ;;  %v524_v29 = vrot.slane %v522_v21, 1  ;;  %v530_v31 = vshll.u32 %v5645_v24, 16  ;;  %v454_v32 = vshrl.u32 %v5636_v15, 16  ;;  %v5672_v44 = vld [vmem:[%s5612_s6 + $0x70] sm:$0xff]   ;;  %v5684_v50 = vld [vmem:[%s5612_s6 + $0x28] sm:$0xff]  }
  0x17   : > { %v439_v17 = vrot.slane %v437_v10, 1  ;;  %v448_v26 = vor.u32 %v446_v12, %v444_v18  ;;  %v452_v30 = vrot.slane %v450_v23, 1  ;;  %v458_v36 = vshll.u32 %v5650_v28, 16  ;;  %v5699_v62 = vld [vmem:[%s5612_s6 + $0x78] sm:$0xff]   ;;  %v5709_v10 = vld [vmem:[%s5612_s6 + $0x30] sm:$0xff]   ;;  %v5712_v11 = vld [vmem:[%s5612_s6 + $0x80] sm:$0xff]  }
  0x18   : > { %v520_v35 = vor.u32 %v518_v20, %v5647_v27  ;;  %v534_v38 = vshrl.u32 %v5645_v24, 16  ;;  %v528_v40 = vor.u32 %v526_v22, %v524_v29  ;;  %v532_v42 = vrot.slane %v530_v31, 1  ;;  %v5721_v23 = vld [vmem:[%s5612_s6 + $0x38] sm:$0xff]  }
  0x19   : > { %v440_v25 = vor.u32 %v439_v17, %v435_v9  ;;  %v453_v41 = vsel %vm433_vm1, %v448_v26, %v452_v30  ;;  %v456_v43 = vor.u32 %v454_v32, %v452_v30  ;;  %v460_v47 = vrot.slane %v458_v36, 1  ;;  %v5726_v26 = vld [vmem:[%s5612_s6 + $0x88] sm:$0xff]  }
  0x1a   : > { %v525_v46 = vsel %vm433_vm1, %v520_v35, %v524_v29  ;;  %v538_v48 = vshll.u32 %v5663_v37, 16  ;;  %v462_v49 = vshrl.u32 %v5650_v28, 16  ;;  %v533_v51 = vsel %vm433_vm1, %v528_v40, %v532_v42  ;;  %v5738_v40 = vld [vmem:[%s5612_s6 + $0x48] sm:$0xff]  }
  0x1b   : > { %v445_v34 = vsel %vm433_vm1, %v440_v25, %v444_v18  ;;  %5096 = vmatprep.mubr.msk.bf16.mxu1 %vm582_vm2, %v525_v46  ;;  %v536_v52 = vor.u32 %v534_v38, %v532_v42  ;;  %v466_v53 = vshll.u32 %v5667_v39, 16  ;;  %v542_v54 = vshrl.u32 %v5663_v37, 16  ;;  %v5735_v38 = vld [vmem:[%s5612_s6 + $0x40] sm:$0xff]  }
  0x1c   : > { %5076 = vmatprep.mubr.msk.bf16.mxu0 %vm582_vm2, %v445_v34  ;;  %5097 = vmatmul.mubr.msk.bf16.vlgmr.msra.gmra.mxu1 %vm582_vm2, %v533_v51  ;;  %v461_v55 = vsel %vm433_vm1, %v456_v43, %v460_v47  ;;  %v540_v56 = vrot.slane %v538_v48, 1  ;;  %v464_v57 = vor.u32 %v462_v49, %v460_v47  ;;  %v546_v58 = vshll.u32 %v5672_v44, 16  ;;  %v5474_v43 = vld [vmem:[%s5612_s6 + $0x90] ss:$0 sps:$4 sm:$0x11]  }
  0x1d   : > { %5077 = vmatmul.mubr.msk.bf16.vlgmr.msra.gmra.mxu0 %vm582_vm2, %v453_v41  ;;  %5113 = vmatpush3.bf16.msra.mxu1 %v855_v16  ;;  %v468_v59 = vrot.slane %v466_v53, 1  ;;  %v470_v60 = vshrl.u32 %v5667_v39, 16  ;;  %v474_v61 = vshll.u32 %v5684_v50, 16  ;;  %v550_v2 = vshrl.u32 %v5672_v44, 16 }
  0x1e   : > { %5151 = vmatpush3.bf16.msra.mxu0 %v1133_v8  ;;  %5080 = vmatprep.mubr.msk.bf16.mxu0 %vm582_vm2, %v461_v55  ;;  %v541_v63 = vsel %vm433_vm1, %v536_v52, %v540_v56  ;;  %v544_v0 = vor.u32 %v542_v54, %v540_v56  ;;  %v548_v1 = vrot.slane %v546_v58, 1  ;;  %v554_v9 = vshll.u32 %v5699_v62, 16 }
  0x1f   : > { %5423 = vmatprep.subr.msk.bf16.mxu0 %vm637_vm0, %v5657_v33  ;;  %5422 = vmatprep.subr.msk.bf16.mxu1 %vm637_vm0, %v5677_v45  ;;  %v469_v3 = vsel %vm433_vm1, %v464_v57, %v468_v59  ;;  %v472_v4 = vor.u32 %v470_v60, %v468_v59  ;;  %v476_v8 = vrot.slane %v474_v61, 1  ;;  %v478_v17 = vshrl.u32 %v5684_v50, 16 }
  0x20   : > { %5100 = vmatprep.mubr.msk.bf16.mxu1 %vm582_vm2, %v541_v63  ;;  %v549_v12 = vsel %vm433_vm1, %v544_v0, %v548_v1  ;;  %v552_v16 = vor.u32 %v550_v2, %v548_v1  ;;  %v558_v18 = vshrl.u32 %v5699_v62, 16  ;;  %v556_v20 = vrot.slane %v554_v9, 1  ;;  %v1034_v63 = vld [vmem:[%s5612_s6] sm:$0xe] }
  0x21   : > { %v477_v19 = vsel %vm433_vm1, %v472_v4, %v476_v8  ;;  %v482_v21 = vshll.u32 %v5709_v10, 16  ;;  %v562_v22 = vshll.u32 %v5712_v11, 16  ;;  %v486_v25 = vshrl.u32 %v5709_v10, 16 }
  0x22   : > { %v557_v29 = vsel %vm433_vm1, %v552_v16, %v556_v20  ;;  %v480_v30 = vor.u32 %v478_v17, %v476_v8  ;;  %v490_v34 = vshll.u32 %v5721_v23, 16  ;;  %v566_v35 = vshrl.u32 %v5712_v11, 16 }
  0x23   : > { %v484_v31 = vrot.slane %v482_v21, 1  ;;  %v564_v32 = vrot.slane %v562_v22, 1  ;;  %v570_v36 = vshll.u32 %v5726_v26, 16  ;;  %v560_v41 = vor.u32 %v558_v18, %v556_v20 }
  0x24   : > { %5101 = vmatmul.mubr.msk.bf16.gmra.mxu1 %vm582_vm2, %v549_v12  ;;  %v492_v46 = vrot.slane %v490_v34, 1  ;;  %v498_v49 = vshll.u32 %v5735_v38, 16  ;;  %v494_v52 = vshrl.u32 %v5721_v23, 16  ;;  %v502_v54 = vshrl.u32 %v5735_v38, 16 }
  0x25   : > { %5081 = vmatmul.mubr.msk.bf16.gmra.mxu0 %vm582_vm2, %v469_v3  ;;  %5104 = vmatprep.mubr.msk.bf16.mxu1 %vm582_vm2, %v557_v29  ;;  %v488_v42 = vor.u32 %v486_v25, %v484_v31  ;;  %v568_v47 = vor.u32 %v566_v35, %v564_v32  ;;  %v572_v48 = vrot.slane %v570_v36, 1  ;;  %v485_v51 = vsel %vm433_vm1, %v480_v30, %v484_v31 }
  0x26   : > { %5084 = vmatprep.mubr.msk.bf16.mxu0 %vm582_vm2, %v477_v19  ;;  %v506_v55 = vshll.u32 %v5738_v40, 16  ;;  %v565_v56 = vsel %vm433_vm1, %v560_v41, %v564_v32  ;;  %v574_v57 = vshrl.u32 %v5726_v26, 16  ;;  %v578_v58 = vshll.u32 %v5474_v43, 16 }
  0x27   : > { %v493_v53 = vsel %vm433_vm1, %v488_v42, %v492_v46  ;;  %v573_v59 = vsel %vm433_vm1, %v568_v47, %v572_v48  ;;  %v500_v60 = vrot.slane %v498_v49, 1  ;;  %v496_v61 = vor.u32 %v494_v52, %v492_v46  ;;  %v5837_v46 = vld [vmem:[%s5612_s6 + $0x10] sm:$0xff]   ;;  %v5842_v49 = vld [vmem:[%s5612_s6 + $0x18] sm:$0xff]  }
  0x28   : > { %v508_v1 = vrot.slane %v506_v55, 1  ;;  %v576_v2 = vor.u32 %v574_v57, %v572_v48  ;;  %v580_v3 = vrot.slane %v578_v58, 1  ;;  %v510_v8 = vshrl.u32 %v5738_v40, 16  ;;  %v5855_v55 = vld [vmem:[%s5612_s6 + $0x30] sm:$0xff]  }
  0x29   : > { %v504_v0 = vor.u32 %v502_v54, %v500_v60  ;;  %v501_v4 = vsel %vm433_vm1, %v496_v61, %v500_v60  ;;  %v4547_v12 = vcombine.low %v1034_v63, %v5616_v5  ;;  %v1074_v17 = vrot.slane %v5726_v26, 1  ;;  %v5870_v61 = vld [vmem:[%s5612_s6 + $0x38] sm:$0xff]  }
  0x2a   : > { %v581_v16 = vsel %vm433_vm1, %v576_v2, %v580_v3  ;;  %v512_v18 = vor.u32 %v510_v8, %v508_v1  ;;  %v1076_v19 = vrot.slane %v5474_v43, 1  ;;  %v1042_v21 = vrot.slane %v5622_v7, 1  ;;  %v2234_v43 = vld [vmem:[%s5612_s6 + $0x8] sm:$0xc]  ;;  %v5880_v2 = vld [vmem:[%s5612_s6 + $0x40] sm:$0xff]  }
  0x2b   : > { %v509_v9 = vsel %vm433_vm1, %v504_v0, %v508_v1  ;;  %v1041_v20 = vrot.slane %v4547_v12, 1  ;;  %v1572_v29 = vsel %vm637_vm0, %v5677_v45, 0  ;;  %v1044_v30 = vrot.slane %v5636_v15, 1  ;;  %v5888_v8 = vld [vmem:[%s5612_s6 + $0x48] sm:$0xff]  }
  0x2c   : > { %5105 = vmatmul.mubr.msk.bf16.gmra.mxu1 %vm582_vm2, %v565_v56  ;;  %v5771_v5 = vsel %vm1040_vm3, %v1074_v17, %v1076_v19  ;;  %v517_v22 = vsel %vm433_vm1, %v512_v18, %v5647_v27  ;;  %v1046_v27 = vrot.slane %v5650_v28, 1  ;;  %v2019_v31 = vsel %vm637_vm0, %v5657_v33, 0 }
  0x2d   : > { %5085 = vmatmul.mubr.msk.bf16.gmra.mxu0 %vm582_vm2, %v485_v51  ;;  %5108 = vmatprep.mubr.msk.bf16.mxu1 %vm582_vm2, %v573_v59  ;;  %v1043_v25 = vsel %vm1040_vm3, %v1041_v20, %v1042_v21  ;;  %v1045_v45 = vsel %vm1040_vm3, %v1042_v21, %v1044_v30  ;;  %v1050_v34 = vrot.slane %v5684_v50, 1  ;;  %v1054_v36 = vrot.slane %v5721_v23, 1  ;;  %v5846_v51 = vld [vmem:[%s5612_s6 + $0x20] sm:$0xff]  }
  0x2e   : > { %5088 = vmatprep.mubr.msk.bf16.mxu0 %vm582_vm2, %v493_v53  ;;  %v1047_v32 = vsel %vm1040_vm3, %v1044_v30, %v1046_v27  ;;  %v1056_v42 = vrot.slane %v5735_v38, 1  ;;  %v2242_v53 = vrot.slane %v5837_v46, 2  ;;  %v2244_v54 = vrot.slane %v5842_v49, 2  ;;  %v5918_v30 = vld [vmem:[%s5612_s6 + $0x58] sm:$0xff]  }
  0x2f   : > { %v2246_v57 = vrot.slane %v5846_v51, 2  ;;  %v1060_v58 = vrot.slane %v5630_v13, 1  ;;  %v1062_v59 = vrot.slane %v5633_v14, 1  ;;  %v2250_v1 = vrot.slane %v5855_v55, 2 }
  0x30   : > { %v1057_v48 = vsel %vm1040_vm3, %v1054_v36, %v1056_v42  ;;  %v5865_v60 = vsel %vm2240_vm4, %v2242_v53, %v2244_v54  ;;  %v2256_v18 = vrot.slane %v5888_v8, 2  ;;  %v1064_v20 = vrot.slane %v5645_v24, 1 }
  0x31   : > { %v5873_v63 = vsel %vm2240_vm4, %v2244_v54, %v2246_v57 }
  0x34   : > { %5109 = vmatmul.mubr.msk.bf16.gmra.mxu1 %vm582_vm2, %v581_v16  ;;  %v2254_v16 = vrot.slane %v5880_v2, 2 }
  0x35   : > { %5089 = vmatmul.mubr.msk.bf16.gmra.mxu0 %vm582_vm2, %v501_v4  ;;  %5114 = vmatprep.mubr.msk.bf16.mxu1 %vm582_vm2, %v5619_v6  ;;  %v5784_v6 = vld [vmem:[%s7104_s1 + $0xa] sm:$0x3]  ;;  %v2252_v4 = vrot.slane %v5870_v61, 2 }
  0x36   : > { %5092 = vmatprep.mubr.msk.bf16.mxu0 %vm582_vm2, %v509_v9  ;;  %v5906_v21 = vsel %vm2240_vm4, %v2254_v16, %v2256_v18 }
  0x37   : > { %v5895_v12 = vsel %vm2240_vm4, %v2250_v1, %v2252_v4  ;;  %v5901_v19 = vsel %vm2240_vm4, %v2252_v4, %v2254_v16 }
  0x3c   : > { %5115 = vmatmul.mubr.msk.bf16.vlgmr.msra.gmra.mxu1 %vm582_vm2, %v5622_v7  ;;  %v5800_v7 = vld [vmem:[%s7104_s1 + $0xc] sm:$0x3] }
  0x3d   : > { %5093 = vmatmul.mubr.msk.bf16.gmra.mxu0 %vm582_vm2, %v517_v22  ;;  %5189 = vmatpush3.bf16.msra.mxu1 %v1572_v29  ;;  %v1066_v22 = vrot.slane %v5663_v37, 1  ;;  %v1065_v29 = vsel %vm1040_vm3, %v1062_v59, %v1064_v20 }
  0x3e   : > { %5152 = vmatprep.mubr.msk.bf16.mxu0 %vm582_vm2, %v1043_v25  ;;  %5118 = vmatprep.mubr.msk.bf16.mxu1 %vm582_vm2, %v5636_v15  ;;  %v1048_v15 = vrot.slane %v5667_v39, 1  ;;  %v5914_v25 = vld [vmem:[%s5612_s6 + $0x50] sm:$0xff]  }
  0x3f   : > { %5424 = vmatprep.subr.msk.bf16.mxu1 %vm637_vm0, %v5784_v6 }
  0x40   : > { %v1049_v33 = vsel %vm1040_vm3, %v1046_v27, %v1048_v15  ;;  %v1051_v35 = vsel %vm1040_vm3, %v1048_v15, %v1050_v34  ;;  %v1067_v27 = vsel %vm1040_vm3, %v1064_v20, %v1066_v22  ;;  %v1070_v15 = vrot.slane %v5699_v62, 1 }
  0x44   : > { %5119 = vmatmul.mubr.msk.bf16.gmra.mxu1 %vm582_vm2, %v5650_v28  ;;  %v1052_v28 = vrot.slane %v5709_v10, 1 }
  0x45   : > { %5153 = vmatmul.mubr.msk.bf16.vlgmr.msra.gmra.mxu0 %vm582_vm2, %v1045_v45  ;;  %5122 = vmatprep.mubr.msk.bf16.mxu1 %vm582_vm2, %v5667_v39  ;;  %v2258_v45 = vrot.slane %v5914_v25, 2 }
  0x46   : > { %5227 = vmatpush3.bf16.msra.mxu0 %v2019_v31  ;;  %5156 = vmatprep.mubr.msk.bf16.mxu0 %vm582_vm2, %v1047_v32  ;;  %v1053_v39 = vsel %vm1040_vm3, %v1050_v34, %v1052_v28  ;;  %v1055_v41 = vsel %vm1040_vm3, %v1052_v28, %v1054_v36  ;;  %v1348_v34 = vld [vmem:[%s5612_s6 + $0x8] sm:$0xe] }
  0x47   : > { %5425 = vmatprep.subr.msk.bf16.mxu0 %vm637_vm0, %v5800_v7  ;;  %v5925_v31 = vsel %vm2240_vm4, %v2256_v18, %v2258_v45  ;;  %v5943_v28 = vld [vmem:[%s5612_s6 + $0x68] sm:$0xff]  }
  0x4c   : > { %5123 = vmatmul.mubr.msk.bf16.gmra.mxu1 %vm582_vm2, %v5684_v50  ;;  %v1058_v50 = vrot.slane %v5738_v40, 1 }
  0x4d   : > { %5157 = vmatmul.mubr.msk.bf16.gmra.mxu0 %vm582_vm2, %v1049_v33  ;;  %5126 = vmatprep.mubr.msk.bf16.mxu1 %vm582_vm2, %v5709_v10  ;;  %v5834_v10 = vld [vmem:[%s5612_s6 + $0xc] sm:$0xf]  ;;  %v5939_v33 = vld [vmem:[%s5612_s6 + $0x60] sm:$0xff]  }
  0x4e   : > { %5160 = vmatprep.mubr.msk.bf16.mxu0 %vm582_vm2, %v1051_v35  ;;  %v4625_v47 = vcombine.low %v2234_v43, %v5834_v10 }
  0x50   : > { %v2241_v52 = vrot.slane %v4625_v47, 2  ;;  %v1803_v47 = vshrl.u32 %v5837_v46, 16 }
  0x52   : > { %v5858_v56 = vsel %vm2240_vm4, %v2241_v52, %v2242_v53  ;;  %v1481_v52 = vrot.slane %v5837_v46, 1  ;;  %v5966_v53 = vld [vmem:[%s5612_s6 + $0x70] sm:$0xff]  }
  0x53   : > { %v2266_v4 = vrot.slane %v5966_v53, 2 }
  0x54   : > { %5127 = vmatmul.mubr.msk.bf16.gmra.mxu1 %vm582_vm2, %v5721_v23  ;;  %v1059_v23 = vsel %vm1040_vm3, %v1056_v42, %v1058_v50  ;;  %v1072_v42 = vrot.slane %v5712_v11, 1 }
  0x55   : > { %5161 = vmatmul.mubr.msk.bf16.gmra.mxu0 %vm582_vm2, %v1053_v39  ;;  %5130 = vmatprep.mubr.msk.bf16.mxu1 %vm582_vm2, %v5735_v38  ;;  %v5850_v38 = vld [vmem:[%s5612_s6 + $0x28] sm:$0xff]   ;;  %v2262_v39 = vrot.slane %v5939_v33, 2 }
  0x56   : > { %5164 = vmatprep.mubr.msk.bf16.mxu0 %vm582_vm2, %v1055_v41  ;;  %v2248_v0 = vrot.slane %v5850_v38, 2  ;;  %v4567_v41 = vcombine.low %v1348_v34, %v5834_v10  ;;  %v1073_v54 = vsel %vm1040_vm3, %v1070_v15, %v1072_v42  ;;  %v5999_v34 = vld [vmem:[%s5612_s6 + $0x88] sm:$0xff]  }
  0x58   : > { %v5883_v3 = vsel %vm2240_vm4, %v2246_v57, %v2248_v0  ;;  %v5891_v9 = vsel %vm2240_vm4, %v2248_v0, %v2250_v1  ;;  %v1795_v43 = vshrl.u32 %v4567_v41, 16  ;;  %v1798_v10 = vshll.u32 %v4567_v41, 16 }
  0x59   : > { %v1075_v57 = vsel %vm1040_vm3, %v1072_v42, %v1074_v17  ;;  %v1805_v0 = vrot.slane %v1803_v47, 1  ;;  %v1812_v17 = vshrl.u32 %v5842_v49, 16  ;;  %v1833_v47 = vshll.u32 %v5850_v38, 16 }
  0x5c   : > { %5131 = vmatmul.mubr.msk.bf16.gmra.mxu1 %vm582_vm2, %v5738_v40  ;;  %v1061_v40 = vsel %vm1040_vm3, %v1058_v50, %v1060_v58 }
  0x5d   : > { %5165 = vmatmul.mubr.msk.bf16.gmra.mxu0 %vm582_vm2, %v1057_v48  ;;  %5134 = vmatprep.mubr.msk.bf16.mxu1 %vm582_vm2, %v5630_v13  ;;  %v1063_v13 = vsel %vm1040_vm3, %v1060_v58, %v1062_v59  ;;  %v1806_v48 = vshll.u32 %v5837_v46, 16  ;;  %v5973_v58 = vld [vmem:[%s5612_s6 + $0x78] sm:$0xff]   ;;  %v1800_v59 = vrot.slane %v1798_v10, 2  ;;  %v1830_v10 = vshrl.u32 %v5850_v38, 16 }
  0x5e   : > { %5168 = vmatprep.mubr.msk.bf16.mxu0 %vm582_vm2, %v1059_v23  ;;  %v1480_v23 = vrot.slane %v4567_v41, 1 }
  0x5f   : > { %v1808_v1 = vrot.slane %v1806_v48, 2 }
  0x60   : > { %v1482_v46 = vsel %vm1040_vm3, %v1480_v23, %v1481_v52  ;;  %v1839_v23 = vshrl.u32 %v5855_v55, 16 }
  0x61   : > { %v1809_v20 = vor.u32 %v1808_v1, %v1805_v0  ;;  %v2772_v0 = vsel %vm637_vm0, %v5800_v7, 0  ;;  %v1832_v1 = vrot.slane %v1830_v10, 1 }
  0x64   : > { %5135 = vmatmul.mubr.msk.bf16.gmra.mxu1 %vm582_vm2, %v5633_v14  ;;  %v2260_v14 = vrot.slane %v5918_v30, 2 }
  0x65   : > { %5169 = vmatmul.mubr.msk.bf16.gmra.mxu0 %vm582_vm2, %v1061_v40  ;;  %5138 = vmatprep.mubr.msk.bf16.mxu1 %vm582_vm2, %v5645_v24  ;;  %v1068_v24 = vrot.slane %v5672_v44, 1 }
  0x66   : > { %5172 = vmatprep.mubr.msk.bf16.mxu0 %vm582_vm2, %v1063_v13  ;;  %v5930_v32 = vsel %vm2240_vm4, %v2258_v45, %v2260_v14  ;;  %v1815_v13 = vshll.u32 %v5842_v49, 16  ;;  %v1485_v45 = vrot.slane %v5846_v51, 1 }
  0x67   : > { %v1069_v35 = vsel %vm1040_vm3, %v1066_v22, %v1068_v24  ;;  %v1071_v36 = vsel %vm1040_vm3, %v1068_v24, %v1070_v15  ;;  %v1821_v22 = vshrl.u32 %v5846_v51, 16  ;;  %v1814_v24 = vrot.slane %v1812_v17, 1 }
  0x68   : > { %v1817_v15 = vrot.slane %v1815_v13, 2  ;;  %v1841_v17 = vrot.slane %v1839_v23, 1 }
  0x6c   : > { %5139 = vmatmul.mubr.msk.bf16.gmra.mxu1 %vm582_vm2, %v5663_v37  ;;  %v2264_v37 = vrot.slane %v5943_v28, 2 }
  0x6d   : > { %5173 = vmatmul.mubr.msk.bf16.gmra.mxu0 %vm582_vm2, %v1065_v29  ;;  %5142 = vmatprep.mubr.msk.bf16.mxu1 %vm582_vm2, %v5672_v44  ;;  %v5951_v44 = vsel %vm2240_vm4, %v2260_v14, %v2262_v39  ;;  %v1824_v29 = vshll.u32 %v5846_v51, 16  ;;  %v5996_v14 = vld [vmem:[%s5612_s6 + $0x80] sm:$0xff]  }
  0x6e   : > { %5176 = vmatprep.mubr.msk.bf16.mxu0 %vm582_vm2, %v1067_v27  ;;  %v5956_v50 = vsel %vm2240_vm4, %v2262_v39, %v2264_v37  ;;  %v5980_v40 = vsel %vm2240_vm4, %v2264_v37, %v2266_v4  ;;  %v1483_v27 = vrot.slane %v5842_v49, 1  ;;  %v2270_v39 = vrot.slane %v5996_v14, 2 }
  0x6f   : > { %v2272_v37 = vrot.slane %v5999_v34, 2  ;;  %v2333_v49 = vsel %vm637_vm0, %v5784_v6, 0 }
  0x70   : > { %v1484_v41 = vsel %vm1040_vm3, %v1481_v52, %v1483_v27  ;;  %v1486_v51 = vsel %vm1040_vm3, %v1483_v27, %v1485_v45  ;;  %v1842_v52 = vshll.u32 %v5855_v55, 16  ;;  %v1848_v27 = vshrl.u32 %v5870_v61, 16 }
  0x71   : > { %v6022_v6 = vsel %vm2240_vm4, %v2270_v39, %v2272_v37 }
  0x74   : > { %5143 = vmatmul.mubr.msk.bf16.gmra.mxu1 %vm582_vm2, %v5699_v62  ;;  %v1797_v62 = vrot.slane %v1795_v43, 1  ;;  %v1818_v43 = vor.u32 %v1817_v15, %v1814_v24 }
  0x75   : > { %5177 = vmatmul.mubr.msk.bf16.gmra.mxu0 %vm582_vm2, %v1069_v35  ;;  %5146 = vmatprep.mubr.msk.bf16.mxu1 %vm582_vm2, %v5712_v11  ;;  %v2268_v11 = vrot.slane %v5973_v58, 2  ;;  %v1823_v35 = vrot.slane %v1821_v22, 1 }
  0x76   : > { %5180 = vmatprep.mubr.msk.bf16.mxu0 %vm582_vm2, %v1071_v36  ;;  %v1801_v18 = vor.u32 %v1800_v59, %v1797_v62  ;;  %v1826_v36 = vrot.slane %v1824_v29, 2  ;;  %v6031_v62 = vld [vmem:[%s5612_s6 + $0x90] sm:$0xff]   ;;  %v1819_v59 = vsel %vm1793_vm5, %v1809_v20, %v1818_v43 }
  0x77   : > { %v5986_v16 = vsel %vm2240_vm4, %v2266_v4, %v2268_v11  ;;  %v6011_v42 = vsel %vm2240_vm4, %v2268_v11, %v2270_v39  ;;  %v1835_v4 = vrot.slane %v1833_v47, 2  ;;  %v6039_v11 = vld [vmem:[%s5612_s6 + $0x98] ss:$0 sps:$4 sm:$0x33]   ;;  %v1493_v39 = vrot.slane %v5880_v2, 1 }
  0x78   : > { %v1827_v48 = vor.u32 %v1826_v36, %v1823_v35  ;;  %v1860_v35 = vshll.u32 %v5880_v2, 16  ;;  %v1491_v36 = vrot.slane %v5870_v61, 1 }
  0x79   : > { %v1836_v29 = vor.u32 %v1835_v4, %v1832_v1  ;;  %v6084_v1 = vld [vmem:[%s5612_s6 + $0x14] sm:$0xf]  ;;  %v3434_v4 = vld [vmem:[%s5612_s6 + $0x10] sm:$0x8] }
  0x7a   : > { %v1862_v10 = vrot.slane %v1860_v35, 2  ;;  %v1494_v23 = vsel %vm1040_vm3, %v1491_v36, %v1493_v39 }
  0x7c   : > { %5147 = vmatmul.mubr.msk.bf16.gmra.mxu1 %vm582_vm2, %v5726_v26  ;;  %v1810_v26 = vsel %vm1793_vm5, %v1801_v18, %v1809_v20  ;;  %v6047_v18 = vld [vmem:[%s7104_s1 + $0x10] sm:$0x3]  ;;  %v2276_v20 = vrot.slane %v6039_v11, 2 }
  0x7d   : > { %5181 = vmatmul.mubr.msk.bf16.gmra.mxu0 %vm582_vm2, %v1073_v54  ;;  %5190 = vmatprep.mubr.msk.bf16.mxu1 %vm582_vm2, %v1482_v46  ;;  %v1487_v54 = vrot.slane %v5850_v38, 1  ;;  %v1828_v46 = vsel %vm1793_vm5, %v1818_v43, %v1827_v48  ;;  %v1844_v38 = vrot.slane %v1842_v52, 2 }
  0x7e   : > { %5184 = vmatprep.mubr.msk.bf16.mxu0 %vm582_vm2, %v1075_v57  ;;  %v1489_v57 = vrot.slane %v5855_v55, 1  ;;  %v2274_v55 = vrot.slane %v6031_v62, 2 }
  0x7f   : > { %v1488_v13 = vsel %vm1040_vm3, %v1485_v45, %v1487_v54  ;;  %v1851_v45 = vshll.u32 %v5870_v61, 16  ;;  %v1845_v15 = vor.u32 %v1844_v38, %v1841_v17 }
  0x80   : > { %v1490_v7 = vsel %vm1040_vm3, %v1487_v54, %v1489_v57  ;;  %v6053_v22 = vsel %vm2240_vm4, %v2272_v37, %v2274_v55  ;;  %v6059_v24 = vsel %vm2240_vm4, %v2274_v55, %v2276_v20  ;;  %v1850_v37 = vrot.slane %v1848_v27, 1  ;;  %v6089_v55 = vld [vmem:[%s5612_s6 + $0x18] sm:$0xff]   ;;  %v6094_v27 = vld [vmem:[%s5612_s6 + $0x20] sm:$0xff]  }
  0x81   : > { %v1492_v47 = vsel %vm1040_vm3, %v1489_v57, %v1491_v36  ;;  %v1875_v54 = vshrl.u32 %v5914_v25, 16  ;;  %v1878_v57 = vshll.u32 %v5914_v25, 16  ;;  %v1884_v36 = vshrl.u32 %v5918_v30, 16 }
  0x84   : > { %5191 = vmatmul.mubr.msk.bf16.vlgmr.msra.gmra.mxu1 %vm582_vm2, %v1484_v41  ;;  %v1837_v41 = vsel %vm1793_vm5, %v1827_v48, %v1836_v29  ;;  %v1869_v48 = vshll.u32 %v5888_v8, 16 }
  0x85   : > { %5185 = vmatmul.mubr.msk.bf16.gmra.mxu0 %vm582_vm2, %v5771_v5  ;;  %v6019_v5 = vld [vmem:[%s7104_s1 + $0xe] sm:$0x3]  ;;  %5265 = vmatpush3.bf16.msra.mxu1 %v2333_v49  ;;  %v1853_v49 = vrot.slane %v1851_v45, 2  ;;  %v3442_v45 = vrot.slane %v6089_v55, 3 }
  0x86   : > { %5228 = vmatprep.mubr.msk.bf16.mxu0 %vm582_vm2, %v1810_v26  ;;  %5194 = vmatprep.mubr.msk.bf16.mxu1 %vm582_vm2, %v1486_v51  ;;  %v1857_v26 = vshrl.u32 %v5880_v2, 16  ;;  %v1846_v51 = vsel %vm1793_vm5, %v1836_v29, %v1845_v15  ;;  %v1866_v2 = vshrl.u32 %v5888_v8, 16  ;;  %v1871_v38 = vrot.slane %v1869_v48, 2 }
  0x87   : > { %5426 = vmatprep.subr.msk.bf16.mxu1 %vm637_vm0, %v6019_v5  ;;  %v1854_v61 = vor.u32 %v1853_v49, %v1850_v37  ;;  %v1880_v29 = vrot.slane %v1878_v57, 2  ;;  %v1893_v49 = vshrl.u32 %v5939_v33, 16 }
  0x88   : > { %v1859_v43 = vrot.slane %v1857_v26, 1  ;;  %v1868_v17 = vrot.slane %v1866_v2, 1  ;;  %v7109_v26 = vrot.slane %v6094_v27, 3 }
  0x8a   : > { %v1863_v52 = vor.u32 %v1862_v10, %v1859_v43  ;;  %v1872_v35 = vor.u32 %v1871_v38, %v1868_v17  ;;  %v6113_v43 = vsel %vm3440_vm6, %v3442_v45, %v7109_v26  ;;  %v1499_v10 = vrot.slane %v5918_v30, 1 }
  0x8b   : > { %v1905_v17 = vshll.u32 %v5943_v28, 16 }
  0x8c   : > { %5195 = vmatmul.mubr.msk.bf16.gmra.mxu1 %vm582_vm2, %v1488_v13  ;;  %v4703_v13 = vcombine.low %v3434_v4, %v6084_v1  ;;  %v1864_v20 = vsel %vm1793_vm5, %v1854_v61, %v1863_v52 }
  0x8d   : > { %5229 = vmatmul.mubr.msk.bf16.vlgmr.msra.gmra.mxu0 %vm582_vm2, %v1819_v59  ;;  %5198 = vmatprep.mubr.msk.bf16.mxu1 %vm582_vm2, %v1490_v7  ;;  %v1495_v59 = vrot.slane %v5888_v8, 1  ;;  %v1877_v7 = vrot.slane %v1875_v54, 1  ;;  %v1895_v54 = vrot.slane %v1893_v49, 1  ;;  %v3931_v49 = vld [vmem:[%s7105_s2 + $0x18] sm:$0xff] }
  0x8e   : > { %5303 = vmatpush3.bf16.msra.mxu0 %v2772_v0  ;;  %5232 = vmatprep.mubr.msk.bf16.mxu0 %vm582_vm2, %v1828_v46  ;;  %v1497_v0 = vrot.slane %v5914_v25, 1  ;;  %v1855_v46 = vsel %vm1793_vm5, %v1845_v15, %v1854_v61  ;;  %v3441_v25 = vrot.slane %v4703_v13, 3  ;;  %v1886_v61 = vrot.slane %v1884_v36, 1 }
  0x8f   : > { %5427 = vmatprep.subr.msk.bf16.mxu0 %vm637_vm0, %v6047_v18  ;;  %v1496_v8 = vsel %vm1040_vm3, %v1493_v39, %v1495_v59  ;;  %v1881_v39 = vor.u32 %v1880_v29, %v1877_v7  ;;  %v1914_v13 = vshll.u32 %v5966_v53, 16  ;;  %v3930_v7 = vld [vmem:[%s7105_s2 + $0x10] sm:$0xff]  ;;  %v3929_v29 = vld [vmem:[%s7105_s2 + $0x8] sm:$0xff] }
  0x90   : > { %v1498_v15 = vsel %vm1040_vm3, %v1495_v59, %v1497_v0  ;;  %v6105_v37 = vsel %vm3440_vm6, %v3441_v25, %v3442_v45  ;;  %v5543_v59 = vmov 0   ;;  %v1500_v4 = vsel %vm1040_vm3, %v1497_v0, %v1499_v10 }
  0x91   : > { %v1882_v48 = vsel %vm1793_vm5, %v1872_v35, %v1881_v39  ;;  %5455 = vset.pattern.permute.xlu0 %v5543_v59  ;;  %5456 = vset.pattern.permute.xlu1 %v5543_v59  ;;  %v1911_v0 = vshrl.u32 %v5966_v53, 16  ;;  %v1509_v59 = vrot.slane %v5996_v14, 1 }
  0x92   : > { %3976 = vperm.xlu1 %5456, %v3930_v7   ;;  %v1941_v7 = vshll.u32 %v5999_v34, 16 }
  0x93   : > { %v1913_v36 = vrot.slane %v1911_v0, 1  ;;  %v3935_v0 = vld [vmem:[%s7105_s2 + $0x38] sm:$0xff] }
  0x94   : > { %5199 = vmatmul.mubr.msk.bf16.gmra.mxu1 %vm582_vm2, %v1492_v47  ;;  %v1501_v47 = vrot.slane %v5939_v33, 1 }
  0x95   : > { %5233 = vmatmul.mubr.msk.bf16.gmra.mxu0 %vm582_vm2, %v1837_v41  ;;  %5202 = vmatprep.mubr.msk.bf16.mxu1 %vm582_vm2, %v1494_v23  ;;  %v1887_v41 = vshll.u32 %v5918_v30, 16  ;;  %v1873_v23 = vsel %vm1793_vm5, %v1863_v52, %v1872_v35  ;;  %v1902_v52 = vshrl.u32 %v5943_v28, 16 }
  0x96   : > { %5236 = vmatprep.mubr.msk.bf16.mxu0 %vm582_vm2, %v1846_v51  ;;  %v1896_v51 = vshll.u32 %v5939_v33, 16  ;;  %v1502_v30 = vsel %vm1040_vm3, %v1499_v10, %v1501_v47  ;;  %3981 = vperm.xlu1 %5456, %v3931_v49   ;;  %v1920_v10 = vshrl.u32 %v5973_v58, 16  ;;  %v1943_v49 = vrot.slane %v1941_v7, 2  ;;  %v3946_v7 = vld [vmem:[%s7105_s2 + $0x90] sm:$0xff] }
  0x97   : > { %v1889_v2 = vrot.slane %v1887_v41, 2  ;;  %v1904_v45 = vrot.slane %v1902_v52, 1 }
  0x98   : > { %v1898_v57 = vrot.slane %v1896_v51, 2 }
  0x99   : > { %v1890_v33 = vor.u32 %v1889_v2, %v1886_v61  ;;  %v1929_v61 = vshrl.u32 %v5996_v14, 16  ;;  %v1932_v2 = vshll.u32 %v5996_v14, 16  ;;  %v3936_v14 = vld [vmem:[%s7105_s2 + $0x40] sm:$0xff] }
  0x9a   : > { %v1899_v38 = vor.u32 %v1898_v57, %v1895_v54  ;;  %v3933_v54 = vld [vmem:[%s7105_s2 + $0x28] sm:$0xff]  ;;  %v3934_v57 = vld [vmem:[%s7105_s2 + $0x30] sm:$0xff] }
  0x9b   : > { %v1891_v25 = vsel %vm1793_vm5, %v1881_v39, %v1890_v33  ;;  %3991 = vperm.xlu1 %5456, %v3933_v54   ;;  %v1931_v52 = vrot.slane %v1929_v61, 1 }
  0x9c   : > { %5203 = vmatmul.mubr.msk.bf16.gmra.mxu1 %vm582_vm2, %v1496_v8  ;;  %v1505_v8 = vrot.slane %v5966_v53, 1  ;;  %v1900_v35 = vsel %vm1793_vm5, %v1890_v33, %v1899_v38  ;;  %v3932_v53 = vld [vmem:[%s7105_s2 + $0x20] sm:$0xff] }
  0x9d   : > { %5237 = vmatmul.mubr.msk.bf16.gmra.mxu0 %vm582_vm2, %v1855_v46  ;;  %5206 = vmatprep.mubr.msk.bf16.mxu1 %vm582_vm2, %v1498_v15  ;;  %v3928_v46 = vld [vmem:[%s7105_s2] sm:$0xff]  ;;  %v1907_v15 = vrot.slane %v1905_v17, 2 }
  0x9e   : > { %5240 = vmatprep.mubr.msk.bf16.mxu0 %vm582_vm2, %v1864_v20  ;;  %3966 = vperm.xlu0 %5455, %v3928_v46   ;;  %v1503_v20 = vrot.slane %v5943_v28, 1  ;;  %v1916_v28 = vrot.slane %v1914_v13, 2  ;;  %v1922_v46 = vrot.slane %v1920_v10, 1  ;;  %v5495_v10 = vld [vmem:[%s5612_s6 + $0x98] ss:$0 sps:$4 sm:$0x11]  }
  0x9f   : > { %v1908_v51 = vor.u32 %v1907_v15, %v1904_v45  ;;  %4001 = vperm.xlu1 %5456, %v3935_v0   ;;  %v1511_v45 = vrot.slane %v5999_v34, 1  ;;  %v3937_v15 = vld [vmem:[%s7105_s2 + $0x48] sm:$0xff]  ;;  %v3943_v0 = vld [vmem:[%s7105_s2 + $0x78] sm:$0xff] }
  0xa0   : > { %v1504_v41 = vsel %vm1040_vm3, %v1501_v47, %v1503_v20  ;;  %v1506_v39 = vsel %vm1040_vm3, %v1503_v20, %v1505_v8  ;;  %v1923_v47 = vshll.u32 %v5973_v58, 16  ;;  %v1938_v20 = vshrl.u32 %v5999_v34, 16 }
  0xa2   : > { %3971 = vperm.xlu0 %5455, %v3929_v29  }
  0xa3   : > { %4011 = vperm.xlu1 %5456, %v3937_v15   ;;  %v3219_v15 = vsel %vm637_vm0, %v6019_v5, 0  ;;  %v3949_v5 = vld [vmem:[%s7105_s2 + $0xa8] sm:$0xff] }
  0xa4   : > { %5207 = vmatmul.mubr.msk.bf16.gmra.mxu1 %vm582_vm2, %v1500_v4  ;;  %v1909_v4 = vsel %vm1793_vm5, %v1899_v38, %v1908_v51 }
  0xa5   : > { %5241 = vmatmul.mubr.msk.bf16.gmra.mxu0 %vm582_vm2, %v1873_v23  ;;  %5210 = vmatprep.mubr.msk.bf16.mxu1 %vm582_vm2, %v1502_v30  ;;  %v1917_v23 = vor.u32 %v1916_v28, %v1913_v36  ;;  %v1925_v30 = vrot.slane %v1923_v47, 2  ;;  %v1513_v36 = vrot.slane %v6031_v62, 1  ;;  %v3939_v47 = vld [vmem:[%s7105_s2 + $0x58] sm:$0xff] }
  0xa6   : > { %5244 = vmatprep.mubr.msk.bf16.mxu0 %vm582_vm2, %v1882_v48  ;;  %3986 = vperm.xlu0 %5455, %v3932_v53   ;;  %v1507_v48 = vrot.slane %v5973_v58, 1  ;;  %v1934_v58 = vrot.slane %v1932_v2, 2  ;;  %v1956_v2 = vshrl.u32 %v6039_v11, 16 }
  0xa7   : > { %v1918_v33 = vsel %vm1793_vm5, %v1908_v51, %v1917_v23  ;;  %v1926_v13 = vor.u32 %v1925_v30, %v1922_v46  ;;  %v1512_v51 = vsel %vm1040_vm3, %v1509_v59, %v1511_v45  ;;  %4021 = vperm.xlu1 %5456, %v3939_v47   ;;  %v3942_v46 = vld [vmem:[%s7105_s2 + $0x70] sm:$0xff] }
  0xa8   : > { %v1508_v17 = vsel %vm1040_vm3, %v1505_v8, %v1507_v48  ;;  %v1510_v38 = vsel %vm1040_vm3, %v1507_v48, %v1509_v59  ;;  %v1935_v29 = vor.u32 %v1934_v58, %v1931_v52  ;;  %v1947_v8 = vshrl.u32 %v6031_v62, 16  ;;  %v2548_v59 = vld [vmem:[%s5612_s6 + $0x10] sm:$0xc] }
  0xa9   : > { %v1927_v28 = vsel %vm1793_vm5, %v1917_v23, %v1926_v13  ;;  %v1514_v23 = vsel %vm1040_vm3, %v1511_v45, %v1513_v36  ;;  %v1959_v48 = vshll.u32 %v6039_v11, 16  ;;  %v1958_v11 = vrot.slane %v1956_v2, 1  ;;  %v3948_v45 = vld [vmem:[%s7105_s2 + $0xa0] sm:$0xff]  ;;  %v3954_v47 = vld [vmem:[%s7105_s2 + $0xd0] sm:$0xff] }
  0xaa   : > { %3996 = vperm.xlu0 %5455, %v3934_v57   ;;  %v1936_v53 = vsel %vm1793_vm5, %v1926_v13, %v1935_v29  ;;  %v1515_v57 = vrot.slane %v5495_v10, 1  ;;  %v6220_v58 = vcombine.low %v2548_v59, %v6084_v1  ;;  %v2681_v13 = vrot.slane %v6089_v55, 2  ;;  %v3953_v10 = vld [vmem:[%s7105_s2 + $0xc8] sm:$0xff]  ;;  %v3956_v2 = vld [vmem:[%s7105_s2 + $0xe0] sm:$0xff] }
  0xac   : > { %5211 = vmatmul.mubr.msk.bf16.gmra.mxu1 %vm582_vm2, %v1504_v41  ;;  %v1940_v41 = vrot.slane %v1938_v20, 1  ;;  %v2680_v1 = vrot.slane %v6220_v58, 2  ;;  %v3945_v20 = vld [vmem:[%s7105_s2 + $0x88] sm:$0xff] }
  0xad   : > { %5245 = vmatmul.mubr.msk.bf16.gmra.mxu0 %vm582_vm2, %v1891_v25  ;;  %5214 = vmatprep.mubr.msk.bf16.mxu1 %vm582_vm2, %v1506_v39  ;;  %v1950_v25 = vshll.u32 %v6031_v62, 16  ;;  %v1949_v39 = vrot.slane %v1947_v8, 1  ;;  %v3940_v62 = vld [vmem:[%s7105_s2 + $0x60] sm:$0xff] }
  0xae   : > { %5248 = vmatprep.mubr.msk.bf16.mxu0 %vm582_vm2, %v1900_v35  ;;  %4006 = vperm.xlu0 %5455, %v3936_v14   ;;  %v3938_v35 = vld [vmem:[%s7105_s2 + $0x50] sm:$0xff]  ;;  %v1944_v61 = vor.u32 %v1943_v49, %v1940_v41  ;;  %v3944_v14 = vld [vmem:[%s7105_s2 + $0x80] sm:$0xff]  ;;  %v2682_v8 = vsel %vm2240_vm4, %v2680_v1, %v2681_v13 }
  0xaf   : > { %v1952_v34 = vrot.slane %v1950_v25, 2  ;;  %v6245_v25 = vld [vmem:[%s5612_s6 + $0x28] sm:$0xff]   ;;  %v6271_v49 = vld [vmem:[%s5612_s6 + $0x30] sm:$0xff]   ;;  %v3960_v1 = vld [vmem:[%s7105_s2 + $0x100] sm:$0xff] }
  0xb0   : > { %v1945_v30 = vsel %vm1793_vm5, %v1935_v29, %v1944_v61 }
  0xb1   : > { %v1953_v54 = vor.u32 %v1952_v34, %v1949_v39  ;;  %v3951_v39 = vld [vmem:[%s7105_s2 + $0xb8] sm:$0xff]  ;;  %v3952_v34 = vld [vmem:[%s7105_s2 + $0xc0] sm:$0xff] }
  0xb2   : > { %4016 = vperm.xlu0 %5455, %v3938_v35   ;;  %v2683_v35 = vrot.slane %v6094_v27, 2 }
  0xb3   : > { %v1954_v52 = vsel %vm1793_vm5, %v1944_v61, %v1953_v54  ;;  %v6305_v61 = vld [vmem:[%s5612_s6 + $0x48] sm:$0xff]  }
  0xb4   : > { %5215 = vmatmul.mubr.msk.bf16.gmra.mxu1 %vm582_vm2, %v1508_v17  ;;  %v1516_v17 = vsel %vm1040_vm3, %v1513_v36, %v1515_v57  ;;  %v2685_v36 = vrot.slane %v6245_v25, 2  ;;  %v2684_v41 = vsel %vm2240_vm4, %v2681_v13, %v2683_v35 }
  0xb5   : > { %5249 = vmatmul.mubr.msk.bf16.gmra.mxu0 %vm582_vm2, %v1909_v4  ;;  %5218 = vmatprep.mubr.msk.bf16.mxu1 %vm582_vm2, %v1510_v38  ;;  %v3941_v4 = vld [vmem:[%s7105_s2 + $0x68] sm:$0xff] }
  0xb6   : > { %5252 = vmatprep.mubr.msk.bf16.mxu0 %vm582_vm2, %v1918_v33  ;;  %4026 = vperm.xlu0 %5455, %v3940_v62   ;;  %v1961_v33 = vrot.slane %v1959_v48, 2 }
  0xb7   : > { %4031 = vperm.xlu1 %5456, %v3941_v4   ;;  %v2693_v4 = vrot.slane %v6305_v61, 2 }
  0xb8   : > { %v1962_v38 = vor.u32 %v1961_v33, %v1958_v11 }
  0xba   : > { %4036 = vperm.xlu0 %5455, %v3942_v46   ;;  %v1963_v29 = vsel %vm1793_vm5, %v1953_v54, %v1962_v38  ;;  %v3957_v46 = vld [vmem:[%s7105_s2 + $0xe8] sm:$0xff]  ;;  %v3959_v38 = vld [vmem:[%s7105_s2 + $0xf8] sm:$0xff] }
  0xbb   : > { %4041 = vperm.xlu1 %5456, %v3943_v0  }
  0xbc   : > { %5219 = vmatmul.mubr.msk.bf16.gmra.mxu1 %vm582_vm2, %v1512_v51 }
  0xbd   : > { %5253 = vmatmul.mubr.msk.bf16.gmra.mxu0 %vm582_vm2, %v1927_v28  ;;  %5222 = vmatprep.mubr.msk.bf16.mxu1 %vm582_vm2, %v1514_v23  ;;  %v3950_v28 = vld [vmem:[%s7105_s2 + $0xb0] sm:$0xff]  ;;  %v6301_v23 = vld [vmem:[%s5612_s6 + $0x40] sm:$0xff]  }
  0xbe   : > { %5256 = vmatprep.mubr.msk.bf16.mxu0 %vm582_vm2, %v1936_v53  ;;  %4046 = vperm.xlu0 %5455, %v3944_v14   ;;  %v2686_v53 = vsel %vm2240_vm4, %v2683_v35, %v2685_v36  ;;  %v2691_v54 = vrot.slane %v6301_v23, 2  ;;  %v6347_v14 = vld [vmem:[%s5612_s6 + $0x58] sm:$0xff]  }
  0xbf   : > { %4051 = vperm.xlu1 %5456, %v3945_v20  }
  0xc0   : > { %v2694_v0 = vsel %vm2240_vm4, %v2691_v54, %v2693_v4 }
  0xc2   : > { %4056 = vperm.xlu0 %5455, %v3946_v7  }
  0xc4   : > { %5223 = vmatmul.mubr.msk.bf16.gmra.mxu1 %vm582_vm2, %v1516_v17 }
  0xc5   : > { %5257 = vmatmul.mubr.msk.bf16.gmra.mxu0 %vm582_vm2, %v1945_v30  ;;  %5266 = vmatprep.mubr.msk.bf16.mxu1 %vm582_vm2, %v5858_v56  ;;  %v3947_v56 = vld [vmem:[%s7105_s2 + $0x98] sm:$0xff]  ;;  %v3958_v30 = vld [vmem:[%s7105_s2 + $0xf0] sm:$0xff] }
  0xc6   : > { %5260 = vmatprep.mubr.msk.bf16.mxu0 %vm582_vm2, %v1954_v52  ;;  %4061 = vperm.xlu1 %5456, %v3947_v56   ;;  %v6339_v52 = vld [vmem:[%s5612_s6 + $0x50] sm:$0xff]   ;;  %v2697_v56 = vrot.slane %v6347_v14, 2 }
  0xc7   : > { %4066 = vperm.xlu0 %5455, %v3948_v45   ;;  %v2695_v7 = vrot.slane %v6339_v52, 2  ;;  %v3961_v45 = vld [vmem:[%s7105_s2 + $0x108] sm:$0xff] }
  0xca   : > { %4071 = vperm.xlu1 %5456, %v3949_v5   ;;  %v6383_v5 = vld [vmem:[%s5612_s6 + $0x60] sm:$0xff]  }
  0xcb   : > { %4076 = vperm.xlu0 %5455, %v3950_v28  }
  0xcc   : > { %5267 = vmatmul.mubr.msk.bf16.vlgmr.msra.gmra.mxu1 %vm582_vm2, %v5865_v60  ;;  %v3533_v60 = vsel %vm637_vm0, %v6047_v18, 0  ;;  %v2687_v18 = vrot.slane %v6271_v49, 2 }
  0xcd   : > { %5261 = vmatmul.mubr.msk.bf16.gmra.mxu0 %vm582_vm2, %v1963_v29  ;;  %5341 = vmatpush3.bf16.msra.mxu1 %v3219_v15  ;;  %v3962_v15 = vld [vmem:[%s7105_s2 + $0x110] sm:$0xff] }
  0xce   : > { %5304 = vmatprep.mubr.msk.bf16.mxu0 %vm582_vm2, %v2682_v8  ;;  %5270 = vmatprep.mubr.msk.bf16.mxu1 %vm582_vm2, %v5873_v63  ;;  %v6277_v63 = vld [vmem:[%s5612_s6 + $0x38] sm:$0xff]   ;;  %v2688_v62 = vsel %vm2240_vm4, %v2685_v36, %v2687_v18 }
  0xcf   : > { %4081 = vperm.xlu1 %5456, %v3951_v39   ;;  %v2689_v51 = vrot.slane %v6277_v63, 2  ;;  %4086 = vperm.xlu0 %5455, %v3952_v34  }
  0xd3   : > { %4091 = vperm.xlu1 %5456, %v3953_v10   ;;  %4096 = vperm.xlu0 %5455, %v3954_v47  }
  0xd4   : > { %5271 = vmatmul.mubr.msk.bf16.gmra.mxu1 %vm582_vm2, %v5883_v3  ;;  %v2690_v3 = vsel %vm2240_vm4, %v2687_v18, %v2689_v51  ;;  %v2699_v18 = vrot.slane %v6383_v5, 2 }
  0xd5   : > { %5305 = vmatmul.mubr.msk.bf16.vlgmr.msra.gmra.mxu0 %vm582_vm2, %v2684_v41  ;;  %5274 = vmatprep.mubr.msk.bf16.mxu1 %vm582_vm2, %v5891_v9  ;;  %v3955_v9 = vld [vmem:[%s7105_s2 + $0xd8] sm:$0xff]  ;;  %v2698_v41 = vsel %vm2240_vm4, %v2695_v7, %v2697_v56 }
  0xd6   : > { %5379 = vmatpush3.bf16.msra.mxu0 %v3533_v60  ;;  %5308 = vmatprep.mubr.msk.bf16.mxu0 %vm582_vm2, %v2686_v53  ;;  %v6391_v60 = vld [vmem:[%s5612_s6 + $0x68] sm:$0xff]   ;;  %v3963_v53 = vld [vmem:[%s7105_s2 + $0x118] sm:$0xff] }
  0xd7   : > { %4101 = vperm.xlu1 %5456, %v3955_v9   ;;  %4106 = vperm.xlu0 %5455, %v3956_v2   ;;  %v2701_v47 = vrot.slane %v6391_v60, 2  ;;  %v2700_v9 = vsel %vm2240_vm4, %v2697_v56, %v2699_v18  ;;  %v6418_v2 = vld [vmem:[%s5612_s6 + $0x70] sm:$0xff]  }
  0xdb   : > { %4111 = vperm.xlu1 %5456, %v3957_v46   ;;  %4116 = vperm.xlu0 %5455, %v3958_v30   ;;  %v6426_v46 = vld [vmem:[%s5612_s6 + $0x78] sm:$0xff]  }
  0xdc   : > { %v6318_v57 = vpop.f32.mrf.mxu1  ;;  %5275 = vmatmul.mubr.msk.bf16.gmra.mxu1 %vm582_vm2, %v5895_v12  ;;  %v2692_v12 = vsel %vm2240_vm4, %v2689_v51, %v2691_v54 }
  0xdd   : > { %v6313_v48 = vpop.f32.mrf.mxu0  ;;  %5309 = vmatmul.mubr.msk.bf16.gmra.mxu0 %vm582_vm2, %v2688_v62  ;;  %5278 = vmatprep.mubr.msk.bf16.mxu1 %vm582_vm2, %v5901_v19 }
  0xde   : > { %5312 = vmatprep.mubr.msk.bf16.mxu0 %vm582_vm2, %v2690_v3  ;;  %v6333_v11 = vpop.f32.mrf.mxu1 }
  0xdf   : > { %v6322_v59 = vpop.f32.mrf.mxu0  ;;  %4121 = vperm.xlu1 %5456, %v3959_v38   ;;  %4126 = vperm.xlu0 %5455, %v3960_v1   ;;  %v2705_v1 = vrot.slane %v6426_v46, 2 }
  0xe0   : > { %v6341_v17 = vpop.f32.mrf.mxu1 }
  0xe1   : > { %v6335_v33 = vpop.f32.mrf.mxu0 }
  0xe2   : > { %v6355_v13 = vpop.f32.mrf.mxu1 }
  0xe3   : > { %v6343_v19 = vpop.f32.mrf.mxu0  ;;  %4131 = vperm.xlu1 %5456, %v3961_v45   ;;  %4136 = vperm.xlu0 %5455, %v3962_v15   ;;  %v6450_v15 = vld [vmem:[%s5612_s6 + $0x80] sm:$0xff]  }
  0xe4   : > { %v6362_v29 = vpop.f32.mrf.mxu1  ;;  %5279 = vmatmul.mubr.msk.bf16.gmra.mxu1 %vm582_vm2, %v5906_v21  ;;  %v2696_v21 = vsel %vm2240_vm4, %v2693_v4, %v2695_v7  ;;  %7124 = vst [vmem:[#allocation10_spill] sm:$0xff] %v6450_v15 }
  0xe5   : > { %v6357_v20 = vpop.f32.mrf.mxu0  ;;  %5313 = vmatmul.mubr.msk.bf16.gmra.mxu0 %vm582_vm2, %v2692_v12  ;;  %5282 = vmatprep.mubr.msk.bf16.mxu1 %vm582_vm2, %v5925_v31  ;;  %v2703_v12 = vrot.slane %v6418_v2, 2 }
  0xe6   : > { %5316 = vmatprep.mubr.msk.bf16.mxu0 %vm582_vm2, %v2694_v0  ;;  %v6377_v35 = vpop.f32.mrf.mxu1 }
  0xe7   : > { %v6366_v8 = vpop.f32.mrf.mxu0  ;;  %4141 = vperm.xlu1 %5456, %v3963_v53   ;;  %v2704_v45 = vsel %vm2240_vm4, %v2701_v47, %v2703_v12  ;;  %v6458_v53 = vld [vmem:[%s5612_s6 + $0x88] sm:$0xff]  }
  0xe8   : > { %v6385_v28 = vpop.f32.mrf.mxu1  ;;  %7126 = vst [vmem:[#allocation12_spill] sm:$0xff] %v6458_v53 }
  0xe9   : > { %v6379_v36 = vpop.f32.mrf.mxu0  ;;  %7116 = vst [vmem:[#allocation2_spill] sm:$0xff] %v6385_v28 }
  0xea   : > { %v6396_v39 = vpop.f32.mrf.mxu1 }
  0xeb   : > { %v6387_v31 = vpop.f32.mrf.mxu0  ;;  %7117 = vst [vmem:[#allocation3_spill] sm:$0xff] %v6396_v39 }
  0xec   : > { %v6403_v51 = vpop.f32.mrf.mxu1  ;;  %5283 = vmatmul.mubr.msk.bf16.gmra.mxu1 %vm582_vm2, %v5930_v32  ;;  %v2702_v32 = vsel %vm2240_vm4, %v2699_v18, %v2701_v47 }
  0xed   : > { %v6398_v34 = vpop.f32.mrf.mxu0  ;;  %5317 = vmatmul.mubr.msk.bf16.gmra.mxu0 %vm582_vm2, %v2696_v21  ;;  %7118 = vst [vmem:[#allocation4_spill] sm:$0xff] %v6403_v51  ;;  %5286 = vmatprep.mubr.msk.bf16.mxu1 %vm582_vm2, %v5951_v44 }
  0xee   : > { %5320 = vmatprep.mubr.msk.bf16.mxu0 %vm582_vm2, %v2698_v41  ;;  %v6412_v62 = vpop.f32.mrf.mxu1 }
  0xef   : > { %v6407_v10 = vpop.f32.mrf.mxu0  ;;  %7119 = vst [vmem:[#allocation5_spill] sm:$0xff] %v6412_v62  ;;  %v6490_v62 = vld [vmem:[%s5612_s6 + $0x98] sm:$0xff]  }
  0xf0   : > { %v6420_v54 = vpop.f32.mrf.mxu1  ;;  %7128 = vst [vmem:[#allocation14_spill] sm:$0xff] %v6490_v62 }
  0xf1   : > { %v6414_v3 = vpop.f32.mrf.mxu0  ;;  %7120 = vst [vmem:[#allocation6_spill] sm:$0xff] %v6420_v54  ;;  %v6484_v54 = vld [vmem:[%s5612_s6 + $0x90] sm:$0xff]  }
  0xf2   : > { %v6428_v30 = vpop.f32.mrf.mxu1 }
  0xf3   : > { %v6422_v4 = vpop.f32.mrf.mxu0  ;;  %7121 = vst [vmem:[#allocation7_spill] sm:$0xff] %v6428_v30 }
  0xf4   : > { %v6435_v0 = vpop.f32.mrf.mxu1  ;;  %5287 = vmatmul.mubr.msk.bf16.gmra.mxu1 %vm582_vm2, %v5956_v50  ;;  %v2706_v50 = vsel %vm2240_vm4, %v2703_v12, %v2705_v1  ;;  %v2709_v12 = vrot.slane %v6458_v53, 2 }
  0xf5   : > { %v6430_v44 = vpop.f32.mrf.mxu0  ;;  %5321 = vmatmul.mubr.msk.bf16.gmra.mxu0 %vm582_vm2, %v2700_v9  ;;  %7122 = vst [vmem:[#allocation8_spill] sm:$0xff] %v6435_v0  ;;  %5290 = vmatprep.mubr.msk.bf16.mxu1 %vm582_vm2, %v5980_v40  ;;  %v2707_v40 = vrot.slane %v6450_v15, 2 }
  0xf6   : > { %5324 = vmatprep.mubr.msk.bf16.mxu0 %vm582_vm2, %v2702_v32  ;;  %v6444_v7 = vpop.f32.mrf.mxu1 }
  0xf7   : > { %v6439_v38 = vpop.f32.mrf.mxu0  ;;  %7123 = vst [vmem:[#allocation9_spill] sm:$0xff] %v6444_v7  ;;  %v3003_v7 = vshrl.u32 %v6089_v55, 16  ;;  %v2708_v30 = vsel %vm2240_vm4, %v2705_v1, %v2707_v40 }
  0xf8   : > { %v6452_v21 = vpop.f32.mrf.mxu1 }
  0xf9   : > { %v6446_v56 = vpop.f32.mrf.mxu0  ;;  %7125 = vst [vmem:[#allocation11_spill] sm:$0xff] %v6452_v21  ;;  %v2998_v21 = vshll.u32 %v6220_v58, 16 }
  0xfa   : > { %v6460_v18 = vpop.f32.mrf.mxu1 }
  0xfb   : > { %v6454_v41 = vpop.f32.mrf.mxu0  ;;  %7127 = vst [vmem:[#allocation13_spill] sm:$0xff] %v6460_v18  ;;  %v3000_v53 = vrot.slane %v2998_v21, 3 }
  0xfc   : > { %v5116_v47 = vpop.f32.mrf.mxu1  ;;  %5291 = vmatmul.mubr.msk.bf16.gmra.mxu1 %vm582_vm2, %v5986_v16  ;;  %v3006_v16 = vshll.u32 %v6089_v55, 16 }
  0xfd   : > { %v6462_v9 = vpop.f32.mrf.mxu0  ;;  %5325 = vmatmul.mubr.msk.bf16.gmra.mxu0 %vm582_vm2, %v2704_v45  ;;  %v900_v26 = vadd.f32 %v5116_v47, %v6313_v48  ;;  %5294 = vmatprep.mubr.msk.bf16.mxu1 %vm582_vm2, %v6011_v42  ;;  %v2710_v42 = vsel %vm2240_vm4, %v2707_v40, %v2709_v12  ;;  %v2711_v40 = vrot.slane %v6484_v54, 2 }
  0xfe   : > { %5328 = vmatprep.mubr.msk.bf16.mxu0 %vm582_vm2, %v2706_v50  ;;  %v891_v45 = vpop.f32.mrf.mxu1  ;;  %v2995_v50 = vshrl.u32 %v6220_v58, 16 }
  0xff   : > { %v6469_v32 = vpop.f32.mrf.mxu0  ;;  %v892_v0 = vadd.f32 %v891_v45, %v6322_v59  ;;  %v3005_v59 = vrot.slane %v3003_v7, 2  ;;  %v3008_v45 = vrot.slane %v3006_v16, 3 }
 0x100   : > { %v5117_v48 = vpop.f32.mrf.mxu1  ;;  %v2997_v55 = vrot.slane %v2995_v50, 2 }
 0x101   : > { %v6475_v18 = vpop.f32.mrf.mxu0  ;;  %v903_v51 = vadd.f32 %v5117_v48, %v6335_v33  ;;  %v2713_v48 = vrot.slane %v6490_v62, 2  ;;  %v3009_v16 = vor.u32 %v3008_v45, %v3005_v59 }
 0x102   : > { %v894_v58 = vpop.f32.mrf.mxu1  ;;  %v3001_v50 = vor.u32 %v3000_v53, %v2997_v55 }
 0x103   : > { %v6486_v47 = vpop.f32.mrf.mxu0  ;;  %v895_v1 = vadd.f32 %v894_v58, %v6343_v19  ;;  %v3015_v19 = vshll.u32 %v6094_v27, 16 }
 0x104   : > { %v5120_v28 = vpop.f32.mrf.mxu1  ;;  %5295 = vmatmul.mubr.msk.bf16.gmra.mxu1 %vm582_vm2, %v6022_v6  ;;  %v3021_v6 = vshrl.u32 %v6245_v25, 16 }
 0x105   : > { %v5154_v39 = vpop.f32.mrf.mxu0  ;;  %5329 = vmatmul.mubr.msk.bf16.gmra.mxu0 %vm582_vm2, %v2708_v30  ;;  %v916_v30 = vadd.f32 %v5120_v28, %v6357_v20  ;;  %5298 = vmatprep.mubr.msk.bf16.mxu1 %vm582_vm2, %v6053_v22  ;;  %v2712_v28 = vsel %vm2240_vm4, %v2709_v12, %v2711_v40  ;;  %v5516_v22 = vld [vmem:[%s5612_s6 + $0xa0] ss:$0 sps:$4 sm:$0x33]   ;;  %v3017_v59 = vrot.slane %v3015_v19, 3  ;;  %v3033_v19 = vshll.u32 %v6271_v49, 16 }
 0x106   : > { %v6495_v15 = vadd.f32 %v5154_v39, %v900_v26  ;;  %5332 = vmatprep.mubr.msk.bf16.mxu0 %vm582_vm2, %v2710_v42  ;;  %v3012_v26 = vshrl.u32 %v6094_v27, 16  ;;  %v907_v39 = vpop.f32.mrf.mxu1  ;;  %v3024_v42 = vshll.u32 %v6245_v25, 16 }
 0x107   : > { %v1169_v33 = vpop.f32.mrf.mxu0  ;;  %v908_v58 = vadd.f32 %v907_v39, %v6366_v8  ;;  %v3010_v8 = vsel %vm2993_vm7, %v3001_v50, %v3009_v16 }
 0x108   : > { %7129 = vst [vmem:[#allocation15_spill] sm:$0xff] %v6495_v15  ;;  %v6503_v7 = vadd.f32 %v1169_v33, %v892_v0  ;;  %v5121_v0 = vpop.f32.mrf.mxu1  ;;  %v3014_v55 = vrot.slane %v3012_v26, 2  ;;  %v3026_v12 = vrot.slane %v3024_v42, 3  ;;  %v3030_v26 = vshrl.u32 %v6271_v49, 16 }
 0x109   : > { %v5155_v21 = vpop.f32.mrf.mxu0  ;;  %v919_v15 = vadd.f32 %v5121_v0, %v6379_v36  ;;  %v3039_v42 = vshrl.u32 %v6277_v63, 16 }
 0x10a   : > { %7130 = vst [vmem:[#allocation16_spill] sm:$0xff] %v6503_v7  ;;  %v6512_v20 = vadd.f32 %v5155_v21, %v903_v51  ;;  %v2714_v7 = vsel %vm2240_vm4, %v2711_v40, %v2713_v48  ;;  %v910_v45 = vpop.f32.mrf.mxu1  ;;  %v3023_v51 = vrot.slane %v3021_v6, 2  ;;  %v2715_v40 = vrot.slane %v5516_v22, 2 }
 0x10b   : > { %v1172_v33 = vpop.f32.mrf.mxu0  ;;  %v911_v39 = vadd.f32 %v910_v45, %v6387_v31  ;;  %v3018_v31 = vor.u32 %v3017_v59, %v3014_v55  ;;  %v3035_v45 = vrot.slane %v3033_v19, 3 }
 0x10c   : > { %v6518_v53 = vadd.f32 %v1172_v33, %v895_v1  ;;  %v5124_v36 = vpop.f32.mrf.mxu1  ;;  %5299 = vmatmul.mubr.msk.bf16.gmra.mxu1 %vm582_vm2, %v6059_v24  ;;  %v2716_v0 = vsel %vm2240_vm4, %v2713_v48, %v2715_v40 }
 0x10d   : > { %v5158_v62 = vpop.f32.mrf.mxu0  ;;  %5333 = vmatmul.mubr.msk.bf16.gmra.mxu0 %vm582_vm2, %v2712_v28  ;;  %v932_v50 = vadd.f32 %v5124_v36, %v6398_v34  ;;  %5342 = vmatprep.mubr.msk.bf16.mxu1 %vm582_vm2, %v3010_v8  ;;  %v3042_v28 = vshll.u32 %v6277_v63, 16  ;;  %v3019_v59 = vsel %vm2993_vm7, %v3009_v16, %v3018_v31 }
 0x10e   : > { %v6523_v21 = vadd.f32 %v5158_v62, %v916_v30  ;;  %5336 = vmatprep.mubr.msk.bf16.mxu0 %vm582_vm2, %v2714_v7  ;;  %v923_v62 = vpop.f32.mrf.mxu1  ;;  %v3027_v7 = vor.u32 %v3026_v12, %v3023_v51 }
 0x10f   : > { %v1185_v1 = vpop.f32.mrf.mxu0  ;;  %v924_v24 = vadd.f32 %v923_v62, %v6407_v10  ;;  %v3044_v36 = vrot.slane %v3042_v28, 3 }
 0x110   : > { %v6531_v6 = vadd.f32 %v1185_v1, %v908_v58  ;;  %v5125_v33 = vpop.f32.mrf.mxu1  ;;  %v3032_v58 = vrot.slane %v3030_v26, 2  ;;  %v3028_v10 = vsel %vm2993_vm7, %v3018_v31, %v3027_v7  ;;  %v3446_v1 = vrot.slane %v6245_v25, 3 }
 0x111   : > { %v5159_v30 = vpop.f32.mrf.mxu0  ;;  %v935_v8 = vadd.f32 %v5125_v33, %v6414_v3  ;;  %v7131_v33 = vrot.slane %v6094_v27, 3 }
 0x112   : > { %v6537_v22 = vadd.f32 %v5159_v30, %v919_v15  ;;  %v926_v51 = vpop.f32.mrf.mxu1  ;;  %v3041_v15 = vrot.slane %v3039_v42, 2  ;;  %v3036_v16 = vor.u32 %v3035_v45, %v3032_v58  ;;  %v3057_v30 = vshrl.u32 %v6305_v61, 16 }
 0x113   : > { %v1188_v34 = vpop.f32.mrf.mxu0  ;;  %v927_v48 = vadd.f32 %v926_v51, %v6422_v4  ;;  %v3048_v4 = vshrl.u32 %v6301_v23, 16  ;;  %v3060_v42 = vshll.u32 %v6305_v61, 16 }
 0x114   : > { %v6541_v55 = vadd.f32 %v1188_v34, %v911_v39  ;;  %v5128_v3 = vpop.f32.mrf.mxu1  ;;  %5343 = vmatmul.mubr.msk.bf16.vlgmr.msra.gmra.mxu1 %vm582_vm2, %v3019_v59  ;;  %v3447_v34 = vsel %vm3440_vm6, %v7131_v33, %v3446_v1 }
 0x115   : > { %v5162_v12 = vpop.f32.mrf.mxu0  ;;  %5337 = vmatmul.mubr.msk.bf16.gmra.mxu0 %vm582_vm2, %v2716_v0  ;;  %v948_v26 = vadd.f32 %v5128_v3, %v6430_v44  ;;  %5346 = vmatprep.mubr.msk.bf16.mxu1 %vm582_vm2, %v3028_v10  ;;  %v3037_v0 = vsel %vm2993_vm7, %v3027_v7, %v3036_v16  ;;  %v3050_v59 = vrot.slane %v3048_v4, 2  ;;  %v3450_v3 = vrot.slane %v6277_v63, 3 }
 0x116   : > { %v6547_v40 = vadd.f32 %v5162_v12, %v932_v50  ;;  %5380 = vmatprep.mubr.msk.bf16.mxu0 %vm582_vm2, %v6105_v37  ;;  %v3051_v50 = vshll.u32 %v6301_v23, 16  ;;  %v939_v31 = vpop.f32.mrf.mxu1  ;;  %v3045_v37 = vor.u32 %v3044_v36, %v3041_v15  ;;  %v3062_v15 = vrot.slane %v3060_v42, 3 }
 0x117   : > { %v1201_v39 = vpop.f32.mrf.mxu0  ;;  %v940_v28 = vadd.f32 %v939_v31, %v6439_v38  ;;  %v3075_v31 = vshrl.u32 %v6347_v14, 16 }
 0x118   : > { %v6554_v19 = vadd.f32 %v1201_v39, %v924_v24  ;;  %v5129_v44 = vpop.f32.mrf.mxu1  ;;  %v3053_v51 = vrot.slane %v3051_v50, 3  ;;  %v3046_v38 = vsel %vm2993_vm7, %v3036_v16, %v3045_v37  ;;  %v3069_v39 = vshll.u32 %v6339_v52, 16 }
 0x119   : > { %v5163_v62 = vpop.f32.mrf.mxu0  ;;  %v951_v58 = vadd.f32 %v5129_v44, %v6446_v56  ;;  %v3448_v56 = vrot.slane %v6271_v49, 3 }
 0x11a   : > { %v6562_v25 = vadd.f32 %v5163_v62, %v935_v8  ;;  %v942_v12 = vpop.f32.mrf.mxu1  ;;  %v3059_v8 = vrot.slane %v3057_v30, 2  ;;  %v3078_v62 = vshll.u32 %v6347_v14, 16 }
 0x11b   : > { %v1204_v24 = vpop.f32.mrf.mxu0  ;;  %v943_v7 = vadd.f32 %v942_v12, %v6454_v41  ;;  %v3054_v41 = vor.u32 %v3053_v51, %v3050_v59  ;;  %v3449_v42 = vsel %vm3440_vm6, %v3446_v1, %v3448_v56 }
 0x11c   : > { %v6569_v45 = vadd.f32 %v1204_v24, %v927_v48  ;;  %v5132_v36 = vpop.f32.mrf.mxu1  ;;  %5347 = vmatmul.mubr.msk.bf16.gmra.mxu1 %vm582_vm2, %v3037_v0  ;;  %v3063_v49 = vor.u32 %v3062_v15, %v3059_v8  ;;  %v3071_v0 = vrot.slane %v3069_v39, 3  ;;  %v3080_v1 = vrot.slane %v3078_v62, 3 }
 0x11d   : > { %v5166_v10 = vpop.f32.mrf.mxu0  ;;  %5381 = vmatmul.mubr.msk.bf16.vlgmr.msra.gmra.mxu0 %vm582_vm2, %v6113_v43  ;;  %v3066_v43 = vshrl.u32 %v6339_v52, 16  ;;  %v964_v16 = vadd.f32 %v5132_v36, %v6462_v9  ;;  %5350 = vmatprep.mubr.msk.bf16.mxu1 %vm582_vm2, %v3046_v38  ;;  %v3055_v59 = vsel %vm2993_vm7, %v3045_v37, %v3054_v41  ;;  %v3084_v36 = vshrl.u32 %v6383_v5, 16 }
 0x11e   : > { %v6575_v27 = vadd.f32 %v5166_v10, %v948_v26  ;;  %5384 = vmatprep.mubr.msk.bf16.mxu0 %vm582_vm2, %v3447_v34  ;;  %v955_v26 = vpop.f32.mrf.mxu1 }
 0x11f   : > { %v1217_v48 = vpop.f32.mrf.mxu0  ;;  %v956_v63 = vadd.f32 %v955_v26, %v6469_v32  ;;  %v3068_v24 = vrot.slane %v3066_v43, 2  ;;  %v3064_v32 = vsel %vm2993_vm7, %v3054_v41, %v3063_v49 }
 0x120   : > { %v6584_v4 = vadd.f32 %v1217_v48, %v940_v28  ;;  %v5133_v44 = vpop.f32.mrf.mxu1  ;;  %v3451_v28 = vsel %vm3440_vm6, %v3448_v56, %v3450_v3 }
 0x121   : > { %v5167_v50 = vpop.f32.mrf.mxu0  ;;  %v967_v33 = vadd.f32 %v5133_v44, %v6475_v18  ;;  %v3452_v18 = vrot.slane %v6301_v23, 3  ;;  %v3072_v15 = vor.u32 %v3071_v0, %v3068_v24  ;;  %v3093_v23 = vshrl.u32 %v6391_v60, 16 }
 0x122   : > { %v6590_v30 = vadd.f32 %v5167_v50, %v951_v58  ;;  %v958_v51 = vpop.f32.mrf.mxu1  ;;  %v3077_v58 = vrot.slane %v3075_v31, 2  ;;  %v3086_v44 = vrot.slane %v3084_v36, 2  ;;  %v3114_v36 = vshll.u32 %v6426_v46, 16 }
 0x123   : > { %v1220_v9 = vpop.f32.mrf.mxu0  ;;  %v959_v10 = vadd.f32 %v958_v51, %v6486_v47  ;;  %v3087_v47 = vshll.u32 %v6383_v5, 16  ;;  %v3453_v26 = vsel %vm3440_vm6, %v3450_v3, %v3452_v18  ;;  %v3073_v31 = vsel %vm2993_vm7, %v3063_v49, %v3072_v15 }
 0x124   : > { %v6595_v34 = vadd.f32 %v1220_v9, %v943_v7  ;;  %v5136_v8 = vpop.f32.mrf.mxu1  ;;  %5351 = vmatmul.mubr.msk.bf16.gmra.mxu1 %vm582_vm2, %v3055_v59  ;;  %v3454_v7 = vrot.slane %v6305_v61, 3  ;;  %v3081_v39 = vor.u32 %v3080_v1, %v3077_v58  ;;  %v3102_v58 = vshrl.u32 %v6418_v2, 16 }
 0x125   : > { %v5170_v12 = vpop.f32.mrf.mxu0  ;;  %5385 = vmatmul.mubr.msk.bf16.gmra.mxu0 %vm582_vm2, %v3449_v42  ;;  %5354 = vmatprep.mubr.msk.bf16.mxu1 %vm582_vm2, %v3064_v32  ;;  %v3089_v9 = vrot.slane %v3087_v47, 3  ;;  %v3458_v32 = vrot.slane %v6347_v14, 3  ;;  %v3105_v1 = vshll.u32 %v6418_v2, 16 }
 0x126   : > { %v6601_v38 = vadd.f32 %v5170_v12, %v964_v16  ;;  %5388 = vmatprep.mubr.msk.bf16.mxu0 %vm582_vm2, %v3451_v28  ;;  %v971_v48 = vpop.f32.mrf.mxu1  ;;  %v3096_v16 = vshll.u32 %v6391_v60, 16  ;;  %v3455_v62 = vsel %vm3440_vm6, %v3452_v18, %v3454_v7  ;;  %v3082_v0 = vsel %vm2993_vm7, %v3072_v15, %v3081_v39 }
 0x127   : > { %v1233_v37 = vpop.f32.mrf.mxu0  ;;  %v972_v59 = vadd.f32 %v971_v48, %v6333_v11  ;;  %v3090_v11 = vor.u32 %v3089_v9, %v3086_v44  ;;  %v3111_v15 = vshrl.u32 %v6426_v46, 16 }
 0x128   : > { %v6607_v56 = vadd.f32 %v1233_v37, %v956_v63  ;;  %v5137_v61 = vpop.f32.mrf.mxu1  ;;  %v980_v63 = vadd.f32 %v5136_v8, %v6318_v57  ;;  %v3098_v3 = vrot.slane %v3096_v16, 3  ;;  %v3456_v57 = vrot.slane %v6339_v52, 3 }
 0x129   : > { %v5171_v43 = vpop.f32.mrf.mxu0  ;;  %v3104_v16 = vrot.slane %v3102_v58, 2  ;;  %v3113_v44 = vrot.slane %v3111_v15, 2 }
 0x12a   : > { %v6614_v41 = vadd.f32 %v5171_v43, %v967_v33  ;;  %v974_v28 = vpop.f32.mrf.mxu1  ;;  %v3095_v33 = vrot.slane %v3093_v23, 2  ;;  %v3457_v48 = vsel %vm3440_vm6, %v3454_v7, %v3456_v57  ;;  %v3459_v23 = vsel %vm3440_vm6, %v3456_v57, %v3458_v32 }
 0x12b   : > { %v1236_v50 = vpop.f32.mrf.mxu0  ;;  %v975_v14 = vadd.f32 %v974_v28, %v6355_v13  ;;  %v3116_v7 = vrot.slane %v3114_v36, 3 }
 0x12c   : > { %v6620_v42 = vadd.f32 %v1236_v50, %v959_v10  ;;  %v5140_v49 = vpop.f32.mrf.mxu1  ;;  %5355 = vmatmul.mubr.msk.bf16.gmra.mxu1 %vm582_vm2, %v3073_v31  ;;  %v983_v10 = vadd.f32 %v5137_v61, %v6341_v17  ;;  %v3099_v52 = vor.u32 %v3098_v3, %v3095_v33  ;;  %v3091_v31 = vsel %vm2993_vm7, %v3081_v39, %v3090_v11  ;;  %v7132_v3 = vld [vmem:[#allocation2_spill] sm:$0xff] }
 0x12d   : > { %v5174_v24 = vpop.f32.mrf.mxu0  ;;  %5389 = vmatmul.mubr.msk.bf16.gmra.mxu0 %vm582_vm2, %v3453_v26  ;;  %5358 = vmatprep.mubr.msk.bf16.mxu1 %vm582_vm2, %v3082_v0  ;;  %v3107_v26 = vrot.slane %v3105_v1, 3  ;;  %v996_v61 = vadd.f32 %v5140_v49, %v6362_v29  ;;  %v3460_v29 = vrot.slane %v6383_v5, 3  ;;  %v3462_v33 = vrot.slane %v6391_v60, 3 }
 0x12e   : > { %v6625_v51 = vadd.f32 %v5174_v24, %v980_v63  ;;  %5392 = vmatprep.mubr.msk.bf16.mxu0 %vm582_vm2, %v3455_v62  ;;  %v987_v8 = vpop.f32.mrf.mxu1  ;;  %v3100_v13 = vsel %vm2993_vm7, %v3090_v11, %v3099_v52  ;;  %v3117_v5 = vor.u32 %v3116_v7, %v3113_v44  ;;  %v7137_v7 = vld [vmem:[#allocation5_spill] sm:$0xff] }
 0x12f   : > { %v1249_v12 = vpop.f32.mrf.mxu0  ;;  %v988_v9 = vadd.f32 %v987_v8, %v6377_v35  ;;  %v3108_v0 = vor.u32 %v3107_v26, %v3104_v16  ;;  %v7133_v35 = vld [vmem:[#allocation10_spill] sm:$0xff]  ;;  %v3461_v36 = vsel %vm3440_vm6, %v3458_v32, %v3460_v29 }
 0x130   : > { %v6634_v18 = vadd.f32 %v1249_v12, %v972_v59  ;;  %v5141_v43 = vpop.f32.mrf.mxu1  ;;  %v3120_v49 = vshrl.u32 %v7133_v35, 16  ;;  %v3123_v12 = vshll.u32 %v7133_v35, 16 }
 0x131   : > { %v5175_v37 = vpop.f32.mrf.mxu0  ;;  %v999_v59 = vadd.f32 %v5141_v43, %v7132_v3  ;;  %v3109_v43 = vsel %vm2993_vm7, %v3099_v52, %v3108_v0  ;;  %v3464_v52 = vrot.slane %v6418_v2, 3  ;;  %v3466_v3 = vrot.slane %v6426_v46, 3  ;;  %v7140_v46 = vld [vmem:[#allocation7_spill] sm:$0xff] }
 0x132   : > { %v6640_v47 = vadd.f32 %v5175_v37, %v983_v10  ;;  %v990_v62 = vpop.f32.mrf.mxu1  ;;  %v7134_v10 = vld [vmem:[#allocation12_spill] sm:$0xff]  ;;  %v7135_v37 = vld [vmem:[#allocation3_spill] sm:$0xff] }
 0x133   : > { %v1252_v17 = vpop.f32.mrf.mxu0  ;;  %v3129_v11 = vshrl.u32 %v7134_v10, 16  ;;  %v3132_v8 = vshll.u32 %v7134_v10, 16  ;;  %v991_v15 = vadd.f32 %v990_v62, %v7135_v37  ;;  %v3118_v62 = vsel %vm2993_vm7, %v3108_v0, %v3117_v5  ;;  %v7139_v37 = vld [vmem:[#allocation14_spill] sm:$0xff] }
 0x134   : > { %v6645_v50 = vadd.f32 %v1252_v17, %v975_v14  ;;  %v5144_v24 = vpop.f32.mrf.mxu1  ;;  %5359 = vmatmul.mubr.msk.bf16.gmra.mxu1 %vm582_vm2, %v3091_v31  ;;  %v3463_v17 = vsel %vm3440_vm6, %v3460_v29, %v3462_v33  ;;  %v3125_v31 = vrot.slane %v3123_v12, 3  ;;  %v3141_v0 = vshll.u32 %v6484_v54, 16 }
 0x135   : > { %v5178_v63 = vpop.f32.mrf.mxu0  ;;  %5393 = vmatmul.mubr.msk.bf16.gmra.mxu0 %vm582_vm2, %v3457_v48  ;;  %5362 = vmatprep.mubr.msk.bf16.mxu1 %vm582_vm2, %v3100_v13  ;;  %v3131_v44 = vrot.slane %v3129_v11, 2  ;;  %v3134_v32 = vrot.slane %v3132_v8, 3 }
 0x136   : > { %v6651_v28 = vadd.f32 %v5178_v63, %v996_v61  ;;  %5396 = vmatprep.mubr.msk.bf16.mxu0 %vm582_vm2, %v3459_v23  ;;  %v1003_v58 = vpop.f32.mrf.mxu1  ;;  %v7136_v23 = vld [vmem:[#allocation4_spill] sm:$0xff]  ;;  %v3122_v61 = vrot.slane %v3120_v49, 2  ;;  %v7138_v49 = vld [vmem:[#allocation6_spill] sm:$0xff] }
 0x137   : > { %v1265_v39 = vpop.f32.mrf.mxu0  ;;  %v1012_v16 = vadd.f32 %v5144_v24, %v7136_v23  ;;  %v3135_v8 = vor.u32 %v3134_v32, %v3131_v44 }
 0x138   : > { %v6658_v57 = vadd.f32 %v1265_v39, %v988_v9  ;;  %v5145_v14 = vpop.f32.mrf.mxu1  ;;  %v1004_v9 = vadd.f32 %v1003_v58, %v7137_v7  ;;  %v3126_v58 = vor.u32 %v3125_v31, %v3122_v61  ;;  %v6697_v61 = vld [vmem:[%s5612_s6 + $0xa0] ss:$0 sps:$4 sm:$0x77]   ;;  %v7141_v31 = vld [vmem:[#allocation8_spill] sm:$0xff]  ;;  %s5429_s6 = smul.u32 144, %s7162_s18 }
 0x139   : > { %v5179_v1 = vpop.f32.mrf.mxu0  ;;  %v1015_v12 = vadd.f32 %v5145_v14, %v7138_v49 }
 0x13a   : > { %v6666_v60 = vadd.f32 %v5179_v1, %v999_v59  ;;  %v1006_v63 = vpop.f32.mrf.mxu1  ;;  %v3138_v59 = vshrl.u32 %v6484_v54, 16  ;;  %v3127_v7 = vsel %vm2993_vm7, %v3117_v5, %v3126_v58  ;;  %s6990_s13 = scalar_lea.vmem %s7106_s3, %s5429_s6 }
 0x13b   : > { %v1268_v48 = vpop.f32.mrf.mxu0 }
 0x13c   : > { %v6672_v26 = vadd.f32 %v1268_v48, %v991_v15  ;;  %v5148_v29 = vpop.f32.mrf.mxu1  ;;  %5363 = vmatmul.mubr.msk.bf16.gmra.mxu1 %vm582_vm2, %v3109_v43  ;;  %v3147_v15 = vshrl.u32 %v7139_v37, 16  ;;  %v1007_v48 = vadd.f32 %v1006_v63, %v7140_v46  ;;  %v3470_v46 = vrot.slane %v7134_v10, 3 }
 0x13d   : > { %v5182_v13 = vpop.f32.mrf.mxu0  ;;  %5397 = vmatmul.mubr.msk.bf16.gmra.mxu0 %vm582_vm2, %v3461_v36  ;;  %5366 = vmatprep.mubr.msk.bf16.mxu1 %vm582_vm2, %v3118_v62  ;;  %v3150_v36 = vshll.u32 %v7139_v37, 16  ;;  %v3143_v62 = vrot.slane %v3141_v0, 3  ;;  %v1028_v44 = vadd.f32 %v5148_v29, %v7141_v31  ;;  %v3468_v29 = vrot.slane %v7133_v35, 3 }
 0x13e   : > { %v6677_v39 = vadd.f32 %v5182_v13, %v1012_v16  ;;  %5400 = vmatprep.mubr.msk.bf16.mxu0 %vm582_vm2, %v3463_v17  ;;  %v1019_v11 = vpop.f32.mrf.mxu1  ;;  %v3465_v17 = vsel %vm3440_vm6, %v3462_v33, %v3464_v52  ;;  %v3467_v16 = vsel %vm3440_vm6, %v3464_v52, %v3466_v3  ;;  %v3140_v13 = vrot.slane %v3138_v59, 2 }
 0x13f   : > { %v1281_v24 = vpop.f32.mrf.mxu0  ;;  %v3136_v33 = vsel %vm2993_vm7, %v3126_v58, %v3135_v8  ;;  %v3152_v49 = vrot.slane %v3150_v36, 3  ;;  %v7143_v58 = vld [vmem:[#allocation11_spill] sm:$0xff] }
 0x140   : > { %v6686_v1 = vadd.f32 %v1281_v24, %v1004_v9  ;;  %v5149_v14 = vpop.f32.mrf.mxu1  ;;  %v3149_v24 = vrot.slane %v3147_v15, 2  ;;  %v7144_v36 = vld [vmem:[#allocation15_spill] sm:$0xff] }
 0x141   : > { %v5183_v2 = vpop.f32.mrf.mxu0  ;;  %v1031_v15 = vadd.f32 %v5149_v14, %v7143_v58 }
 0x142   : > { %v6692_v43 = vadd.f32 %v5183_v2, %v1015_v12  ;;  %v1022_v9 = vpop.f32.mrf.mxu1  ;;  %v7142_v12 = vld [vmem:[#allocation9_spill] sm:$0xff]  ;;  %v3144_v2 = vor.u32 %v3143_v62, %v3140_v13  ;;  %v3153_v31 = vor.u32 %v3152_v49, %v3149_v24  ;;  %v7146_v13 = vld [vmem:[#allocation16_spill] sm:$0xff] }
 0x143   : > { %v1284_v23 = vpop.f32.mrf.mxu0  ;;  %v1020_v52 = vadd.f32 %v1019_v11, %v7142_v12 }
 0x144   : > { %v6700_v32 = vadd.f32 %v1284_v23, %v1007_v48  ;;  %v5192_v0 = vpop.f32.mrf.mxu1  ;;  %5367 = vmatmul.mubr.msk.bf16.gmra.mxu1 %vm582_vm2, %v3127_v7  ;;  %v3156_v48 = vshrl.u32 %v6697_v61, 16  ;;  %v3159_v23 = vshll.u32 %v6697_v61, 16 }
 0x145   : > { %v5186_v63 = vpop.f32.mrf.mxu0  ;;  %5401 = vmatmul.mubr.msk.bf16.gmra.mxu0 %vm582_vm2, %v3465_v17  ;;  %v1753_v17 = vadd.f32 %v5192_v0, %v7144_v36  ;;  %5370 = vmatprep.mubr.msk.bf16.mxu1 %vm582_vm2, %v3136_v33  ;;  %v3471_v0 = vsel %vm3440_vm6, %v3468_v29, %v3470_v46 }
 0x146   : > { %v6706_v59 = vadd.f32 %v5186_v63, %v1028_v44  ;;  %5404 = vmatprep.mubr.msk.bf16.mxu0 %vm582_vm2, %v3467_v16  ;;  %v1608_v35 = vpop.f32.mrf.mxu1  ;;  %v7145_v44 = vld [vmem:[#allocation13_spill] sm:$0xff]  ;;  %v3469_v63 = vsel %vm3440_vm6, %v3466_v3, %v3468_v29  ;;  %v3158_v58 = vrot.slane %v3156_v48, 2  ;;  %v3161_v24 = vrot.slane %v3159_v23, 3 }
 0x147   : > { %v1297_v5 = vpop.f32.mrf.mxu0  ;;  %v1023_v7 = vadd.f32 %v1022_v9, %v7145_v44  ;;  %v1751_v62 = vadd.f32 %v1608_v35, %v7146_v13  ;;  %v3474_v48 = vrot.slane %v7139_v37, 3 }
 0x148   : > { %v6715_v11 = vadd.f32 %v1297_v5, %v1020_v52  ;;  %v5193_v14 = vpop.f32.mrf.mxu1  ;;  %v3145_v52 = vsel %vm2993_vm7, %v3135_v8, %v3144_v2  ;;  %v3472_v8 = vrot.slane %v6484_v54, 3 }
 0x149   : > { %v5187_v16 = vpop.f32.mrf.mxu0  ;;  %v1754_v33 = vadd.f32 %v5193_v14, %v6512_v20 }
 0x14a   : > { %v6721_v10 = vadd.f32 %v5187_v16, %v1031_v15  ;;  %v1611_v49 = vpop.f32.mrf.mxu1  ;;  %v3154_v15 = vsel %vm2993_vm7, %v3144_v2, %v3153_v31  ;;  %v3162_v2 = vor.u32 %v3161_v24, %v3158_v58  ;;  %v3473_v54 = vsel %vm3440_vm6, %v3470_v46, %v3472_v8 }
 0x14b   : > { %v1300_v12 = vpop.f32.mrf.mxu0  ;;  %v1752_v3 = vadd.f32 %v1611_v49, %v6518_v53  ;;  %v3476_v46 = vrot.slane %v6697_v61, 3 }
 0x14c   : > { %v6727_v5 = vadd.f32 %v1300_v12, %v1023_v7  ;;  %v5196_v29 = vpop.f32.mrf.mxu1  ;;  %5371 = vmatmul.mubr.msk.bf16.gmra.mxu1 %vm582_vm2, %v3145_v52 }
 0x14d   : > { %v5230_v9 = vpop.f32.mrf.mxu0  ;;  %5405 = vmatmul.mubr.msk.bf16.gmra.mxu0 %vm582_vm2, %v3469_v63  ;;  %v1757_v23 = vadd.f32 %v5196_v29, %v6523_v21  ;;  %5374 = vmatprep.mubr.msk.bf16.mxu1 %vm582_vm2, %v3154_v15  ;;  %v3475_v63 = vsel %vm3440_vm6, %v3472_v8, %v3474_v48 }
 0x14e   : > { %v6732_v36 = vadd.f32 %v5230_v9, %v1753_v17  ;;  %5408 = vmatprep.mubr.msk.bf16.mxu0 %vm582_vm2, %v3471_v0  ;;  %v1624_v53 = vpop.f32.mrf.mxu1 }
 0x14f   : > { %v2055_v20 = vpop.f32.mrf.mxu0  ;;  %v1755_v16 = vadd.f32 %v1624_v53, %v6531_v6 }
 0x150   : > { %v6739_v35 = vadd.f32 %v2055_v20, %v1751_v62  ;;  %v5197_v7 = vpop.f32.mrf.mxu1  ;;  %v3163_v62 = vsel %vm2993_vm7, %v3153_v31, %v3162_v2 }
 0x151   : > { %v5231_v17 = vpop.f32.mrf.mxu0  ;;  %v1758_v37 = vadd.f32 %v5197_v7, %v6537_v22 }
 0x152   : > { %v6743_v44 = vadd.f32 %v5231_v17, %v1754_v33  ;;  %v1627_v14 = vpop.f32.mrf.mxu1 }
 0x153   : > { %v2058_v13 = vpop.f32.mrf.mxu0  ;;  %v1756_v6 = vadd.f32 %v1627_v14, %v6541_v55  ;;  %v3477_v55 = vsel %vm3440_vm6, %v3474_v48, %v3476_v46 }
 0x154   : > { %v6748_v21 = vadd.f32 %v2058_v13, %v1752_v3  ;;  %v5200_v0 = vpop.f32.mrf.mxu1  ;;  %5375 = vmatmul.mubr.msk.bf16.gmra.mxu1 %vm582_vm2, %v3163_v62 }
 0x155   : > { %v5234_v12 = vpop.f32.mrf.mxu0  ;;  %5409 = vmatmul.mubr.msk.bf16.gmra.mxu0 %vm582_vm2, %v3473_v54  ;;  %v1761_v33 = vadd.f32 %v5200_v0, %v6547_v40 }
 0x156   : > { %v6753_v52 = vadd.f32 %v5234_v12, %v1757_v23  ;;  %5412 = vmatprep.mubr.msk.bf16.mxu0 %vm582_vm2, %v3475_v63  ;;  %v1640_v31 = vpop.f32.mrf.mxu1 }
 0x157   : > { %v2071_v22 = vpop.f32.mrf.mxu0  ;;  %v1759_v49 = vadd.f32 %v1640_v31, %v6554_v19 }
 0x158   : > { %v6759_v58 = vadd.f32 %v2071_v22, %v1755_v16  ;;  %v5201_v15 = vpop.f32.mrf.mxu1 }
 0x159   : > { %v5235_v24 = vpop.f32.mrf.mxu0  ;;  %v1762_v61 = vadd.f32 %v5201_v15, %v6562_v25 }
 0x15a   : > { %v6762_v9 = vadd.f32 %v5235_v24, %v1758_v37  ;;  %v1643_v29 = vpop.f32.mrf.mxu1 }
 0x15b   : > { %v2074_v3 = vpop.f32.mrf.mxu0  ;;  %v1760_v40 = vadd.f32 %v1643_v29, %v6569_v45 }
 0x15c   : > { %v6766_v8 = vadd.f32 %v2074_v3, %v1756_v6  ;;  %v5204_v2 = vpop.f32.mrf.mxu1 }
 0x15d   : > { %v5238_v20 = vpop.f32.mrf.mxu0  ;;  %5413 = vmatmul.mubr.msk.bf16.gmra.mxu0 %vm582_vm2, %v3477_v55  ;;  %v1765_v53 = vadd.f32 %v5204_v2, %v6575_v27 }
 0x15e   : > { %v6770_v23 = vadd.f32 %v5238_v20, %v1761_v33  ;;  %v1656_v48 = vpop.f32.mrf.mxu1 }
 0x15f   : > { %v2087_v19 = vpop.f32.mrf.mxu0  ;;  %v1763_v25 = vadd.f32 %v1656_v48, %v6584_v4 }
 0x160   : > { %v6773_v17 = vadd.f32 %v2087_v19, %v1759_v49  ;;  %v5205_v7 = vpop.f32.mrf.mxu1 }
 0x161   : > { %v5239_v16 = vpop.f32.mrf.mxu0  ;;  %v1766_v63 = vadd.f32 %v5205_v7, %v6590_v30 }
 0x162   : > { %v6776_v54 = vadd.f32 %v5239_v16, %v1762_v61  ;;  %v1659_v45 = vpop.f32.mrf.mxu1 }
 0x163   : > { %v2090_v13 = vpop.f32.mrf.mxu0  ;;  %v1764_v14 = vadd.f32 %v1659_v45, %v6595_v34 }
 0x164   : > { %v6779_v37 = vadd.f32 %v2090_v13, %v1760_v40  ;;  %v5208_v27 = vpop.f32.mrf.mxu1 }
 0x165   : > { %v5242_v62 = vpop.f32.mrf.mxu0  ;;  %v1769_v46 = vadd.f32 %v5208_v27, %v6601_v38 }
 0x166   : > { %v6782_v12 = vadd.f32 %v5242_v62, %v1765_v53  ;;  %v1672_v4 = vpop.f32.mrf.mxu1 }
 0x167   : > { %v2103_v6 = vpop.f32.mrf.mxu0  ;;  %v1767_v33 = vadd.f32 %v1672_v4, %v6607_v56 }
 0x168   : > { %v6785_v0 = vadd.f32 %v2103_v6, %v1763_v25  ;;  %v5209_v30 = vpop.f32.mrf.mxu1 }
 0x169   : > { %v5243_v22 = vpop.f32.mrf.mxu0  ;;  %v1770_v49 = vadd.f32 %v5209_v30, %v6614_v41 }
 0x16a   : > { %v6788_v31 = vadd.f32 %v5243_v22, %v1766_v63  ;;  %v1675_v34 = vpop.f32.mrf.mxu1 }
 0x16b   : > { %v2106_v24 = vpop.f32.mrf.mxu0  ;;  %v1768_v3 = vadd.f32 %v1675_v34, %v6620_v42 }
 0x16c   : > { %v6791_v55 = vadd.f32 %v2106_v24, %v1764_v14  ;;  %v5212_v38 = vpop.f32.mrf.mxu1 }
 0x16d   : > { %v5246_v15 = vpop.f32.mrf.mxu0  ;;  %v1773_v20 = vadd.f32 %v5212_v38, %v6625_v51 }
 0x16e   : > { %v6794_v61 = vadd.f32 %v5246_v15, %v1769_v46  ;;  %v1688_v56 = vpop.f32.mrf.mxu1 }
 0x16f   : > { %v2119_v29 = vpop.f32.mrf.mxu0  ;;  %v1771_v19 = vadd.f32 %v1688_v56, %v6634_v18 }
 0x170   : > { %v6797_v40 = vadd.f32 %v2119_v29, %v1767_v33  ;;  %v5213_v41 = vpop.f32.mrf.mxu1 }
 0x171   : > { %v5247_v2 = vpop.f32.mrf.mxu0  ;;  %v1774_v16 = vadd.f32 %v5213_v41, %v6640_v47 }
 0x172   : > { %v6800_v53 = vadd.f32 %v5247_v2, %v1770_v49  ;;  %v1691_v42 = vpop.f32.mrf.mxu1 }
 0x173   : > { %v2122_v48 = vpop.f32.mrf.mxu0  ;;  %v1772_v13 = vadd.f32 %v1691_v42, %v6645_v50 }
 0x174   : > { %v6803_v25 = vadd.f32 %v2122_v48, %v1768_v3  ;;  %v5216_v51 = vpop.f32.mrf.mxu1 }
 0x175   : > { %v5250_v7 = vpop.f32.mrf.mxu0  ;;  %v1777_v62 = vadd.f32 %v5216_v51, %v6651_v28 }
 0x176   : > { %v6806_v63 = vadd.f32 %v5250_v7, %v1773_v20  ;;  %v1704_v18 = vpop.f32.mrf.mxu1 }
 0x177   : > { %v2135_v45 = vpop.f32.mrf.mxu0  ;;  %v1775_v6 = vadd.f32 %v1704_v18, %v6658_v57 }
 0x178   : > { %v6809_v14 = vadd.f32 %v2135_v45, %v1771_v19  ;;  %v5217_v47 = vpop.f32.mrf.mxu1 }
 0x179   : > { %v5251_v27 = vpop.f32.mrf.mxu0  ;;  %v1778_v22 = vadd.f32 %v5217_v47, %v6666_v60 }
 0x17a   : > { %v6812_v46 = vadd.f32 %v5251_v27, %v1774_v16  ;;  %v1707_v50 = vpop.f32.mrf.mxu1 }
 0x17b   : > { %v2138_v4 = vpop.f32.mrf.mxu0  ;;  %v1776_v24 = vadd.f32 %v1707_v50, %v6672_v26 }
 0x17c   : > { %v6815_v33 = vadd.f32 %v2138_v4, %v1772_v13  ;;  %v5220_v28 = vpop.f32.mrf.mxu1 }
 0x17d   : > { %v5254_v30 = vpop.f32.mrf.mxu0  ;;  %v1781_v15 = vadd.f32 %v5220_v28, %v6677_v39 }
 0x17e   : > { %v6818_v49 = vadd.f32 %v5254_v30, %v1777_v62  ;;  %v1720_v57 = vpop.f32.mrf.mxu1 }
 0x17f   : > { %v2151_v34 = vpop.f32.mrf.mxu0  ;;  %v1779_v29 = vadd.f32 %v1720_v57, %v6686_v1 }
 0x180   : > { %v6821_v3 = vadd.f32 %v2151_v34, %v1775_v6  ;;  %v5221_v60 = vpop.f32.mrf.mxu1 }
 0x181   : > { %v5255_v38 = vpop.f32.mrf.mxu0  ;;  %v1782_v2 = vadd.f32 %v5221_v60, %v6692_v43 }
 0x182   : > { %v6824_v20 = vadd.f32 %v5255_v38, %v1778_v22  ;;  %v1723_v26 = vpop.f32.mrf.mxu1 }
 0x183   : > { %v2154_v56 = vpop.f32.mrf.mxu0  ;;  %v1780_v48 = vadd.f32 %v1723_v26, %v6700_v32 }
 0x184   : > { %v6827_v19 = vadd.f32 %v2154_v56, %v1776_v24  ;;  %v5224_v39 = vpop.f32.mrf.mxu1 }
 0x185   : > { %v5258_v41 = vpop.f32.mrf.mxu0  ;;  %v1785_v7 = vadd.f32 %v5224_v39, %v6706_v59 }
 0x186   : > { %v6830_v16 = vadd.f32 %v5258_v41, %v1781_v15  ;;  %v1736_v1 = vpop.f32.mrf.mxu1 }
 0x187   : > { %v2167_v42 = vpop.f32.mrf.mxu0  ;;  %v1783_v45 = vadd.f32 %v1736_v1, %v6715_v11 }
 0x188   : > { %v6833_v13 = vadd.f32 %v2167_v42, %v1779_v29  ;;  %v5225_v43 = vpop.f32.mrf.mxu1 }
 0x189   : > { %v5259_v51 = vpop.f32.mrf.mxu0  ;;  %v1786_v27 = vadd.f32 %v5225_v43, %v6721_v10 }
 0x18a   : > { %v6836_v62 = vadd.f32 %v5259_v51, %v1782_v2  ;;  %v1739_v32 = vpop.f32.mrf.mxu1 }
 0x18b   : > { %v2170_v18 = vpop.f32.mrf.mxu0  ;;  %v1784_v4 = vadd.f32 %v1739_v32, %v6727_v5 }
 0x18c   : > { %v6839_v6 = vadd.f32 %v2170_v18, %v1780_v48  ;;  %v5268_v59 = vpop.f32.mrf.mxu1 }
 0x18d   : > { %v5262_v47 = vpop.f32.mrf.mxu0  ;;  %v2514_v30 = vadd.f32 %v5268_v59, %v6732_v36 }
 0x18e   : > { %v6842_v22 = vadd.f32 %v5262_v47, %v1785_v7  ;;  %v2369_v11 = vpop.f32.mrf.mxu1 }
 0x18f   : > { %v2183_v50 = vpop.f32.mrf.mxu0  ;;  %v2512_v34 = vadd.f32 %v2369_v11, %v6739_v35 }
 0x190   : > { %v6845_v24 = vadd.f32 %v2183_v50, %v1783_v45  ;;  %v5269_v10 = vpop.f32.mrf.mxu1 }
 0x191   : > { %v5263_v28 = vpop.f32.mrf.mxu0  ;;  %v2515_v38 = vadd.f32 %v5269_v10, %v6743_v44 }
 0x192   : > { %v6848_v15 = vadd.f32 %v5263_v28, %v1786_v27  ;;  %v2372_v5 = vpop.f32.mrf.mxu1 }
 0x193   : > { %v2186_v57 = vpop.f32.mrf.mxu0  ;;  %v2513_v56 = vadd.f32 %v2372_v5, %v6748_v21 }
 0x194   : > { %v6851_v29 = vadd.f32 %v2186_v57, %v1784_v4  ;;  %v5272_v36 = vpop.f32.mrf.mxu1 }
 0x195   : > { %v5306_v60 = vpop.f32.mrf.mxu0  ;;  %v2518_v41 = vadd.f32 %v5272_v36, %v6753_v52 }
 0x196   : > { %v6854_v2 = vadd.f32 %v5306_v60, %v2514_v30  ;;  %v2385_v35 = vpop.f32.mrf.mxu1 }
 0x197   : > { %v2808_v26 = vpop.f32.mrf.mxu0  ;;  %v2516_v42 = vadd.f32 %v2385_v35, %v6759_v58 }
 0x198   : > { %v6857_v48 = vadd.f32 %v2808_v26, %v2512_v34  ;;  %v5273_v44 = vpop.f32.mrf.mxu1 }
 0x199   : > { %v5307_v39 = vpop.f32.mrf.mxu0  ;;  %v2519_v51 = vadd.f32 %v5273_v44, %v6762_v9 }
 0x19a   : > { %v6860_v7 = vadd.f32 %v5307_v39, %v2515_v38  ;;  %v2388_v21 = vpop.f32.mrf.mxu1 }
 0x19b   : > { %v2811_v1 = vpop.f32.mrf.mxu0  ;;  %v2517_v18 = vadd.f32 %v2388_v21, %v6766_v8 }
 0x19c   : > { %v6863_v45 = vadd.f32 %v2811_v1, %v2513_v56  ;;  %v5276_v52 = vpop.f32.mrf.mxu1 }
 0x19d   : > { %v5310_v43 = vpop.f32.mrf.mxu0  ;;  %v2522_v47 = vadd.f32 %v5276_v52, %v6770_v23 }
 0x19e   : > { %v6866_v27 = vadd.f32 %v5310_v43, %v2518_v41  ;;  %v2401_v58 = vpop.f32.mrf.mxu1 }
 0x19f   : > { %v2824_v32 = vpop.f32.mrf.mxu0  ;;  %v2520_v50 = vadd.f32 %v2401_v58, %v6773_v17 }
 0x1a0   : > { %v6869_v4 = vadd.f32 %v2824_v32, %v2516_v42  ;;  %v5277_v9 = vpop.f32.mrf.mxu1 }
 0x1a1   : > { %v5311_v59 = vpop.f32.mrf.mxu0  ;;  %v2523_v28 = vadd.f32 %v5277_v9, %v6776_v54 }
 0x1a2   : > { %v6872_v30 = vadd.f32 %v5311_v59, %v2519_v51  ;;  %v2404_v8 = vpop.f32.mrf.mxu1 }
 0x1a3   : > { %v2827_v11 = vpop.f32.mrf.mxu0  ;;  %v2521_v57 = vadd.f32 %v2404_v8, %v6779_v37 }
 0x1a4   : > { %v6875_v34 = vadd.f32 %v2827_v11, %v2517_v18  ;;  %v5280_v23 = vpop.f32.mrf.mxu1 }
 0x1a5   : > { %v5314_v10 = vpop.f32.mrf.mxu0  ;;  %v2526_v60 = vadd.f32 %v5280_v23, %v6782_v12 }
 0x1a6   : > { %v6878_v38 = vadd.f32 %v5314_v10, %v2522_v47  ;;  %v2417_v17 = vpop.f32.mrf.mxu1 }
 0x1a7   : > { %v2840_v5 = vpop.f32.mrf.mxu0  ;;  %v2524_v26 = vadd.f32 %v2417_v17, %v6785_v0 }
 0x1a8   : > { %v6881_v56 = vadd.f32 %v2840_v5, %v2520_v50  ;;  %v5281_v54 = vpop.f32.mrf.mxu1 }
 0x1a9   : > { %v5315_v36 = vpop.f32.mrf.mxu0  ;;  %v2527_v39 = vadd.f32 %v5281_v54, %v6788_v31 }
 0x1aa   : > { %v6884_v41 = vadd.f32 %v5315_v36, %v2523_v28  ;;  %v2420_v37 = vpop.f32.mrf.mxu1 }
 0x1ab   : > { %v2843_v35 = vpop.f32.mrf.mxu0  ;;  %v2525_v1 = vadd.f32 %v2420_v37, %v6791_v55 }
 0x1ac   : > { %v6887_v42 = vadd.f32 %v2843_v35, %v2521_v57  ;;  %v5284_v12 = vpop.f32.mrf.mxu1 }
 0x1ad   : > { %v5318_v44 = vpop.f32.mrf.mxu0  ;;  %v2530_v43 = vadd.f32 %v5284_v12, %v6794_v61 }
 0x1ae   : > { %v6890_v51 = vadd.f32 %v5318_v44, %v2526_v60  ;;  %v2433_v0 = vpop.f32.mrf.mxu1  ;;  %v6916_v44 = vpop.permute.xlu0 %3966 }
 0x1af   : > { %v2856_v21 = vpop.f32.mrf.mxu0  ;;  %v2528_v32 = vadd.f32 %v2433_v0, %v6797_v40 }
 0x1b0   : > { %v6893_v18 = vadd.f32 %v2856_v21, %v2524_v26  ;;  %v5285_v31 = vpop.f32.mrf.mxu1 }
 0x1b1   : > { %v5319_v52 = vpop.f32.mrf.mxu0  ;;  %v2531_v59 = vadd.f32 %v5285_v31, %v6800_v53 }
 0x1b2   : > { %v6896_v47 = vadd.f32 %v5319_v52, %v2527_v39  ;;  %v2436_v55 = vpop.f32.mrf.mxu1 }
 0x1b3   : > { %v2859_v58 = vpop.f32.mrf.mxu0  ;;  %v2529_v11 = vadd.f32 %v2436_v55, %v6803_v25  ;;  %v6929_v55 = vpop.permute.xlu0 %3971 }
 0x1b4   : > { %v6899_v50 = vadd.f32 %v2859_v58, %v2525_v1  ;;  %v5288_v61 = vpop.f32.mrf.mxu1 }
 0x1b5   : > { %v5322_v9 = vpop.f32.mrf.mxu0  ;;  %v2534_v10 = vadd.f32 %v5288_v61, %v6806_v63 }
 0x1b6   : > { %v6902_v28 = vadd.f32 %v5322_v9, %v2530_v43  ;;  %v2449_v40 = vpop.f32.mrf.mxu1  ;;  %v6921_v43 = vpop.permute.xlu1 %3976 }
 0x1b7   : > { %v2872_v8 = vpop.f32.mrf.mxu0  ;;  %v2532_v5 = vadd.f32 %v2449_v40, %v6809_v14 }
 0x1b8   : > { %v6905_v57 = vadd.f32 %v2872_v8, %v2528_v32  ;;  %v5289_v53 = vpop.f32.mrf.mxu1 }
 0x1b9   : > { %v5323_v23 = vpop.f32.mrf.mxu0  ;;  %v2535_v36 = vadd.f32 %v5289_v53, %v6812_v46 }
 0x1ba   : > { %v6908_v60 = vadd.f32 %v5323_v23, %v2531_v59  ;;  %v2452_v25 = vpop.f32.mrf.mxu1  ;;  %v6934_v8 = vpop.permute.xlu1 %3981 }
 0x1bb   : > { %v2875_v17 = vpop.f32.mrf.mxu0  ;;  %v2533_v35 = vadd.f32 %v2452_v25, %v6815_v33 }
 0x1bc   : > { %v6911_v26 = vadd.f32 %v2875_v17, %v2529_v11  ;;  %v5292_v63 = vpop.f32.mrf.mxu1 }
 0x1bd   : > { %v5326_v54 = vpop.f32.mrf.mxu0  ;;  %v2538_v14 = vadd.f32 %v5292_v63, %v6818_v49 }
 0x1be   : > { %v6914_v39 = vadd.f32 %v5326_v54, %v2534_v10  ;;  %v2465_v12 = vpop.f32.mrf.mxu1  ;;  %v6947_v63 = vpop.permute.xlu1 %3991 }
 0x1bf   : > { %v2888_v37 = vpop.f32.mrf.mxu0  ;;  %v2536_v46 = vadd.f32 %v2465_v12, %v6821_v3 }
 0x1c0   : > { %v6919_v1 = vadd.f32 %v2888_v37, %v2532_v5  ;;  %v5293_v52 = vpop.f32.mrf.mxu1 }
 0x1c1   : > { %v5327_v21 = vpop.f32.mrf.mxu0  ;;  %v2539_v32 = vadd.f32 %v5293_v52, %v6824_v20 }
 0x1c2   : > { %v6924_v0 = vadd.f32 %v5327_v21, %v2535_v36  ;;  %v2468_v58 = vpop.f32.mrf.mxu1  ;;  %v6942_v36 = vpop.permute.xlu0 %3986 }
 0x1c3   : > { %v2891_v33 = vpop.f32.mrf.mxu0  ;;  %v2537_v49 = vadd.f32 %v2468_v58, %v6827_v19 }
 0x1c4   : > { %v6927_v31 = vadd.f32 %v2891_v33, %v2533_v35  ;;  %v5296_v11 = vpop.f32.mrf.mxu1 }
 0x1c5   : > { %v5330_v59 = vpop.f32.mrf.mxu0  ;;  %v2542_v3 = vadd.f32 %v5296_v11, %v6830_v16 }
 0x1c6   : > { %v6932_v9 = vadd.f32 %v5330_v59, %v2538_v14  ;;  %v2481_v40 = vpop.f32.mrf.mxu1  ;;  %v6955_v33 = vpop.permute.xlu0 %3996 }
 0x1c7   : > { %v2904_v61 = vpop.f32.mrf.mxu0  ;;  %v2540_v23 = vadd.f32 %v2481_v40, %v6833_v13 }
 0x1c8   : > { %v6937_v10 = vadd.f32 %v2904_v61, %v2536_v46  ;;  %v5297_v53 = vpop.f32.mrf.mxu1 }
 0x1c9   : > { %v5331_v20 = vpop.f32.mrf.mxu0  ;;  %v2543_v19 = vadd.f32 %v5297_v53, %v6836_v62 }
 0x1ca   : > { %v6940_v5 = vadd.f32 %v5331_v20, %v2539_v32  ;;  %v2484_v54 = vpop.f32.mrf.mxu1 }
 0x1cb   : > { %v2907_v17 = vpop.f32.mrf.mxu0  ;;  %v2541_v16 = vadd.f32 %v2484_v54, %v6839_v6 }
 0x1cc   : > { %v6945_v25 = vadd.f32 %v2907_v17, %v2537_v49  ;;  %v5300_v14 = vpop.f32.mrf.mxu1  ;;  %v6960_v49 = vpop.permute.xlu1 %4001 }
 0x1cd   : > { %v5334_v35 = vpop.f32.mrf.mxu0  ;;  %v2546_v12 = vadd.f32 %v5300_v14, %v6842_v22 }
 0x1ce   : > { %v6950_v37 = vadd.f32 %v5334_v35, %v2542_v3  ;;  %v2497_v46 = vpop.f32.mrf.mxu1 }
 0x1cf   : > { %v2920_v13 = vpop.f32.mrf.mxu0  ;;  %v2544_v62 = vadd.f32 %v2497_v46, %v6845_v24  ;;  %v6968_v24 = vpop.permute.xlu0 %4006 }
 0x1d0   : > { %v6953_v21 = vadd.f32 %v2920_v13, %v2540_v23  ;;  %v5301_v58 = vpop.f32.mrf.mxu1  ;;  %v6972_v54 = vpop.permute.xlu1 %4011 }
 0x1d1   : > { %v5335_v52 = vpop.f32.mrf.mxu0  ;;  %v2547_v6 = vadd.f32 %v5301_v58, %v6848_v15 }
 0x1d2   : > { %v6958_v32 = vadd.f32 %v5335_v52, %v2543_v19  ;;  %v2500_v61 = vpop.f32.mrf.mxu1 }
 0x1d3   : > { %v2923_v59 = vpop.f32.mrf.mxu0  ;;  %v2545_v3 = vadd.f32 %v2500_v61, %v6851_v29 }
 0x1d4   : > { %v6963_v11 = vadd.f32 %v2923_v59, %v2541_v16  ;;  %v5344_v20 = vpop.f32.mrf.mxu1 }
 0x1d5   : > { %v5338_v22 = vpop.f32.mrf.mxu0  ;;  %v3400_v59 = vadd.f32 %v5344_v20, %v6854_v2 }
 0x1d6   : > { %7147 = vst [vmem:[#allocation2_spill] sm:$0xff] %v6963_v11  ;;  %v6966_v40 = vadd.f32 %v5338_v22, %v2546_v12  ;;  %v3255_v17 = vpop.f32.mrf.mxu1  ;;  %v6978_v12 = vpop.permute.xlu0 %4016 }
 0x1d7   : > { %v2936_v23 = vpop.f32.mrf.mxu0  ;;  %v3398_v46 = vadd.f32 %v3255_v17, %v6857_v48 }
 0x1d8   : > { %7148 = vst [vmem:[#allocation10_spill] sm:$0xff] %v6966_v40  ;;  %v6970_v53 = vadd.f32 %v2936_v23, %v2544_v62  ;;  %v5345_v35 = vpop.f32.mrf.mxu1  ;;  %v6982_v62 = vpop.permute.xlu1 %4021 }
 0x1d9   : > { %v5339_v19 = vpop.f32.mrf.mxu0 }
 0x1da   : > { %7149 = vst [vmem:[#allocation12_spill] sm:$0xff] %v6970_v53  ;;  %v6974_v15 = vadd.f32 %v5339_v19, %v2547_v6  ;;  %v3258_v29 = vpop.f32.mrf.mxu1  ;;  %v3401_v6 = vadd.f32 %v5345_v35, %v6860_v7  ;;  %v6992_v17 = vpop.permute.xlu0 %4026 }
 0x1db   : > { %v2939_v16 = vpop.f32.mrf.mxu0 }
 0x1dc   : > { %7150 = vst [vmem:[#allocation3_spill] sm:$0xff] %v6974_v15  ;;  %v6976_v14 = vadd.f32 %v2939_v16, %v2545_v3  ;;  %v5348_v52 = vpop.f32.mrf.mxu1  ;;  %v3399_v16 = vadd.f32 %v3258_v29, %v6863_v45 }
 0x1dd   : > { %v5382_v13 = vpop.f32.mrf.mxu0  ;;  %v3404_v15 = vadd.f32 %v5348_v52, %v6866_v27 }
 0x1de   : > { %7151 = vst [vmem:[#allocation4_spill] sm:$0xff] %v6976_v14  ;;  %v3271_v61 = vpop.f32.mrf.mxu1  ;;  %v3714_v3 = vadd.f32 %v5382_v13, %v3400_v59 }
 0x1df   : > { %v3569_v58 = vpop.f32.mrf.mxu0  ;;  %v3402_v45 = vadd.f32 %v3271_v61, %v6869_v4 }
 0x1e0   : > { %v3712_v22 = vadd.f32 %v3569_v58, %v3398_v46  ;;  %v5349_v14 = vpop.f32.mrf.mxu1  ;;  %v6995_v46 = vpop.permute.xlu1 %4031  ;;  %v4146_v29 = vmul.f32 %v6921_v43, %v3714_v3 }
 0x1e1   : > { %v5383_v23 = vpop.f32.mrf.mxu0 }
 0x1e2   : > { %v3715_v19 = vadd.f32 %v5383_v23, %v3401_v6  ;;  %v4144_v7 = vmul.f32 %v6916_v44, %v3712_v22  ;;  %v3274_v20 = vpop.f32.mrf.mxu1  ;;  %v3405_v44 = vadd.f32 %v5349_v14, %v6872_v30 }
 0x1e3   : > { %v3572_v48 = vpop.f32.mrf.mxu0  ;;  %v3403_v27 = vadd.f32 %v3274_v20, %v6875_v34 }
 0x1e4   : > { %v4804_v2 = vpack.c.bf16 %v3715_v19, %v3714_v3  ;;  %v3713_v35 = vadd.f32 %v3572_v48, %v3399_v16  ;;  %v5352_v6 = vpop.f32.mrf.mxu1  ;;  %v4221_v53 = vmul.f32 %v4144_v7, %v4144_v7  ;;  %v4147_v16 = vmul.f32 %v6934_v8, %v3715_v19  ;;  %v7009_v8 = vpop.permute.xlu1 %4041 }
 0x1e5   : > { %v5386_v13 = vpop.f32.mrf.mxu0  ;;  %v4223_v3 = vmul.f32 %v4146_v29, %v4146_v29 }
 0x1e6   : > { %4886 = vst [vmem:[%s6990_s13 + $0x8] sm:$0xff] %v4804_v2   ;;  %v4799_v58 = vpack.c.bf16 %v3713_v35, %v3712_v22  ;;  %v4145_v59 = vmul.f32 %v6929_v55, %v3713_v35  ;;  %v3287_v4 = vpop.f32.mrf.mxu1  ;;  %v7005_v2 = vpop.permute.xlu0 %4036  ;;  %v3718_v43 = vadd.f32 %v5386_v13, %v3404_v15 }
 0x1e7   : > { %v3585_v23 = vpop.f32.mrf.mxu0  ;;  %v3406_v13 = vadd.f32 %v3287_v4, %v6881_v56 }
 0x1e8   : > { %v3716_v40 = vadd.f32 %v3585_v23, %v3402_v45  ;;  %4800 = vst [vmem:[%s6990_s13] sm:$0xff] %v4799_v58   ;;  %v4180_v48 = vadd.f32 %v4145_v59, %v4144_v7  ;;  %v4222_v11 = vmul.f32 %v4145_v59, %v4145_v59  ;;  %v5353_v52 = vpop.f32.mrf.mxu1  ;;  %v4224_v7 = vmul.f32 %v4147_v16, %v4147_v16 }
 0x1e9   : > { %v5387_v61 = vpop.f32.mrf.mxu0 }
 0x1ea   : > { %v4148_v55 = vmul.f32 %v6942_v36, %v3716_v40  ;;  %v3719_v22 = vadd.f32 %v5387_v61, %v3405_v44  ;;  %v4181_v30 = vadd.f32 %v4180_v48, %v4146_v29  ;;  %v4257_v14 = vadd.f32 %v4222_v11, %v4221_v53  ;;  %v3290_v59 = vpop.f32.mrf.mxu1  ;;  %v7015_v61 = vpop.permute.xlu0 %4046 }
 0x1eb   : > { %v3588_v35 = vpop.f32.mrf.mxu0  ;;  %v4150_v36 = vmul.f32 %v6955_v33, %v3718_v43 }
 0x1ec   : > { %v4814_v19 = vpack.c.bf16 %v3719_v22, %v3718_v43  ;;  %v4258_v45 = vadd.f32 %v4257_v14, %v4223_v3  ;;  %v4182_v58 = vadd.f32 %v4181_v30, %v4147_v16  ;;  %v3717_v23 = vadd.f32 %v3588_v35, %v3403_v27  ;;  %v5356_v44 = vpop.f32.mrf.mxu1 }
 0x1ed   : > { %v5390_v15 = vpop.f32.mrf.mxu0  ;;  %v4225_v34 = vmul.f32 %v4148_v55, %v4148_v55  ;;  %v3408_v16 = vadd.f32 %v5352_v6, %v6878_v38  ;;  %v3409_v3 = vadd.f32 %v5353_v52, %v6884_v41  ;;  %v4151_v43 = vmul.f32 %v6960_v49, %v3719_v22 }
 0x1ee   : > { %4888 = vst [vmem:[%s6990_s13 + $0x18] sm:$0xff] %v4814_v19   ;;  %v4183_v20 = vadd.f32 %v4182_v58, %v4148_v55  ;;  %v4259_v11 = vadd.f32 %v4258_v45, %v4224_v7  ;;  %v4809_v53 = vpack.c.bf16 %v3717_v23, %v3716_v40  ;;  %v4149_v29 = vmul.f32 %v6947_v63, %v3717_v23  ;;  %v3303_v55 = vpop.f32.mrf.mxu1  ;;  %v7021_v40 = vpop.permute.xlu1 %4051 }
 0x1ef   : > { %v3601_v48 = vpop.f32.mrf.mxu0  ;;  %v3722_v63 = vadd.f32 %v5390_v15, %v3408_v16  ;;  %v4227_v19 = vmul.f32 %v4150_v36, %v4150_v36  ;;  %v3407_v38 = vadd.f32 %v3290_v59, %v6887_v42  ;;  %v4228_v22 = vmul.f32 %v4151_v43, %v4151_v43 }
 0x1f0   : > { %v3720_v27 = vadd.f32 %v3601_v48, %v3406_v13  ;;  %v4260_v33 = vadd.f32 %v4259_v11, %v4225_v34  ;;  %4887 = vst [vmem:[%s6990_s13 + $0x10] sm:$0xff] %v4809_v53   ;;  %v4184_v56 = vadd.f32 %v4183_v20, %v4149_v29  ;;  %v4226_v4 = vmul.f32 %v4149_v29, %v4149_v29  ;;  %v5357_v52 = vpop.f32.mrf.mxu1  ;;  %v7025_v20 = vpop.permute.xlu0 %4056 }
 0x1f1   : > { %v5391_v30 = vpop.f32.mrf.mxu0  ;;  %v3410_v15 = vadd.f32 %v3303_v55, %v6893_v18 }
 0x1f2   : > { %v4152_v14 = vmul.f32 %v6968_v24, %v3720_v27  ;;  %v3723_v35 = vadd.f32 %v5391_v30, %v3409_v3  ;;  %v4185_v41 = vadd.f32 %v4184_v56, %v4150_v36  ;;  %v4261_v6 = vadd.f32 %v4260_v33, %v4226_v4  ;;  %v3306_v23 = vpop.f32.mrf.mxu1  ;;  %v7031_v16 = vpop.permute.xlu1 %4061 }
 0x1f3   : > { %v3604_v7 = vpop.f32.mrf.mxu0  ;;  %v4154_v24 = vmul.f32 %v6978_v12, %v3722_v63  ;;  %v3412_v3 = vadd.f32 %v5356_v44, %v6890_v51  ;;  %v3413_v33 = vadd.f32 %v5357_v52, %v6896_v47 }
 0x1f4   : > { %v4824_v49 = vpack.c.bf16 %v3723_v35, %v3722_v63  ;;  %v4262_v45 = vadd.f32 %v4261_v6, %v4227_v19  ;;  %v4186_v58 = vadd.f32 %v4185_v41, %v4151_v43  ;;  %v3721_v13 = vadd.f32 %v3604_v7, %v3407_v38  ;;  %v5360_v29 = vpop.f32.mrf.mxu1  ;;  %v7039_v41 = vpop.permute.xlu0 %4066 }
 0x1f5   : > { %v5394_v34 = vpop.f32.mrf.mxu0  ;;  %v4229_v42 = vmul.f32 %v4152_v14, %v4152_v14  ;;  %v4155_v56 = vmul.f32 %v6982_v62, %v3723_v35  ;;  %v3411_v19 = vadd.f32 %v3306_v23, %v6899_v50 }
 0x1f6   : > { %4890 = vst [vmem:[%s6990_s13 + $0x28] sm:$0xff] %v4824_v49   ;;  %v4187_v59 = vadd.f32 %v4186_v58, %v4152_v14  ;;  %v4263_v36 = vadd.f32 %v4262_v45, %v4228_v22  ;;  %v4819_v11 = vpack.c.bf16 %v3721_v13, %v3720_v27  ;;  %v4153_v53 = vmul.f32 %v6972_v54, %v3721_v13  ;;  %v3319_v55 = vpop.f32.mrf.mxu1  ;;  %v7041_v45 = vpop.permute.xlu1 %4071 }
 0x1f7   : > { %v3617_v48 = vpop.f32.mrf.mxu0  ;;  %v3726_v27 = vadd.f32 %v5394_v34, %v3412_v3  ;;  %v4231_v14 = vmul.f32 %v4154_v24, %v4154_v24  ;;  %v4232_v35 = vmul.f32 %v4155_v56, %v4155_v56  ;;  %v3414_v50 = vadd.f32 %v3319_v55, %v6905_v57 }
 0x1f8   : > { %v3724_v43 = vadd.f32 %v3617_v48, %v3410_v15  ;;  %v4264_v12 = vadd.f32 %v4263_v36, %v4229_v42  ;;  %4889 = vst [vmem:[%s6990_s13 + $0x20] sm:$0xff] %v4819_v11   ;;  %v4188_v18 = vadd.f32 %v4187_v59, %v4153_v53  ;;  %v4230_v4 = vmul.f32 %v4153_v53, %v4153_v53  ;;  %v5361_v47 = vpop.f32.mrf.mxu1 }
 0x1f9   : > { %v5395_v30 = vpop.f32.mrf.mxu0  ;;  %v3416_v59 = vadd.f32 %v5360_v29, %v6902_v28  ;;  %v3417_v36 = vadd.f32 %v5361_v47, %v6908_v60 }
 0x1fa   : > { %v4156_v54 = vmul.f32 %v6992_v17, %v3724_v43  ;;  %v3727_v63 = vadd.f32 %v5395_v30, %v3413_v33  ;;  %v4189_v38 = vadd.f32 %v4188_v18, %v4154_v24  ;;  %v4265_v51 = vadd.f32 %v4264_v12, %v4230_v4  ;;  %v3322_v7 = vpop.f32.mrf.mxu1  ;;  %v4077_v12 = vpop.permute.xlu0 %4076 }
 0x1fb   : > { %v3620_v44 = vpop.f32.mrf.mxu0  ;;  %v4158_v17 = vmul.f32 %v7005_v2, %v3726_v27  ;;  %v3415_v4 = vadd.f32 %v3322_v7, %v6911_v26  ;;  %v4082_v30 = vpop.permute.xlu1 %4081 }
 0x1fc   : > { %v4834_v62 = vpack.c.bf16 %v3727_v63, %v3726_v27  ;;  %v4266_v6 = vadd.f32 %v4265_v51, %v4231_v14  ;;  %v4190_v52 = vadd.f32 %v4189_v38, %v4155_v56  ;;  %v3725_v49 = vadd.f32 %v3620_v44, %v3411_v19  ;;  %v5364_v15 = vpop.f32.mrf.mxu1 }
 0x1fd   : > { %v5398_v22 = vpop.f32.mrf.mxu0  ;;  %v4233_v58 = vmul.f32 %v4156_v54, %v4156_v54  ;;  %v4159_v48 = vmul.f32 %v7009_v8, %v3727_v63  ;;  %v4235_v18 = vmul.f32 %v4158_v17, %v4158_v17 }
 0x1fe   : > { %4892 = vst [vmem:[%s6990_s13 + $0x38] sm:$0xff] %v4834_v62   ;;  %v4191_v23 = vadd.f32 %v4190_v52, %v4156_v54  ;;  %v4267_v13 = vadd.f32 %v4266_v6, %v4232_v35  ;;  %v4829_v34 = vpack.c.bf16 %v3725_v49, %v3724_v43  ;;  %v4157_v24 = vmul.f32 %v6995_v46, %v3725_v49  ;;  %v3335_v3 = vpop.f32.mrf.mxu1  ;;  %v4087_v7 = vpop.permute.xlu0 %4086 }
 0x1ff   : > { %v3633_v42 = vpop.f32.mrf.mxu0  ;;  %v3730_v56 = vadd.f32 %v5398_v22, %v3416_v59  ;;  %v4236_v27 = vmul.f32 %v4159_v48, %v4159_v48  ;;  %v3420_v49 = vadd.f32 %v5364_v15, %v6914_v39 }
 0x200   : > { %v3728_v11 = vadd.f32 %v3633_v42, %v3414_v50  ;;  %v4268_v53 = vadd.f32 %v4267_v13, %v4233_v58  ;;  %4891 = vst [vmem:[%s6990_s13 + $0x30] sm:$0xff] %v4829_v34   ;;  %v4192_v2 = vadd.f32 %v4191_v23, %v4157_v24  ;;  %v4234_v57 = vmul.f32 %v4157_v24, %v4157_v24  ;;  %v5365_v29 = vpop.f32.mrf.mxu1  ;;  %v7061_v34 = vpop.permute.xlu1 %4091 }
 0x201   : > { %v5399_v33 = vpop.f32.mrf.mxu0  ;;  %v4162_v51 = vmul.f32 %v7025_v20, %v3730_v56  ;;  %v3421_v22 = vadd.f32 %v5365_v29, %v6924_v0 }
 0x202   : > { %v4160_v43 = vmul.f32 %v7015_v61, %v3728_v11  ;;  %v3731_v46 = vadd.f32 %v5399_v33, %v3417_v36  ;;  %v4193_v28 = vadd.f32 %v4192_v2, %v4158_v17  ;;  %v4269_v60 = vadd.f32 %v4268_v53, %v4234_v57  ;;  %v3338_v14 = vpop.f32.mrf.mxu1 }
 0x203   : > { %v3636_v55 = vpop.f32.mrf.mxu0  ;;  %v3418_v61 = vadd.f32 %v3335_v3, %v6919_v1  ;;  %v4239_v59 = vmul.f32 %v4162_v51, %v4162_v51  ;;  %v3419_v39 = vadd.f32 %v3338_v14, %v6927_v31 }
 0x204   : > { %v4844_v8 = vpack.c.bf16 %v3731_v46, %v3730_v56  ;;  %v4270_v54 = vadd.f32 %v4269_v60, %v4235_v18  ;;  %v4194_v63 = vadd.f32 %v4193_v28, %v4159_v48  ;;  %v3729_v19 = vadd.f32 %v3636_v55, %v3415_v4  ;;  %v5368_v6 = vpop.f32.mrf.mxu1  ;;  %v4097_v56 = vpop.permute.xlu0 %4096 }
 0x205   : > { %v5402_v38 = vpop.f32.mrf.mxu0  ;;  %v4237_v47 = vmul.f32 %v4160_v43, %v4160_v43  ;;  %v4163_v20 = vmul.f32 %v7031_v16, %v3731_v46  ;;  %v4102_v55 = vpop.permute.xlu1 %4101 }
 0x206   : > { %4894 = vst [vmem:[%s6990_s13 + $0x48] sm:$0xff] %v4844_v8   ;;  %v4195_v26 = vadd.f32 %v4194_v63, %v4160_v43  ;;  %v4271_v44 = vadd.f32 %v4270_v54, %v4236_v27  ;;  %v4839_v62 = vpack.c.bf16 %v3729_v19, %v3728_v11  ;;  %v4161_v35 = vmul.f32 %v7021_v40, %v3729_v19  ;;  %v3351_v23 = vpop.f32.mrf.mxu1 }
 0x207   : > { %v3649_v52 = vpop.f32.mrf.mxu0  ;;  %v3734_v24 = vadd.f32 %v5402_v38, %v3420_v49  ;;  %v4240_v53 = vmul.f32 %v4163_v20, %v4163_v20  ;;  %v3424_v8 = vadd.f32 %v5368_v6, %v6932_v9 }
 0x208   : > { %v3732_v17 = vadd.f32 %v3649_v52, %v3418_v61  ;;  %v4272_v50 = vadd.f32 %v4271_v44, %v4237_v47  ;;  %4893 = vst [vmem:[%s6990_s13 + $0x40] sm:$0xff] %v4839_v62   ;;  %v4196_v1 = vadd.f32 %v4195_v26, %v4161_v35  ;;  %v4238_v58 = vmul.f32 %v4161_v35, %v4161_v35  ;;  %v5369_v36 = vpop.f32.mrf.mxu1 }
 0x209   : > { %v5403_v13 = vpop.f32.mrf.mxu0  ;;  %v4166_v43 = vmul.f32 %v4077_v12, %v3734_v24  ;;  %v3425_v27 = vadd.f32 %v5369_v36, %v6940_v5  ;;  %v4107_v5 = vpop.permute.xlu0 %4106 }
 0x20a   : > { %v4164_v40 = vmul.f32 %v7039_v41, %v3732_v17  ;;  %v3735_v42 = vadd.f32 %v5403_v13, %v3421_v22  ;;  %v4197_v0 = vadd.f32 %v4196_v1, %v4162_v51  ;;  %v4273_v15 = vadd.f32 %v4272_v50, %v4238_v58  ;;  %v3354_v57 = vpop.f32.mrf.mxu1 }
 0x20b   : > { %v3652_v11 = vpop.f32.mrf.mxu0  ;;  %v3422_v41 = vadd.f32 %v3351_v23, %v6937_v10  ;;  %v4243_v26 = vmul.f32 %v4166_v43, %v4166_v43 }
 0x20c   : > { %v4854_v16 = vpack.c.bf16 %v3735_v42, %v3734_v24  ;;  %v4274_v48 = vadd.f32 %v4273_v15, %v4239_v59  ;;  %v4198_v2 = vadd.f32 %v4197_v0, %v4163_v20  ;;  %v3733_v3 = vadd.f32 %v3652_v11, %v3419_v39  ;;  %v5372_v60 = vpop.f32.mrf.mxu1  ;;  %v4112_v20 = vpop.permute.xlu1 %4111 }
 0x20d   : > { %v5406_v33 = vpop.f32.mrf.mxu0  ;;  %v4241_v46 = vmul.f32 %v4164_v40, %v4164_v40  ;;  %v4167_v12 = vmul.f32 %v4082_v30, %v3735_v42  ;;  %v3428_v59 = vadd.f32 %v5372_v60, %v6950_v37 }
 0x20e   : > { %4896 = vst [vmem:[%s6990_s13 + $0x58] sm:$0xff] %v4854_v16   ;;  %v4199_v31 = vadd.f32 %v4198_v2, %v4164_v40  ;;  %v4275_v18 = vadd.f32 %v4274_v48, %v4240_v53  ;;  %v4849_v4 = vpack.c.bf16 %v3733_v3, %v3732_v17  ;;  %v4165_v28 = vmul.f32 %v7041_v45, %v3733_v3  ;;  %v3367_v19 = vpop.f32.mrf.mxu1  ;;  %v4117_v48 = vpop.permute.xlu0 %4116 }
 0x20f   : > { %v3665_v29 = vpop.f32.mrf.mxu0  ;;  %v3738_v51 = vadd.f32 %v5406_v33, %v3424_v8  ;;  %v3423_v45 = vadd.f32 %v3354_v57, %v6945_v25  ;;  %v4244_v52 = vmul.f32 %v4167_v12, %v4167_v12  ;;  %v3426_v1 = vadd.f32 %v3367_v19, %v6953_v21  ;;  %v7153_v8 = vld [vmem:[#allocation12_spill] sm:$0xff] }
 0x210   : > { %v3736_v54 = vadd.f32 %v3665_v29, %v3422_v41  ;;  %v4276_v63 = vadd.f32 %v4275_v18, %v4241_v46  ;;  %4895 = vst [vmem:[%s6990_s13 + $0x50] sm:$0xff] %v4849_v4   ;;  %v4200_v14 = vadd.f32 %v4199_v31, %v4165_v28  ;;  %v4242_v10 = vmul.f32 %v4165_v28, %v4165_v28  ;;  %v5373_v9 = vpop.f32.mrf.mxu1  ;;  %v4122_v46 = vpop.permute.xlu1 %4121 }
 0x211   : > { %v5407_v38 = vpop.f32.mrf.mxu0  ;;  %v3429_v39 = vadd.f32 %v5373_v9, %v6958_v32 }
 0x212   : > { %v4168_v61 = vmul.f32 %v4087_v7, %v3736_v54  ;;  %v3739_v47 = vadd.f32 %v5407_v38, %v3425_v27  ;;  %v4201_v44 = vadd.f32 %v4200_v14, %v4166_v43  ;;  %v4277_v62 = vadd.f32 %v4276_v63, %v4242_v10  ;;  %v3370_v22 = vpop.f32.mrf.mxu1 }
 0x213   : > { %v3668_v35 = vpop.f32.mrf.mxu0  ;;  %v4170_v7 = vmul.f32 %v4097_v56, %v3738_v51 }
 0x214   : > { %v4864_v6 = vpack.c.bf16 %v3739_v47, %v3738_v51  ;;  %v4278_v30 = vadd.f32 %v4277_v62, %v4243_v26  ;;  %v4202_v49 = vadd.f32 %v4201_v44, %v4167_v12  ;;  %v3737_v17 = vadd.f32 %v3668_v35, %v3423_v45  ;;  %v5376_v40 = vpop.f32.mrf.mxu1  ;;  %v4127_v51 = vpop.permute.xlu0 %4126  ;;  %v7155_v26 = vld [vmem:[#allocation3_spill] sm:$0xff] }
 0x215   : > { %v5410_v50 = vpop.f32.mrf.mxu0  ;;  %v4245_v58 = vmul.f32 %v4168_v61, %v4168_v61  ;;  %v4171_v36 = vmul.f32 %v4102_v55, %v3739_v47  ;;  %v4247_v33 = vmul.f32 %v4170_v7, %v4170_v7 }
 0x216   : > { %4898 = vst [vmem:[%s6990_s13 + $0x68] sm:$0xff] %v4864_v6   ;;  %v4203_v25 = vadd.f32 %v4202_v49, %v4168_v61  ;;  %v4279_v23 = vadd.f32 %v4278_v30, %v4244_v52  ;;  %v4859_v13 = vpack.c.bf16 %v3737_v17, %v3736_v54  ;;  %v4169_v24 = vmul.f32 %v7061_v34, %v3737_v17  ;;  %v3383_v21 = vpop.f32.mrf.mxu1  ;;  %v7152_v34 = vld [vmem:[#allocation2_spill] sm:$0xff]  ;;  %v4132_v52 = vpop.permute.xlu1 %4131  ;;  %v7156_v30 = vld [vmem:[#allocation4_spill] sm:$0xff] }
 0x217   : > { %v3681_v42 = vpop.f32.mrf.mxu0  ;;  %v3742_v2 = vadd.f32 %v5410_v50, %v3428_v59  ;;  %v3427_v56 = vadd.f32 %v3370_v22, %v7152_v34  ;;  %v4248_v18 = vmul.f32 %v4171_v36, %v4171_v36  ;;  %v3430_v27 = vadd.f32 %v3383_v21, %v7153_v8  ;;  %v7154_v61 = vld [vmem:[#allocation10_spill] sm:$0xff] }
 0x218   : > { %v3740_v0 = vadd.f32 %v3681_v42, %v3426_v1  ;;  %v4280_v15 = vadd.f32 %v4279_v23, %v4245_v58  ;;  %4897 = vst [vmem:[%s6990_s13 + $0x60] sm:$0xff] %v4859_v13   ;;  %v4204_v11 = vadd.f32 %v4203_v25, %v4169_v24  ;;  %v4246_v16 = vmul.f32 %v4169_v24, %v4169_v24  ;;  %v5377_v41 = vpop.f32.mrf.mxu1  ;;  %v4137_v42 = vpop.permute.xlu0 %4136 }
 0x219   : > { %v5411_v53 = vpop.f32.mrf.mxu0  ;;  %v4174_v55 = vmul.f32 %v4117_v48, %v3742_v2  ;;  %v3432_v47 = vadd.f32 %v5376_v40, %v7154_v61  ;;  %v3433_v45 = vadd.f32 %v5377_v41, %v7155_v26 }
 0x21a   : > { %v4172_v57 = vmul.f32 %v4107_v5, %v3740_v0  ;;  %v3743_v3 = vadd.f32 %v5411_v53, %v3429_v39  ;;  %v4205_v43 = vadd.f32 %v4204_v11, %v4170_v7  ;;  %v4281_v37 = vadd.f32 %v4280_v15, %v4246_v16  ;;  %v3386_v14 = vpop.f32.mrf.mxu1  ;;  %v4142_v16 = vpop.permute.xlu1 %4141 }
 0x21b   : > { %v3684_v32 = vpop.f32.mrf.mxu0  ;;  %v3431_v49 = vadd.f32 %v3386_v14, %v7156_v30  ;;  %v4251_v50 = vmul.f32 %v4174_v55, %v4174_v55 }
 0x21c   : > { %v4874_v31 = vpack.c.bf16 %v3743_v3, %v3742_v2  ;;  %v4282_v4 = vadd.f32 %v4281_v37, %v4247_v33  ;;  %v4206_v28 = vadd.f32 %v4205_v43, %v4171_v36  ;;  %v3741_v60 = vadd.f32 %v3684_v32, %v3427_v56 }
 0x21d   : > { %v5414_v29 = vpop.f32.mrf.mxu0  ;;  %v4249_v54 = vmul.f32 %v4172_v57, %v4172_v57  ;;  %v4175_v9 = vmul.f32 %v4122_v46, %v3743_v3  ;;  %v4298_v32 = vlaneseq }
 0x21e   : > { %4900 = vst [vmem:[%s6990_s13 + $0x78] sm:$0xff] %v4874_v31   ;;  %v4207_v63 = vadd.f32 %v4206_v28, %v4172_v57  ;;  %v4283_v12 = vadd.f32 %v4282_v4, %v4248_v18  ;;  %v4869_v10 = vpack.c.bf16 %v3741_v60, %v3740_v0  ;;  %v4173_v19 = vmul.f32 %v4112_v20, %v3741_v60 }
 0x21f   : > { %v3697_v38 = vpop.f32.mrf.mxu0  ;;  %v3746_v22 = vadd.f32 %v5414_v29, %v3432_v47  ;;  %v4252_v13 = vmul.f32 %v4175_v9, %v4175_v9  ;;  %v4299_v28 = vshrl.u32 %v4298_v32, 7 }
 0x220   : > { %v3744_v44 = vadd.f32 %v3697_v38, %v3430_v27  ;;  %v4284_v62 = vadd.f32 %v4283_v12, %v4249_v54  ;;  %4899 = vst [vmem:[%s6990_s13 + $0x70] sm:$0xff] %v4869_v10   ;;  %v4208_v35 = vadd.f32 %v4207_v63, %v4173_v19  ;;  %v4250_v5 = vmul.f32 %v4173_v19, %v4173_v19 }
 0x221   : > { %v5415_v6 = vpop.f32.mrf.mxu0  ;;  %v4178_v0 = vmul.f32 %v4137_v42, %v3746_v22  ;;  %vm4300_vm8 = vcmp.eq.s32.totalorder %v4299_v28, 0 }
 0x222   : > { %v3747_v17 = vadd.f32 %v5415_v6, %v3433_v45  ;;  %v4209_v20 = vadd.f32 %v4208_v35, %v4174_v55  ;;  %v4285_v7 = vadd.f32 %v4284_v62, %v4250_v5  ;;  %v4176_v1 = vmul.f32 %v4127_v51, %v3744_v44 }
 0x223   : > { %v3700_v58 = vpop.f32.mrf.mxu0  ;;  %v4255_v57 = vmul.f32 %v4178_v0, %v4178_v0 }
 0x224   : > { %v4884_v25 = vpack.c.bf16 %v3747_v17, %v3746_v22  ;;  %v3745_v23 = vadd.f32 %v3700_v58, %v3431_v49  ;;  %v4286_v24 = vadd.f32 %v4285_v7, %v4251_v50  ;;  %v4210_v40 = vadd.f32 %v4209_v20, %v4175_v9 }
 0x225   : > { %v4253_v36 = vmul.f32 %v4176_v1, %v4176_v1  ;;  %v4179_v48 = vmul.f32 %v4142_v16, %v3747_v17 }
 0x226   : > { %4902 = vst [vmem:[%s6990_s13 + $0x88] sm:$0xff] %v4884_v25   ;;  %v4879_v59 = vpack.c.bf16 %v3745_v23, %v3744_v44  ;;  %v4177_v39 = vmul.f32 %v4132_v52, %v3745_v23  ;;  %v4211_v15 = vadd.f32 %v4210_v40, %v4176_v1  ;;  %v4287_v11 = vadd.f32 %v4286_v24, %v4252_v13 }
 0x227   : > { %v4256_v34 = vmul.f32 %v4179_v48, %v4179_v48 }
 0x228   : > { %4901 = vst [vmem:[%s6990_s13 + $0x80] sm:$0xff] %v4879_v59   ;;  %v4254_v21 = vmul.f32 %v4177_v39, %v4177_v39  ;;  %v4288_v53 = vadd.f32 %v4287_v11, %v4253_v36  ;;  %v4212_v2 = vadd.f32 %v4211_v15, %v4177_v39 }
 0x22a   : > { %v4213_v3 = vadd.f32 %v4212_v2, %v4178_v0  ;;  %v4289_v33 = vadd.f32 %v4288_v53, %v4254_v21 }
 0x22c   : > { %v4214_v56 = vadd.f32 %v4213_v3, %v4179_v48  ;;  %v4290_v43 = vadd.f32 %v4289_v33, %v4255_v57 }
 0x22e   : > { %v4215_v37 = vrot.slane %v4214_v56, 4  ;;  %v4291_v41 = vadd.f32 %v4290_v43, %v4256_v34 }
 0x230   : > { %v4216_v46 = vadd.f32 %v4215_v37, %v4214_v56  ;;  %v4292_v31 = vrot.slane %v4291_v41, 4 }
 0x232   : > { %v4217_v18 = vrot.slane %v4216_v46, 2  ;;  %v4293_v4 = vadd.f32 %v4292_v31, %v4291_v41 }
 0x234   : > { %v4218_v60 = vadd.f32 %v4217_v18, %v4216_v46  ;;  %v4294_v29 = vrot.slane %v4293_v4, 2 }
 0x236   : > { %v4219_v55 = vrot.slane %v4218_v60, 1  ;;  %v4295_v8 = vadd.f32 %v4294_v29, %v4293_v4 }
 0x238   : > { %v4220_v27 = vadd.f32 %v4219_v55, %v4218_v60  ;;  %v4296_v54 = vrot.slane %v4295_v8, 1 }
 0x23a   : > { %v4297_v63 = vadd.f32 %v4296_v54, %v4295_v8  ;;  %v4301_v12 = vsel %vm4300_vm8, %v4220_v27, 0.0 }
 0x23b   : > { %4302 = vst [vmem:[%s291_s17] sm:$0xff] %v4301_v12 }
 0x23c   : > { %v4303_v14 = vsel %vm4300_vm8, %v4297_v63, 0.0 }
 0x23d   : > { %4304 = vst [vmem:[%s298_s24] sm:$0xff] %v4303_v14 }
 0x23e PF: > { %s16_s20 = sadd.s32 1, %s5541_s20   ;;  %s7157_s18 = smov %s5537_s19 }
 0x23f   : > { %p13_p5 = scmp.ge.s32.totalorder %s16_s20, 4   ;;  %s7158_s19 = smov %s7160_s21 }
 0x241   :  { %15 = sbr.rel (!%p13_p5) target bundleno = 2 (0x2), region = 97 }

</bundles_post_ra>
